<compile_context>
chip_gen: v5e
topology: v5e:2x2
jax: 0.10.0
libtpu: 0.0.40
codegen_flags: <defaults>
</compile_context>

<pallas_src>
import math

import jax
import jax.numpy as jnp
from jax.experimental import pallas as pl
from jax.experimental.pallas import tpu as pltpu


C_FIXED = 2048          # hard-coded by the PyTorch module (x.view(B, 2048, LS, LS))
_LANE = 128
_SUBLANE = 8
_MAX_TILE_B = 1024                     # diminishing returns past this
_POOL_MAT_BUDGET = 4 * 1024 * 1024     # cap on the resident pooling matrix


def _round_up(x, m):
    return ((x + m - 1) // m) * m


def _num_tensorcores():
    """Best-effort TensorCore count behind one device (megacore / v7x)."""
    try:
        kind = jax.devices()[0].device_kind.lower()
    except Exception:
        return 1
    return 2 if any(t in kind for t in ("v4", "v5p", "v7")) else 1


def _make_skipfc_kernel(c_block):
    def kernel(x_ref, p_ref, w_ref, b_ref, out_ref):
        # x_ref:   (tile_b, c_block*S)   x.dtype  streamed batch-rows x K-slice
        # p_ref:   (c_block*S, c_block)  x.dtype  block-diagonal 0/1 pool matrix (resident)
        # w_ref:   (2048, n_pad)         f32      fc weight.T / S, lane-padded (resident)
        # b_ref:   (1, n_pad)            f32      lane-padded bias (resident)
        # out_ref: (tile_b, n_pad)       f32      resident accumulator across the K axis
        k = pl.program_id(1)

        @pl.when(k == 0)
        def _():
            out_ref[...] = jnp.broadcast_to(b_ref[...], out_ref.shape)

        # Spatial pooling on the MXU: sum over the S positions of each channel.
        pooled = jnp.dot(x_ref[...], p_ref[...],
                         preferred_element_type=jnp.float32)
        # Matching channel block of the resident (1/S-scaled) weight.
        c0 = pl.multiple_of(k * c_block, c_block)
        w_blk = w_ref[pl.ds(c0, c_block), :]
        out_ref[...] += jnp.dot(pooled, w_blk,
                                preferred_element_type=jnp.float32)

    return kernel


def skip_fc_forward(x, weight, bias):
    """x: (B, CHW). weight: (N, 2048) (PyTorch fc.weight layout). bias: (N,).

    Returns (fc_out: (B, N) float32, x4: (B, 2048, LS, LS)), matching the
    PyTorch module's (self.fc(self.avg_pool(x).squeeze()), x) return.
    """
    B, CHW = x.shape
    N = weight.shape[0]
    LS = int(round((CHW / C_FIXED) ** 0.5))
    S = LS * LS
    assert C_FIXED * S == CHW, "CHW must equal 2048 * LS * LS"

    x4 = x.reshape(B, C_FIXED, LS, LS)          # the returned "x" (metadata reshape)

    x_item = jnp.dtype(x.dtype).itemsize
    n_pad = _round_up(N, _LANE)

    # ---- channel block: c_block*S must be lane-aligned; keep P small --------
    c_block = _LANE // math.gcd(S, _LANE)       # smallest c with c*S % 128 == 0

    def _p_bytes(c):
        return c * S * c * x_item

    while (c_block < C_FIXED and c_block * S < 4096
           and _p_bytes(2 * c_block) <= _POOL_MAT_BUDGET):
        c_block *= 2
    tile_k = c_block * S                        # multiple of 128, divides CHW
    nk = C_FIXED // c_block

    # ---- compact, pool-folded params (tiny plain-JAX glue) ------------------
    w_in = jnp.pad(weight.astype(jnp.float32).T / jnp.float32(S),
                   ((0, 0), (0, n_pad - N)))                       # (2048, n_pad)
    b_in = jnp.pad(bias.astype(jnp.float32), (0, n_pad - N)).reshape(1, n_pad)
    # Block-diagonal 0/1 pooling matrix: P[c*S + s, c] = 1 (exact in any dtype).
    p_mat = jnp.repeat(jnp.eye(c_block, dtype=x.dtype), S, axis=0)  # (tile_k, c_block)

    # ---- generation-aware batch tiling ---------------------------------------
    vmem_cap = 64 * 1024 * 1024                 # conservative fallback
    try:
        vmem_cap = int(pltpu.get_tpu_info().vmem_capacity_bytes)
    except Exception:
        pass
    budget = min(int(vmem_cap * 0.7), 100 * 1024 * 1024)
    # Count 2x (double-buffering) for everything behind a BlockSpec.
    fixed_bytes = 2 * (tile_k * c_block * x_item      # pooling matrix (resident)
                       + C_FIXED * n_pad * 4          # weight (resident)
                       + n_pad * 4)                   # bias
    per_row = 2 * (tile_k * x_item + n_pad * 4)       # x block + out block
    tile_b = max(_SUBLANE, min(_MAX_TILE_B, (budget - fixed_bytes) // per_row))

    # Dual-TensorCore chips: keep >=2 batch tiles so the "parallel" axis shards.
    if _num_tensorcores() >= 2 and B >= 2 * _SUBLANE:
        tile_b = min(tile_b, _round_up(_round_up(B, _SUBLANE) // 2, _SUBLANE))

    if B <= tile_b:
        tile_b = B                              # single full-extent batch block
    else:
        tile_b = max(_SUBLANE, (tile_b // _SUBLANE) * _SUBLANE)
        for tb in range(tile_b, _SUBLANE - 1, -_SUBLANE):
            if B % tb == 0:                     # prefer an exact divisor of B
                tile_b = tb
                break
        # else: ragged last batch block — Pallas masks out-of-range rows on
        # writeback; no padded copy of x is materialized.
    nb = pl.cdiv(B, tile_b)

    est_use = fixed_bytes + per_row * tile_b
    vmem_limit = int(min(vmem_cap * 7 // 8, max(budget, est_use) + (8 << 20)))

    fc_full = pl.pallas_call(
        _make_skipfc_kernel(c_block),
        out_shape=jax.ShapeDtypeStruct((B, n_pad), jnp.float32),
        grid=(nb, nk),
        in_specs=[
            pl.BlockSpec((tile_b, tile_k), lambda i, k: (i, k)),    # x  (streamed)
            pl.BlockSpec((tile_k, c_block), lambda i, k: (0, 0)),   # P  (resident)
            pl.BlockSpec((C_FIXED, n_pad), lambda i, k: (0, 0)),    # W  (resident)
            pl.BlockSpec((1, n_pad), lambda i, k: (0, 0)),          # b  (resident)
        ],
        out_specs=pl.BlockSpec((tile_b, n_pad), lambda i, k: (i, 0)),
        compiler_params=pltpu.CompilerParams(
            dimension_semantics=("parallel", "arbitrary"),
            vmem_limit_bytes=vmem_limit,
        ),
    )(x, p_mat, w_in, b_in)

    fc_out = fc_full if n_pad == N else fc_full[:, :N]
    return fc_out, x4


if __name__ == "__main__":
    # Small shapes consistent with the module: B=2, C=2048 (fixed), LS=2.
    B = 2
    LS = 2
    N_OUT = 32              # fc = nn.Linear(2048, 32) for this synthetic instance
    CHW = C_FIXED * LS * LS

    key = jax.random.PRNGKey(0)
    kx, kw, kb = jax.random.split(key, 3)

    x = jax.random.normal(kx, (B, CHW), dtype=jnp.float32)

    # Deterministic PyTorch-style Linear init: U(-1/sqrt(fan_in), 1/sqrt(fan_in))
    bound = 1.0 / (C_FIXED ** 0.5)
    weight = jax.random.uniform(kw, (N_OUT, C_FIXED), minval=-bound, maxval=bound,
                                dtype=jnp.float32)
    bias = jax.random.uniform(kb, (N_OUT,), minval=-bound, maxval=bound,
                              dtype=jnp.float32)

    fc_out, x4 = skip_fc_forward(x, weight, bias)
    jax.block_until_ready((fc_out, x4))

    # Pure-JAX reference for the forward semantics.
    pooled_ref = jnp.mean(x.reshape(B, C_FIXED, LS * LS), axis=-1)
    fc_ref = pooled_ref @ weight.T + bias
    assert fc_out.shape == (B, N_OUT)
    assert x4.shape == (B, C_FIXED, LS, LS)
    max_err = float(jnp.max(jnp.abs(fc_out - fc_ref)))
    assert jnp.allclose(fc_out, fc_ref, atol=1e-4, rtol=1e-4), max_err
    assert jnp.array_equal(x4, x.reshape(B, C_FIXED, LS, LS))

    print("KERNEL_OK")
</pallas_src>

<mosaic_0001>
module attributes {stable_mosaic.version = 11 : i64} {
  func.func @kernel(%arg0: i32, %arg1: i32, %arg2: memref<2x2048xf32, #tpu.memory_space<vmem>>, %arg3: memref<2048x512xf32, #tpu.memory_space<vmem>>, %arg4: memref<2048x128xf32, #tpu.memory_space<vmem>>, %arg5: memref<1x128xf32, #tpu.memory_space<vmem>>, %arg6: memref<2x128xf32, #tpu.memory_space<vmem>>) attributes {dimension_semantics = [#tpu.dimension_semantics<parallel>, #tpu.dimension_semantics<arbitrary>], iteration_bounds = array<i64: 1, 4>, scalar_prefetch = 0 : i64, scratch_operands = 0 : i64, tpu.core_type = #tpu.core_type<tc>, window_params = [{transform_indices = @transform_0, window_bounds = array<i64: 2, 2048>}, {pipeline_mode = #tpu.pipeline_mode<synchronous>, transform_indices = @transform_1, window_bounds = array<i64: 2048, 512>}, {pipeline_mode = #tpu.pipeline_mode<synchronous>, transform_indices = @transform_2, window_bounds = array<i64: 2048, 128>}, {pipeline_mode = #tpu.pipeline_mode<synchronous>, transform_indices = @transform_3, window_bounds = array<i64: 1, 128>}, {transform_indices = @transform_4, window_bounds = array<i64: 2, 128>}]} {
    %c0_i32 = arith.constant 0 : i32
    %0 = arith.cmpi eq, %arg1, %c0_i32 : i32
    %1 = arith.extui %0 : i1 to i32
    %c0_i32_0 = arith.constant 0 : i32
    %2 = arith.cmpi ne, %1, %c0_i32_0 : i32
    scf.if %2 {
      %c0_10 = arith.constant 0 : index
      %c0_11 = arith.constant 0 : index
      %14 = vector.load %arg5[%c0_10, %c0_11] : memref<1x128xf32, #tpu.memory_space<vmem>>, vector<1x128xf32>
      %15 = vector.shape_cast %14 : vector<1x128xf32> to vector<1x128xf32>
      %16 = vector.broadcast %15 : vector<1x128xf32> to vector<2x128xf32>
      %c0_12 = arith.constant 0 : index
      %c0_13 = arith.constant 0 : index
      %17 = vector.load %arg6[%c0_12, %c0_13] : memref<2x128xf32, #tpu.memory_space<vmem>>, vector<2x128xf32>
      tpu.vector_store %arg6[%c0_12, %c0_13], %16 {strides = array<i32>} : memref<2x128xf32, #tpu.memory_space<vmem>>, vector<2x128xf32>,
    } else {
    }
    %c0 = arith.constant 0 : index
    %c0_1 = arith.constant 0 : index
    %3 = vector.load %arg2[%c0, %c0_1] : memref<2x2048xf32, #tpu.memory_space<vmem>>, vector<2x2048xf32>
    %c0_2 = arith.constant 0 : index
    %c0_3 = arith.constant 0 : index
    %4 = vector.load %arg3[%c0_2, %c0_3] : memref<2048x512xf32, #tpu.memory_space<vmem>>, vector<2048x512xf32>
    %cst = arith.constant dense<0.000000e+00> : vector<2x512xf32>
    %5 = tpu.matmul %3, %4, %cst {dimension_numbers = #tpu.dot_dimension_numbers<[1], [0], [0], [1], [0, 0, 1, 1], [], []>} : vector<2x2048xf32>, vector<2048x512xf32>, vector<2x512xf32> -> vector<2x512xf32>
    %c512_i32 = arith.constant 512 : i32
    %6 = arith.muli %arg1, %c512_i32 : i32
    %7 = tpu.assume_multiple %6, 512 : i32
    %8 = arith.index_cast %7 : i32 to index
    %c0_4 = arith.constant 0 : index
    %9 = vector.load %arg4[%8, %c0_4] : memref<2048x128xf32, #tpu.memory_space<vmem>>, vector<512x128xf32>
    %c0_5 = arith.constant 0 : index
    %c0_6 = arith.constant 0 : index
    %10 = vector.load %arg6[%c0_5, %c0_6] : memref<2x128xf32, #tpu.memory_space<vmem>>, vector<2x128xf32>
    %cst_7 = arith.constant dense<0.000000e+00> : vector<2x128xf32>
    %11 = tpu.matmul %5, %9, %cst_7 {dimension_numbers = #tpu.dot_dimension_numbers<[1], [0], [0], [1], [0, 0, 1, 1], [], []>} : vector<2x512xf32>, vector<512x128xf32>, vector<2x128xf32> -> vector<2x128xf32>
    %12 = arith.addf %10, %11 : vector<2x128xf32>
    %c0_8 = arith.constant 0 : index
    %c0_9 = arith.constant 0 : index
    %13 = vector.load %arg6[%c0_8, %c0_9] : memref<2x128xf32, #tpu.memory_space<vmem>>, vector<2x128xf32>
    tpu.vector_store %arg6[%c0_8, %c0_9], %12 {strides = array<i32>} : memref<2x128xf32, #tpu.memory_space<vmem>>, vector<2x128xf32>,
    return
  }
  func.func @transform_0(%arg0: i32, %arg1: i32) -> (i32, i32) {
    %c0_i32 = arith.constant 0 : i32
    return %arg0, %arg1 : i32, i32
  }
  func.func @transform_1(%arg0: i32, %arg1: i32) -> (i32, i32) {
    %c0_i32 = arith.constant 0 : i32
    %c0_i32_0 = arith.constant 0 : i32
    %c0_i32_1 = arith.constant 0 : i32
    return %c0_i32, %c0_i32_0 : i32, i32
  }
  func.func @transform_2(%arg0: i32, %arg1: i32) -> (i32, i32) {
    %c0_i32 = arith.constant 0 : i32
    %c0_i32_0 = arith.constant 0 : i32
    %c0_i32_1 = arith.constant 0 : i32
    return %c0_i32, %c0_i32_0 : i32, i32
  }
  func.func @transform_3(%arg0: i32, %arg1: i32) -> (i32, i32) {
    %c0_i32 = arith.constant 0 : i32
    %c0_i32_0 = arith.constant 0 : i32
    %c0_i32_1 = arith.constant 0 : i32
    return %c0_i32, %c0_i32_0 : i32, i32
  }
  func.func @transform_4(%arg0: i32, %arg1: i32) -> (i32, i32) {
    %c0_i32 = arith.constant 0 : i32
    %c0_i32_0 = arith.constant 0 : i32
    return %arg0, %c0_i32 : i32, i32
  }
}

</mosaic_0001>

<bundles_post_ra>
// kernel: tpu_custom_call.1
= control target key start
LH: loop header
LB: loop body
LE: loop exit
PB: predicated region body
PF: predicated region fallthrough
CT: control target
= control target key end

     0   :  { %9 = vsyncpa [#allocation3], 0  ;;  %s3629_s0 = inlined_call_operand.hbm [shape: f32[2,8192], index: 0, kind: input, shape index: {}]   ;;  %s3630_s1 = inlined_call_operand.hbm [shape: f32[2048,512], index: 1, kind: input, shape index: {}]   ;;  %s3631_s2 = inlined_call_operand.hbm [shape: f32[2048,128], index: 2, kind: input, shape index: {}]   ;;  %s3632_s3 = inlined_call_operand.hbm [shape: f32[1,128], index: 3, kind: input, shape index: {}]   ;;  %s3633_s4 = inlined_call_operand.hbm [shape: f32[2,128], index: 4, kind: output, shape index: {}]  }
   0x1   :  { %11 = vsyncpa [#allocation3 + $0x1], 0 }
   0x2   :  { %12 = vsyncpa [#allocation6], 0 }
   0x3   :  { %13 = vsyncpa [#allocation9], 0 }
   0x4   :  { %14 = vsyncpa [#allocation4], 0  ;;  %s3275_s15 = smov 0   ;;  %s3277_s16 = smov 0  }
   0x5   :  { %s3279_s17 = smov 0   ;;  %s3281_s18 = smov 0  }
   0x6   :  { %s3283_s19 = smov 0   ;;  %s3285_s20 = smov 0  }
   0x7 LB: > { %s2887_s21 = sadd.s32 4294967295, %s3240_s20   ;;  %p2888_p0 = scmp.ge.s32.totalorder %s3240_s20, 1  ;;  %s3240_s20 = sphi %s3285_s20, %s20_s20   ;;  %s3236_s19 = sphi %s3283_s19, %s3643_s19   ;;  %s3232_s18 = sphi %s3281_s18, %s3642_s18   ;;  %s3228_s17 = sphi %s3279_s17, %s3641_s17   ;;  %s3224_s16 = sphi %s3277_s16, %s3640_s16   ;;  %s3220_s15 = sphi %s3275_s15, %s3639_s15  }
   0x8   : > { %p3309_p1 = scmp.eq.s32.totalorder %s2887_s21, 0  ;;  %p154_p2 = scmp.lt.s32.totalorder %s3240_s20, 5 }
   0x9   : > { %s165_s25 = sshll.u32 %s3630_s1, 4  ;;  %s3242_s27 = smov [#allocation5]   ;;  %s166_s25 = int_to_ptr.hbm [resolvable:$true] %s165_s25 }
   0xa   : > { %p3317_p3 = pnand %p2888_p0, %p154_p2  ;;  %s167_s28 = sshll.u32 %s3242_s27, 4  ;;  %s168_s28 = int_to_ptr.vmem [resolvable:$true] %s167_s28 }
   0xb   : > { %s179_s6 = sshll.u32 %s3631_s2, 4  ;;  %s3243_s7 = smov 512   ;;  %s180_s6 = int_to_ptr.hbm [resolvable:$true] %s179_s6 }
   0xc   : > { %p2926_p4 = pneg %p3317_p3  ;;  %s3244_s8 = smov 32  }
   0xd   : > { %s3245_s9 = smov [#allocation7]   ;;  %s3246_s11 = smov 128  }
   0xe   : > { %p3325_p5 = pnand %p2926_p4, %p3309_p1  ;;  %s181_s10 = sshll.u32 %s3245_s9, 4  ;;  %s182_s10 = int_to_ptr.vmem [resolvable:$true] %s181_s10 }
   0xf   : > { %s3247_s12 = smov 8   ;;  %s194_s23 = sshll.u32 %s3632_s3, 4  ;;  %s195_s23 = int_to_ptr.hbm [resolvable:$true] %s194_s23 }
  0x10   : > { %2929 = dma.hbm_to_vmem [thread:$0]  (!%p3325_p5), %s166_s25, 131072, %s168_s28, [#allocation6], %s3243_s7, %s3243_s7, %s3244_s8  }
  0x11   : > { %2932 = dma.hbm_to_vmem [thread:$0]  (!%p3325_p5), %s180_s6, 32768, %s182_s10, [#allocation6], %s3246_s11, %s3246_s11, %s3247_s12  }
  0x12   : > { %s3248_s24 = smov [#allocation8]   ;;  %s29_s27 = sadd.s32 1, %s3236_s19 }
  0x13   : > { %s196_s25 = sshll.u32 %s3248_s24, 4  ;;  %p30_p6 = scmp.ge.s32.totalorder %s29_s27, 4  ;;  %s197_s25 = int_to_ptr.vmem [resolvable:$true] %s196_s25 }
  0x14   : > { %2935 = dma.hbm_to_vmem [thread:$0]  (!%p3325_p5), %s195_s23, 16, %s197_s25, [#allocation9]  }
  0x15   : > { %p48_p7 = scmp.ne.s32.totalorder %s3228_s17, %s3224_s16  ;;  %p49_p8 = scmp.eq.s32.totalorder %s3240_s20, 0 }
  0x16   : > { %s3645_s27 = smov (%p30_p6, %s29_s27), 0  ;;  %s41_s28 = sadd.s32 1, %s3228_s17 }
  0x17   : > { %p54_p9 = scmp.ne.s32.totalorder %s3224_s16, %s3220_s15  ;;  %s37_s30 = ssub.s32 %s3236_s19, %s3645_s27 }
  0x18   : > { %p3352_p10 = por %p49_p8, %p48_p7  ;;  %p39_p11 = scmp.eq.s32.totalorder %s37_s30, 0 }
  0x19   : > { %p3358_p12 = por %p3309_p1, %p54_p9  ;;  %s207_s6 = sand.u32 1, %s3228_s17  }
  0x1a   : > { %s2907_s7 = sshll.u32 %s3236_s19, 5  ;;  %p2943_p13 = scmp.lt.s32.totalorder %s3240_s20, 4 }
  0x1b   : > { %s3365_s8 = scalar_select %p39_p11, %s3228_s17, %s41_s28  }
  0x1c   : > { %s2893_s9 = sshll.u32 %s207_s6, 5  ;;  %s218_s11 = scalar_lea.hbm %s3629_s0, %s2907_s7 }
  0x1d   : > { %s220_s12 = sshll.u32 %s218_s11, 4  ;;  %s211_s13 = scalar_lea.vmem [#allocation2], %s2893_s9  ;;  %s221_s12 = int_to_ptr.hbm [resolvable:$true] %s220_s12 }
  0x1e   : > { %s222_s14 = sshll.u32 %s211_s13, 4  ;;  %p2937_p0 = pnand %p2943_p13, %p3352_p10  ;;  %s223_s14 = int_to_ptr.vmem [resolvable:$true] %s222_s14 }
  0x1f   : > { %s208_s23 = scalar_lea.sflag [#allocation3], %s207_s6  ;;  %231 = sbr.rel (%p3317_p3) target bundleno = 1204 (0x4b4), region = 36 }
  0x20   : > { %2939 = dma.hbm_to_vmem [thread:$0]  (!%p2937_p0), %s221_s12, 512, %s223_s14, %s208_s23  }
  0x21   : > { %s233_s24 = sand.u32 (!%p3317_p3), 1, %s3224_s16  }
  0x22   : > { %s2897_s25 = sshll.u32 (!%p3317_p3), %s233_s24, 5  ;;  %s234_s28 = scalar_lea.sflag (!%p3317_p3), [#allocation3], %s233_s24 }
  0x23   : > { %s3376_s30 = scalar_lea.vmem (!%p3317_p3), [#allocation2], %s2897_s25 }
  0x24   : > { %3203 = dma.done.wait (%p3358_p12), %s234_s28, 512  }
  0x25   : > { %3205 = vsyncadd (%p3358_p12), %s234_s28, 4294966784 }
  0x26   : > { %3207 = dma.done.wait (%p3309_p1), [#allocation6], 163840  }
  0x27   : > { %3209 = vsyncadd (%p3309_p1), [#allocation6], 4294803456 }
  0x28   : > { %3211 = dma.done.wait (%p3309_p1), [#allocation9], 16  }
  0x29   : > { %3213 = vsyncadd (%p3309_p1), [#allocation9], 4294967280  ;;  %p2901_p2 = scmp.ne.s32.totalorder %s3232_s18, 0 }
  0x2b   : > { %277 = sbr.rel (%p2901_p2) target bundleno = 50 (0x32), region = 56 }
  0x30   : > { %v3005_v0 = vld [vmem:[#allocation8] ss:$0 sm:$0xff] }
  0x31   : > { %282 = vst [vmem:[#allocation10] sm:$0x3] %v3005_v0 }
  0x32 PF: > { %v347_v1 = vld [vmem:[#allocation5 + $0x1e0] sm:$0xff]  ;;  %s2902_s22 = sshll.u32 %s3232_s18, 9  ;;  %s3249_s26 = smov [#allocation10]  }
  0x33   : > { %v411_v2 = vld [vmem:[#allocation5 + $0x3e0] sm:$0xff]  ;;  %1352 = vmatpush.msra.mxu0 %v347_v1  ;;  %s3518_s18 = scalar_lea.vmem [#allocation7], %s2902_s22  ;;  %s2789_s5 = sshll.u32 %s3249_s26, 4  ;;  %s2790_s5 = int_to_ptr.vmem [resolvable:$true] %s2789_s5 }
  0x34   : > { %v475_v3 = vld [vmem:[#allocation5 + $0x5e0] sm:$0xff]  ;;  %1372 = vmatpush.msra.mxu1 %v411_v2  ;;  %s2791_s7 = sshll.u32 %s3633_s4, 4  ;;  %p2947_p1 = scmp.eq.s32.totalorder %s2887_s21, 3  ;;  %s2792_s7 = int_to_ptr.hbm [resolvable:$true] %s2791_s7 }
  0x35   : > { %v343_v4 = vld [vmem:[#allocation5 + $0x1c0] sm:$0xff]  ;;  %1392 = vmatpush.msra.mxu2 %v475_v3 }
  0x36   : > { %v407_v5 = vld [vmem:[#allocation5 + $0x3c0] sm:$0xff]  ;;  %1353 = vmatpush.msra.mxu0 %v343_v4 }
  0x37   : > { %v471_v6 = vld [vmem:[#allocation5 + $0x5c0] sm:$0xff]  ;;  %1373 = vmatpush.msra.mxu1 %v407_v5 }
  0x38   : > { %v539_v7 = vld [vmem:[#allocation5 + $0x7e0] sm:$0xff]  ;;  %1393 = vmatpush.msra.mxu2 %v471_v6 }
  0x39   : > { %v339_v8 = vld [vmem:[#allocation5 + $0x1a0] sm:$0xff]  ;;  %1412 = vmatpush.msra.mxu3 %v539_v7 }
  0x3a   : > { %v403_v9 = vld [vmem:[#allocation5 + $0x3a0] sm:$0xff]  ;;  %1354 = vmatpush.msra.mxu0 %v339_v8 }
  0x3b   : > { %v467_v10 = vld [vmem:[#allocation5 + $0x5a0] sm:$0xff]  ;;  %1374 = vmatpush.msra.mxu1 %v403_v9 }
  0x3c   : > { %v535_v11 = vld [vmem:[#allocation5 + $0x7c0] sm:$0xff]  ;;  %1394 = vmatpush.msra.mxu2 %v467_v10 }
  0x3d   : > { %v335_v12 = vld [vmem:[#allocation5 + $0x180] sm:$0xff]  ;;  %1413 = vmatpush.msra.mxu3 %v535_v11 }
  0x3e   : > { %v399_v13 = vld [vmem:[#allocation5 + $0x380] sm:$0xff]  ;;  %1355 = vmatpush.msra.mxu0 %v335_v12 }
  0x3f   : > { %v463_v14 = vld [vmem:[#allocation5 + $0x580] sm:$0xff]  ;;  %1375 = vmatpush.msra.mxu1 %v399_v13 }
  0x40   : > { %v531_v15 = vld [vmem:[#allocation5 + $0x7a0] sm:$0xff]  ;;  %1395 = vmatpush.msra.mxu2 %v463_v14 }
  0x41   : > { %v331_v16 = vld [vmem:[#allocation5 + $0x160] sm:$0xff]  ;;  %1414 = vmatpush.msra.mxu3 %v531_v15 }
  0x42   : > { %v395_v17 = vld [vmem:[#allocation5 + $0x360] sm:$0xff]  ;;  %1356 = vmatpush.msra.mxu0 %v331_v16 }
  0x43   : > { %v459_v18 = vld [vmem:[#allocation5 + $0x560] sm:$0xff]  ;;  %1376 = vmatpush.msra.mxu1 %v395_v17 }
  0x44   : > { %v527_v19 = vld [vmem:[#allocation5 + $0x780] sm:$0xff]  ;;  %1396 = vmatpush.msra.mxu2 %v459_v18 }
  0x45   : > { %v327_v20 = vld [vmem:[#allocation5 + $0x140] sm:$0xff]  ;;  %1415 = vmatpush.msra.mxu3 %v527_v19 }
  0x46   : > { %v391_v21 = vld [vmem:[#allocation5 + $0x340] sm:$0xff]  ;;  %1357 = vmatpush.msra.mxu0 %v327_v20 }
  0x47   : > { %v455_v22 = vld [vmem:[#allocation5 + $0x540] sm:$0xff]  ;;  %1377 = vmatpush.msra.mxu1 %v391_v21 }
  0x48   : > { %v523_v23 = vld [vmem:[#allocation5 + $0x760] sm:$0xff]  ;;  %1397 = vmatpush.msra.mxu2 %v455_v22 }
  0x49   : > { %v323_v24 = vld [vmem:[#allocation5 + $0x120] sm:$0xff]  ;;  %1416 = vmatpush.msra.mxu3 %v523_v23 }
  0x4a   : > { %v387_v25 = vld [vmem:[#allocation5 + $0x320] sm:$0xff]  ;;  %1358 = vmatpush.msra.mxu0 %v323_v24 }
  0x4b   : > { %v451_v26 = vld [vmem:[#allocation5 + $0x520] sm:$0xff]  ;;  %1378 = vmatpush.msra.mxu1 %v387_v25 }
  0x4c   : > { %v519_v27 = vld [vmem:[#allocation5 + $0x740] sm:$0xff]  ;;  %1398 = vmatpush.msra.mxu2 %v451_v26 }
  0x4d   : > { %v319_v28 = vld [vmem:[#allocation5 + $0x100] sm:$0xff]  ;;  %1417 = vmatpush.msra.mxu3 %v519_v27 }
  0x4e   : > { %v383_v29 = vld [vmem:[#allocation5 + $0x300] sm:$0xff]  ;;  %1359 = vmatpush.msra.mxu0 %v319_v28 }
  0x4f   : > { %v447_v30 = vld [vmem:[#allocation5 + $0x500] sm:$0xff]  ;;  %1379 = vmatpush.msra.mxu1 %v383_v29 }
  0x50   : > { %v515_v31 = vld [vmem:[#allocation5 + $0x720] sm:$0xff]  ;;  %1399 = vmatpush.msra.mxu2 %v447_v30 }
  0x51   : > { %v315_v32 = vld [vmem:[#allocation5 + $0xe0] sm:$0xff]  ;;  %1418 = vmatpush.msra.mxu3 %v515_v31 }
  0x52   : > { %v379_v33 = vld [vmem:[#allocation5 + $0x2e0] sm:$0xff]  ;;  %1360 = vmatpush.msra.mxu0 %v315_v32 }
  0x53   : > { %v443_v34 = vld [vmem:[#allocation5 + $0x4e0] sm:$0xff]  ;;  %1380 = vmatpush.msra.mxu1 %v379_v33 }
  0x54   : > { %v511_v35 = vld [vmem:[#allocation5 + $0x700] sm:$0xff]  ;;  %1400 = vmatpush.msra.mxu2 %v443_v34 }
  0x55   : > { %v311_v36 = vld [vmem:[#allocation5 + $0xc0] sm:$0xff]  ;;  %1419 = vmatpush.msra.mxu3 %v511_v35 }
  0x56   : > { %v375_v37 = vld [vmem:[#allocation5 + $0x2c0] sm:$0xff]  ;;  %1361 = vmatpush.msra.mxu0 %v311_v36 }
  0x57   : > { %v439_v38 = vld [vmem:[#allocation5 + $0x4c0] sm:$0xff]  ;;  %1381 = vmatpush.msra.mxu1 %v375_v37 }
  0x58   : > { %v507_v39 = vld [vmem:[#allocation5 + $0x6e0] sm:$0xff]  ;;  %1401 = vmatpush.msra.mxu2 %v439_v38 }
  0x59   : > { %v307_v40 = vld [vmem:[#allocation5 + $0xa0] sm:$0xff]  ;;  %1420 = vmatpush.msra.mxu3 %v507_v39 }
  0x5a   : > { %v371_v41 = vld [vmem:[#allocation5 + $0x2a0] sm:$0xff]  ;;  %1362 = vmatpush.msra.mxu0 %v307_v40 }
  0x5b   : > { %v435_v42 = vld [vmem:[#allocation5 + $0x4a0] sm:$0xff]  ;;  %1382 = vmatpush.msra.mxu1 %v371_v41  ;;  %v284_v41 = vld [vmem:[%s3376_s30 + $0x8] sm:$0xff] }
  0x5c   : > { %v503_v43 = vld [vmem:[#allocation5 + $0x6c0] sm:$0xff]  ;;  %1402 = vmatpush.msra.mxu2 %v435_v42  ;;  %1317 = vst [vmem:[#allocation1 + $0x20] ss:$4 sm:$0xff] %v284_v41 }
  0x5d   : > { %v303_v44 = vld [vmem:[#allocation5 + $0x80] sm:$0xff]  ;;  %1421 = vmatpush.msra.mxu3 %v503_v43 }
  0x5e   : > { %v367_v45 = vld [vmem:[#allocation5 + $0x280] sm:$0xff]  ;;  %1363 = vmatpush.msra.mxu0 %v303_v44  ;;  %v285_v44 = vld [vmem:[%s3376_s30 + $0x10] sm:$0xff] }
  0x5f   : > { %v431_v46 = vld [vmem:[#allocation5 + $0x480] sm:$0xff]  ;;  %1383 = vmatpush.msra.mxu1 %v367_v45 }
  0x60   : > { %v499_v47 = vld [vmem:[#allocation5 + $0x6a0] sm:$0xff]  ;;  %1403 = vmatpush.msra.mxu2 %v431_v46 }
  0x61   : > { %v299_v48 = vld [vmem:[#allocation5 + $0x60] sm:$0xff]  ;;  %1422 = vmatpush.msra.mxu3 %v499_v47 }
  0x62   : > { %v363_v49 = vld [vmem:[#allocation5 + $0x260] sm:$0xff]  ;;  %1364 = vmatpush.msra.mxu0 %v299_v48 }
  0x63   : > { %v427_v50 = vld [vmem:[#allocation5 + $0x460] sm:$0xff]  ;;  %1384 = vmatpush.msra.mxu1 %v363_v49 }
  0x64   : > { %v495_v51 = vld [vmem:[#allocation5 + $0x680] sm:$0xff]  ;;  %1404 = vmatpush.msra.mxu2 %v427_v50 }
  0x65   : > { %v295_v52 = vld [vmem:[#allocation5 + $0x40] sm:$0xff]  ;;  %1423 = vmatpush.msra.mxu3 %v495_v51 }
  0x66   : > { %v359_v53 = vld [vmem:[#allocation5 + $0x240] sm:$0xff]  ;;  %1365 = vmatpush.msra.mxu0 %v295_v52 }
  0x67   : > { %v423_v54 = vld [vmem:[#allocation5 + $0x440] sm:$0xff]  ;;  %1385 = vmatpush.msra.mxu1 %v359_v53 }
  0x68   : > { %v491_v55 = vld [vmem:[#allocation5 + $0x660] sm:$0xff]  ;;  %1405 = vmatpush.msra.mxu2 %v423_v54 }
  0x69   : > { %v291_v56 = vld [vmem:[#allocation5 + $0x20] sm:$0xff]  ;;  %1424 = vmatpush.msra.mxu3 %v491_v55 }
  0x6a   : > { %v355_v57 = vld [vmem:[#allocation5 + $0x220] sm:$0xff]  ;;  %1366 = vmatpush.msra.mxu0 %v291_v56 }
  0x6b   : > { %v419_v58 = vld [vmem:[#allocation5 + $0x420] sm:$0xff]  ;;  %1386 = vmatpush.msra.mxu1 %v355_v57 }
  0x6c   : > { %v487_v59 = vld [vmem:[#allocation5 + $0x640] sm:$0xff]  ;;  %1406 = vmatpush.msra.mxu2 %v419_v58 }
  0x6d   : > { %v287_v60 = vld [vmem:[#allocation5] sm:$0xff]  ;;  %1425 = vmatpush.msra.mxu3 %v487_v59 }
  0x6e   : > { %v351_v61 = vld [vmem:[#allocation5 + $0x200] sm:$0xff]  ;;  %1367 = vmatpush.msra.mxu0 %v287_v60 }
  0x6f   : > { %v415_v62 = vld [vmem:[#allocation5 + $0x400] sm:$0xff]  ;;  %1387 = vmatpush.msra.mxu1 %v351_v61  ;;  %v286_v61 = vld [vmem:[%s3376_s30 + $0x18] sm:$0xff] }
  0x70   : > { %v483_v63 = vld [vmem:[#allocation5 + $0x620] sm:$0xff]  ;;  %1407 = vmatpush.msra.mxu2 %v415_v62  ;;  %v3403_v62 = vld.sshfl [vmem:[#allocation1 + $0x30] sm:$0xff pattern:$0x73625140] }
  0x71   : > { %v603_v0 = vld [vmem:[#allocation5 + $0x9e0] sm:$0xff]  ;;  %1426 = vmatpush.msra.mxu3 %v483_v63  ;;  %v3405_v63 = vld.sshfl [vmem:[#allocation1 + $0x20] sm:$0xff pattern:$0x73625140] }
  0x72   : > { %v667_v1 = vld [vmem:[#allocation5 + $0xbe0] sm:$0xff]  ;;  %1432 = vmatpush.msrb.mxu0 %v603_v0  ;;  %v3407_v0 = vld.sshfl [vmem:[#allocation1 + $0x38] sm:$0xff pattern:$0x73625140] }
  0x73   : > { %v731_v2 = vld [vmem:[#allocation5 + $0xde0] sm:$0xff]  ;;  %1452 = vmatpush.msrb.mxu1 %v667_v1 }
  0x74   : > { %v479_v3 = vld [vmem:[#allocation5 + $0x600] sm:$0xff]  ;;  %1472 = vmatpush.msrb.mxu2 %v731_v2 }
  0x75   : > { %v599_v4 = vld [vmem:[#allocation5 + $0x9c0] sm:$0xff]  ;;  %1427 = vmatpush.msra.mxu3 %v479_v3 }
  0x76   : > { %v663_v5 = vld [vmem:[#allocation5 + $0xbc0] sm:$0xff]  ;;  %1433 = vmatpush.msrb.mxu0 %v599_v4 }
  0x77   : > { %v727_v6 = vld [vmem:[#allocation5 + $0xdc0] sm:$0xff]  ;;  %1453 = vmatpush.msrb.mxu1 %v663_v5 }
  0x78   : > { %v795_v7 = vld [vmem:[#allocation5 + $0xfe0] sm:$0xff]  ;;  %1473 = vmatpush.msrb.mxu2 %v727_v6 }
  0x79   : > { %v595_v8 = vld [vmem:[#allocation5 + $0x9a0] sm:$0xff]  ;;  %1492 = vmatpush.msrb.mxu3 %v795_v7 }
  0x7a   : > { %v659_v9 = vld [vmem:[#allocation5 + $0xba0] sm:$0xff]  ;;  %1434 = vmatpush.msrb.mxu0 %v595_v8 }
  0x7b   : > { %v723_v10 = vld [vmem:[#allocation5 + $0xda0] sm:$0xff]  ;;  %1454 = vmatpush.msrb.mxu1 %v659_v9 }
  0x7c   : > { %v791_v11 = vld [vmem:[#allocation5 + $0xfc0] sm:$0xff]  ;;  %1474 = vmatpush.msrb.mxu2 %v723_v10 }
  0x7d   : > { %v591_v12 = vld [vmem:[#allocation5 + $0x980] sm:$0xff]  ;;  %1493 = vmatpush.msrb.mxu3 %v791_v11 }
  0x7e   : > { %v655_v13 = vld [vmem:[#allocation5 + $0xb80] sm:$0xff]  ;;  %1435 = vmatpush.msrb.mxu0 %v591_v12 }
  0x7f   : > { %v719_v14 = vld [vmem:[#allocation5 + $0xd80] sm:$0xff]  ;;  %1455 = vmatpush.msrb.mxu1 %v655_v13 }
  0x80   : > { %v787_v15 = vld [vmem:[#allocation5 + $0xfa0] sm:$0xff]  ;;  %1475 = vmatpush.msrb.mxu2 %v719_v14 }
  0x81   : > { %v587_v16 = vld [vmem:[#allocation5 + $0x960] sm:$0xff]  ;;  %1494 = vmatpush.msrb.mxu3 %v787_v15 }
  0x82   : > { %v651_v17 = vld [vmem:[#allocation5 + $0xb60] sm:$0xff]  ;;  %1436 = vmatpush.msrb.mxu0 %v587_v16 }
  0x83   : > { %v715_v18 = vld [vmem:[#allocation5 + $0xd60] sm:$0xff]  ;;  %1456 = vmatpush.msrb.mxu1 %v651_v17 }
  0x84   : > { %v783_v19 = vld [vmem:[#allocation5 + $0xf80] sm:$0xff]  ;;  %1476 = vmatpush.msrb.mxu2 %v715_v18 }
  0x85   : > { %v583_v20 = vld [vmem:[#allocation5 + $0x940] sm:$0xff]  ;;  %1495 = vmatpush.msrb.mxu3 %v783_v19 }
  0x86   : > { %v647_v21 = vld [vmem:[#allocation5 + $0xb40] sm:$0xff]  ;;  %1437 = vmatpush.msrb.mxu0 %v583_v20 }
  0x87   : > { %v711_v22 = vld [vmem:[#allocation5 + $0xd40] sm:$0xff]  ;;  %1457 = vmatpush.msrb.mxu1 %v647_v21 }
  0x88   : > { %v779_v23 = vld [vmem:[#allocation5 + $0xf60] sm:$0xff]  ;;  %1477 = vmatpush.msrb.mxu2 %v711_v22 }
  0x89   : > { %v283_v24 = vld [vmem:[%s3376_s30] sm:$0xff]  ;;  %1496 = vmatpush.msrb.mxu3 %v779_v23 }
  0x8a   : > { %v579_v25 = vld [vmem:[#allocation5 + $0x920] sm:$0xff]  ;;  %1315 = vst [vmem:[#allocation1] ss:$4 sm:$0xff] %v283_v24 }
  0x8b   : > { %v643_v26 = vld [vmem:[#allocation5 + $0xb20] sm:$0xff]  ;;  %1438 = vmatpush.msrb.mxu0 %v579_v25 }
  0x8c   : > { %v707_v27 = vld [vmem:[#allocation5 + $0xd20] sm:$0xff]  ;;  %1458 = vmatpush.msrb.mxu1 %v643_v26 }
  0x8d   : > { %v775_v28 = vld [vmem:[#allocation5 + $0xf40] sm:$0xff]  ;;  %1478 = vmatpush.msrb.mxu2 %v707_v27 }
  0x8e   : > { %v575_v29 = vld [vmem:[#allocation5 + $0x900] sm:$0xff]  ;;  %1497 = vmatpush.msrb.mxu3 %v775_v28 }
  0x8f   : > { %v639_v30 = vld [vmem:[#allocation5 + $0xb00] sm:$0xff]  ;;  %1439 = vmatpush.msrb.mxu0 %v575_v29 }
  0x90   : > { %v703_v31 = vld [vmem:[#allocation5 + $0xd00] sm:$0xff]  ;;  %1459 = vmatpush.msrb.mxu1 %v639_v30 }
  0x91   : > { %v771_v32 = vld [vmem:[#allocation5 + $0xf20] sm:$0xff]  ;;  %1479 = vmatpush.msrb.mxu2 %v703_v31  ;;  %v3394_v46 = vld.sshfl [vmem:[#allocation1 + $0x10] sm:$0xff pattern:$0x73625140] }
  0x92   : > { %v571_v33 = vld [vmem:[#allocation5 + $0x8e0] sm:$0xff]  ;;  %1498 = vmatpush.msrb.mxu3 %v771_v32  ;;  %v3396_v47 = vld.sshfl [vmem:[#allocation1] sm:$0xff pattern:$0x73625140]  ;;  %1408 = vmatmul.f32.vlgmr.msra.gmra.mxu2 %v3394_v46 }
  0x93   : > { %v635_v34 = vld [vmem:[#allocation5 + $0xae0] sm:$0xff]  ;;  %1440 = vmatpush.msrb.mxu0 %v571_v33  ;;  %v3400_v49 = vld.sshfl [vmem:[#allocation1 + $0x18] sm:$0xff pattern:$0x73625140] }
  0x94   : > { %v699_v35 = vld [vmem:[#allocation5 + $0xce0] sm:$0xff]  ;;  %1460 = vmatpush.msrb.mxu1 %v635_v34  ;;  %1368 = vmatmul.f32.vlgmr.msra.gmra.mxu0 %v3396_v47 }
  0x95   : > { %v767_v36 = vld [vmem:[#allocation5 + $0xf00] sm:$0xff]  ;;  %1480 = vmatpush.msrb.mxu2 %v699_v35  ;;  %1428 = vmatmul.f32.vlgmr.msra.gmra.mxu3 %v3400_v49 }
  0x96   : > { %v567_v37 = vld [vmem:[#allocation5 + $0x8c0] sm:$0xff]  ;;  %1499 = vmatpush.msrb.mxu3 %v767_v36 }
  0x97   : > { %v631_v38 = vld [vmem:[#allocation5 + $0xac0] sm:$0xff]  ;;  %1441 = vmatpush.msrb.mxu0 %v567_v37 }
  0x98   : > { %v695_v39 = vld [vmem:[#allocation5 + $0xcc0] sm:$0xff]  ;;  %1461 = vmatpush.msrb.mxu1 %v631_v38 }
  0x99   : > { %v763_v40 = vld [vmem:[#allocation5 + $0xee0] sm:$0xff]  ;;  %1481 = vmatpush.msrb.mxu2 %v695_v39 }
  0x9a   : > { %v563_v42 = vld [vmem:[#allocation5 + $0x8a0] sm:$0xff]  ;;  %1500 = vmatpush.msrb.mxu3 %v763_v40 }
  0x9b   : > { %v627_v43 = vld [vmem:[#allocation5 + $0xaa0] sm:$0xff]  ;;  %1442 = vmatpush.msrb.mxu0 %v563_v42 }
  0x9c   : > { %v691_v45 = vld [vmem:[#allocation5 + $0xca0] sm:$0xff]  ;;  %1462 = vmatpush.msrb.mxu1 %v627_v43 }
  0x9d   : > { %v3398_v48 = vld.sshfl [vmem:[#allocation1 + $0x8] sm:$0xff pattern:$0x73625140]  ;;  %1482 = vmatpush.msrb.mxu2 %v691_v45 }
  0x9e   : > { %v759_v50 = vld [vmem:[#allocation5 + $0xec0] sm:$0xff]  ;;  %1326 = vst [vmem:[#allocation1] ss:$4 sm:$0xff] %v285_v44  ;;  %1388 = vmatmul.f32.vlgmr.msra.gmra.mxu1 %v3398_v48 }
  0x9f   : > { %v559_v51 = vld [vmem:[#allocation5 + $0x880] sm:$0xff]  ;;  %1501 = vmatpush.msrb.mxu3 %v759_v50 }
  0xa0   : > { %v623_v52 = vld [vmem:[#allocation5 + $0xa80] sm:$0xff]  ;;  %1443 = vmatpush.msrb.mxu0 %v559_v51 }
  0xa1   : > { %v687_v53 = vld [vmem:[#allocation5 + $0xc80] sm:$0xff]  ;;  %1463 = vmatpush.msrb.mxu1 %v623_v52 }
  0xa2   : > { %v755_v54 = vld [vmem:[#allocation5 + $0xea0] sm:$0xff]  ;;  %1483 = vmatpush.msrb.mxu2 %v687_v53 }
  0xa3   : > { %v555_v55 = vld [vmem:[#allocation5 + $0x860] sm:$0xff]  ;;  %1502 = vmatpush.msrb.mxu3 %v755_v54 }
  0xa4   : > { %v619_v56 = vld [vmem:[#allocation5 + $0xa60] sm:$0xff]  ;;  %1444 = vmatpush.msrb.mxu0 %v555_v55 }
  0xa5   : > { %v683_v57 = vld [vmem:[#allocation5 + $0xc60] sm:$0xff]  ;;  %1464 = vmatpush.msrb.mxu1 %v619_v56 }
  0xa6   : > { %v751_v58 = vld [vmem:[#allocation5 + $0xe80] sm:$0xff]  ;;  %1484 = vmatpush.msrb.mxu2 %v683_v57 }
  0xa7   : > { %v551_v59 = vld [vmem:[#allocation5 + $0x840] sm:$0xff]  ;;  %1503 = vmatpush.msrb.mxu3 %v751_v58 }
  0xa8   : > { %v615_v60 = vld [vmem:[#allocation5 + $0xa40] sm:$0xff]  ;;  %1445 = vmatpush.msrb.mxu0 %v551_v59 }
  0xa9   : > { %v3409_v1 = vld.sshfl [vmem:[#allocation1 + $0x28] sm:$0xff pattern:$0x73625140]  ;;  %1465 = vmatpush.msrb.mxu1 %v615_v60 }
  0xaa   : > { %v679_v2 = vld [vmem:[#allocation5 + $0xc40] sm:$0xff]  ;;  %1327 = vst [vmem:[#allocation1 + $0x20] ss:$4 sm:$0xff] %v286_v61 }
  0xab   : > { %v747_v3 = vld [vmem:[#allocation5 + $0xe60] sm:$0xff]  ;;  %1485 = vmatpush.msrb.mxu2 %v679_v2 }
  0xac   : > { %v547_v4 = vld [vmem:[#allocation5 + $0x820] sm:$0xff]  ;;  %1504 = vmatpush.msrb.mxu3 %v747_v3 }
  0xad   : > { %v611_v5 = vld [vmem:[#allocation5 + $0xa20] sm:$0xff]  ;;  %1446 = vmatpush.msrb.mxu0 %v547_v4 }
  0xae   : > { %v675_v6 = vld [vmem:[#allocation5 + $0xc20] sm:$0xff]  ;;  %1466 = vmatpush.msrb.mxu1 %v611_v5 }
  0xaf   : > { %v743_v7 = vld [vmem:[#allocation5 + $0xe40] sm:$0xff]  ;;  %1486 = vmatpush.msrb.mxu2 %v675_v6 }
  0xb0   : > { %v543_v8 = vld [vmem:[#allocation5 + $0x800] sm:$0xff]  ;;  %1505 = vmatpush.msrb.mxu3 %v743_v7 }
  0xb1   : > { %v607_v9 = vld [vmem:[#allocation5 + $0xa00] sm:$0xff]  ;;  %1447 = vmatpush.msrb.mxu0 %v543_v8 }
  0xb2   : > { %v671_v10 = vld [vmem:[#allocation5 + $0xc00] sm:$0xff]  ;;  %1467 = vmatpush.msrb.mxu1 %v607_v9  ;;  %1448 = vmatmul.f32.vlgmr.msrb.gmra.mxu0 %v3405_v63 }
  0xb3   : > { %v739_v11 = vld [vmem:[#allocation5 + $0xe20] sm:$0xff]  ;;  %1487 = vmatpush.msrb.mxu2 %v671_v10  ;;  %1468 = vmatmul.f32.vlgmr.msrb.gmra.mxu1 %v3409_v1 }
  0xb4   : > { %v859_v12 = vld [vmem:[#allocation5 + $0x11e0] sm:$0xff]  ;;  %1506 = vmatpush.msrb.mxu3 %v739_v11  ;;  %1488 = vmatmul.f32.vlgmr.msrb.gmra.mxu2 %v3403_v62 }
  0xb5   : > { %v923_v13 = vld [vmem:[#allocation5 + $0x13e0] sm:$0xff]  ;;  %1512 = vmatpush.msra.mxu0 %v859_v12 }
  0xb6   : > { %v987_v14 = vld [vmem:[#allocation5 + $0x15e0] sm:$0xff]  ;;  %1532 = vmatpush.msra.mxu1 %v923_v13 }
  0xb7   : > { %v735_v15 = vld [vmem:[#allocation5 + $0xe00] sm:$0xff]  ;;  %1552 = vmatpush.msra.mxu2 %v987_v14 }
  0xb8   : > { %v855_v16 = vld [vmem:[#allocation5 + $0x11c0] sm:$0xff]  ;;  %1507 = vmatpush.msrb.mxu3 %v735_v15 }
  0xb9   : > { %v919_v17 = vld [vmem:[#allocation5 + $0x13c0] sm:$0xff]  ;;  %1513 = vmatpush.msra.mxu0 %v855_v16  ;;  %1508 = vmatmul.f32.vlgmr.msrb.gmra.mxu3 %v3407_v0 }
  0xba   : > { %v983_v18 = vld [vmem:[#allocation5 + $0x15c0] sm:$0xff]  ;;  %1533 = vmatpush.msra.mxu1 %v919_v17 }
  0xbb   : > { %v1051_v19 = vld [vmem:[#allocation5 + $0x17e0] sm:$0xff]  ;;  %1553 = vmatpush.msra.mxu2 %v983_v18 }
  0xbc   : > { %v851_v20 = vld [vmem:[#allocation5 + $0x11a0] sm:$0xff]  ;;  %1572 = vmatpush.msra.mxu3 %v1051_v19 }
  0xbd   : > { %v915_v21 = vld [vmem:[#allocation5 + $0x13a0] sm:$0xff]  ;;  %1514 = vmatpush.msra.mxu0 %v851_v20  ;;  %v1328_v20 = vld.sshfl [vmem:[#allocation1] sm:$0xff pattern:$0x73625140] }
  0xbe   : > { %v979_v22 = vld [vmem:[#allocation5 + $0x15a0] sm:$0xff]  ;;  %1534 = vmatpush.msra.mxu1 %v915_v21  ;;  %v1330_v21 = vld.sshfl [vmem:[#allocation1 + $0x10] sm:$0xff pattern:$0x73625140] }
  0xbf   : > { %v1047_v23 = vld [vmem:[#allocation5 + $0x17c0] sm:$0xff]  ;;  %1554 = vmatpush.msra.mxu2 %v979_v22 }
  0xc0   : > { %v847_v24 = vld [vmem:[#allocation5 + $0x1180] sm:$0xff]  ;;  %1573 = vmatpush.msra.mxu3 %v1047_v23 }
  0xc1   : > { %v911_v25 = vld [vmem:[#allocation5 + $0x1380] sm:$0xff]  ;;  %1515 = vmatpush.msra.mxu0 %v847_v24 }
  0xc2   : > { %v975_v26 = vld [vmem:[#allocation5 + $0x1580] sm:$0xff]  ;;  %1535 = vmatpush.msra.mxu1 %v911_v25 }
  0xc3   : > { %v1043_v27 = vld [vmem:[#allocation5 + $0x17a0] sm:$0xff]  ;;  %1555 = vmatpush.msra.mxu2 %v975_v26 }
  0xc4   : > { %v843_v28 = vld [vmem:[#allocation5 + $0x1160] sm:$0xff]  ;;  %1574 = vmatpush.msra.mxu3 %v1043_v27  ;;  %v1331_v27 = vld.sshfl [vmem:[#allocation1 + $0x18] sm:$0xff pattern:$0x73625140] }
  0xc5   : > { %v907_v29 = vld [vmem:[#allocation5 + $0x1360] sm:$0xff]  ;;  %1516 = vmatpush.msra.mxu0 %v843_v28 }
  0xc6   : > { %v971_v30 = vld [vmem:[#allocation5 + $0x1560] sm:$0xff]  ;;  %1536 = vmatpush.msra.mxu1 %v907_v29 }
  0xc7   : > { %v1039_v31 = vld [vmem:[#allocation5 + $0x1780] sm:$0xff]  ;;  %1556 = vmatpush.msra.mxu2 %v971_v30 }
  0xc8   : > { %v839_v32 = vld [vmem:[#allocation5 + $0x1140] sm:$0xff]  ;;  %1575 = vmatpush.msra.mxu3 %v1039_v31 }
  0xc9   : > { %v903_v33 = vld [vmem:[#allocation5 + $0x1340] sm:$0xff]  ;;  %1517 = vmatpush.msra.mxu0 %v839_v32 }
  0xca   : > { %v967_v34 = vld [vmem:[#allocation5 + $0x1540] sm:$0xff]  ;;  %1537 = vmatpush.msra.mxu1 %v903_v33 }
  0xcb   : > { %v1035_v35 = vld [vmem:[#allocation5 + $0x1760] sm:$0xff]  ;;  %1557 = vmatpush.msra.mxu2 %v967_v34 }
  0xcc   : > { %v835_v36 = vld [vmem:[#allocation5 + $0x1120] sm:$0xff]  ;;  %1576 = vmatpush.msra.mxu3 %v1035_v35 }
  0xcd   : > { %v899_v37 = vld [vmem:[#allocation5 + $0x1320] sm:$0xff]  ;;  %1518 = vmatpush.msra.mxu0 %v835_v36 }
  0xce   : > { %v963_v38 = vld [vmem:[#allocation5 + $0x1520] sm:$0xff]  ;;  %1538 = vmatpush.msra.mxu1 %v899_v37 }
  0xcf   : > { %v1031_v39 = vld [vmem:[#allocation5 + $0x1740] sm:$0xff]  ;;  %1558 = vmatpush.msra.mxu2 %v963_v38 }
  0xd0   : > { %v831_v40 = vld [vmem:[#allocation5 + $0x1100] sm:$0xff]  ;;  %1577 = vmatpush.msra.mxu3 %v1031_v39 }
  0xd1   : > { %v895_v41 = vld [vmem:[#allocation5 + $0x1300] sm:$0xff]  ;;  %1519 = vmatpush.msra.mxu0 %v831_v40 }
  0xd2   : > { %v959_v42 = vld [vmem:[#allocation5 + $0x1500] sm:$0xff]  ;;  %1539 = vmatpush.msra.mxu1 %v895_v41 }
  0xd3   : > { %v1027_v43 = vld [vmem:[#allocation5 + $0x1720] sm:$0xff]  ;;  %1559 = vmatpush.msra.mxu2 %v959_v42 }
  0xd4   : > { %v827_v44 = vld [vmem:[#allocation5 + $0x10e0] sm:$0xff]  ;;  %1578 = vmatpush.msra.mxu3 %v1027_v43 }
  0xd5   : > { %v891_v45 = vld [vmem:[#allocation5 + $0x12e0] sm:$0xff]  ;;  %1520 = vmatpush.msra.mxu0 %v827_v44 }
  0xd6   : > { %v955_v50 = vld [vmem:[#allocation5 + $0x14e0] sm:$0xff]  ;;  %1540 = vmatpush.msra.mxu1 %v891_v45 }
  0xd7   : > { %v1023_v51 = vld [vmem:[#allocation5 + $0x1700] sm:$0xff]  ;;  %1560 = vmatpush.msra.mxu2 %v955_v50 }
  0xd8   : > { %v823_v52 = vld [vmem:[#allocation5 + $0x10c0] sm:$0xff]  ;;  %1579 = vmatpush.msra.mxu3 %v1023_v51 }
  0xd9   : > { %v887_v53 = vld [vmem:[#allocation5 + $0x12c0] sm:$0xff]  ;;  %1521 = vmatpush.msra.mxu0 %v823_v52 }
  0xda   : > { %v951_v54 = vld [vmem:[#allocation5 + $0x14c0] sm:$0xff]  ;;  %1541 = vmatpush.msra.mxu1 %v887_v53 }
  0xdb   : > { %v1019_v55 = vld [vmem:[#allocation5 + $0x16e0] sm:$0xff]  ;;  %1561 = vmatpush.msra.mxu2 %v951_v54 }
  0xdc   : > { %v819_v56 = vld [vmem:[#allocation5 + $0x10a0] sm:$0xff]  ;;  %1580 = vmatpush.msra.mxu3 %v1019_v55 }
  0xdd   : > { %v883_v57 = vld [vmem:[#allocation5 + $0x12a0] sm:$0xff]  ;;  %1522 = vmatpush.msra.mxu0 %v819_v56 }
  0xde   : > { %v947_v58 = vld [vmem:[#allocation5 + $0x14a0] sm:$0xff]  ;;  %1542 = vmatpush.msra.mxu1 %v883_v57 }
  0xdf   : > { %v1015_v59 = vld [vmem:[#allocation5 + $0x16c0] sm:$0xff]  ;;  %1562 = vmatpush.msra.mxu2 %v947_v58 }
  0xe0   : > { %v815_v60 = vld [vmem:[#allocation5 + $0x1080] sm:$0xff]  ;;  %1581 = vmatpush.msra.mxu3 %v1015_v59 }
  0xe1   : > { %v879_v61 = vld [vmem:[#allocation5 + $0x1280] sm:$0xff]  ;;  %1523 = vmatpush.msra.mxu0 %v815_v60 }
  0xe2   : > { %v943_v2 = vld [vmem:[#allocation5 + $0x1480] sm:$0xff]  ;;  %1543 = vmatpush.msra.mxu1 %v879_v61 }
  0xe3   : > { %v1011_v3 = vld [vmem:[#allocation5 + $0x16a0] sm:$0xff]  ;;  %1563 = vmatpush.msra.mxu2 %v943_v2 }
  0xe4   : > { %v811_v4 = vld [vmem:[#allocation5 + $0x1060] sm:$0xff]  ;;  %1582 = vmatpush.msra.mxu3 %v1011_v3 }
  0xe5   : > { %v875_v5 = vld [vmem:[#allocation5 + $0x1260] sm:$0xff]  ;;  %1524 = vmatpush.msra.mxu0 %v811_v4 }
  0xe6   : > { %v939_v6 = vld [vmem:[#allocation5 + $0x1460] sm:$0xff]  ;;  %1544 = vmatpush.msra.mxu1 %v875_v5 }
  0xe7   : > { %v1007_v7 = vld [vmem:[#allocation5 + $0x1680] sm:$0xff]  ;;  %1564 = vmatpush.msra.mxu2 %v939_v6 }
  0xe8   : > { %v807_v8 = vld [vmem:[#allocation5 + $0x1040] sm:$0xff]  ;;  %1583 = vmatpush.msra.mxu3 %v1007_v7 }
  0xe9   : > { %v871_v9 = vld [vmem:[#allocation5 + $0x1240] sm:$0xff]  ;;  %1525 = vmatpush.msra.mxu0 %v807_v8 }
  0xea   : > { %v935_v10 = vld [vmem:[#allocation5 + $0x1440] sm:$0xff]  ;;  %1545 = vmatpush.msra.mxu1 %v871_v9 }
  0xeb   : > { %v1003_v11 = vld [vmem:[#allocation5 + $0x1660] sm:$0xff]  ;;  %1565 = vmatpush.msra.mxu2 %v935_v10 }
  0xec   : > { %v803_v12 = vld [vmem:[#allocation5 + $0x1020] sm:$0xff]  ;;  %1584 = vmatpush.msra.mxu3 %v1003_v11 }
  0xed   : > { %v867_v13 = vld [vmem:[#allocation5 + $0x1220] sm:$0xff]  ;;  %1526 = vmatpush.msra.mxu0 %v803_v12 }
  0xee   : > { %v931_v14 = vld [vmem:[#allocation5 + $0x1420] sm:$0xff]  ;;  %1546 = vmatpush.msra.mxu1 %v867_v13 }
  0xef   : > { %v999_v15 = vld [vmem:[#allocation5 + $0x1640] sm:$0xff]  ;;  %1566 = vmatpush.msra.mxu2 %v931_v14 }
  0xf0   : > { %v799_v16 = vld [vmem:[#allocation5 + $0x1000] sm:$0xff]  ;;  %1585 = vmatpush.msra.mxu3 %v999_v15 }
  0xf1   : > { %v863_v17 = vld [vmem:[#allocation5 + $0x1200] sm:$0xff]  ;;  %1527 = vmatpush.msra.mxu0 %v799_v16 }
  0xf2   : > { %v927_v18 = vld [vmem:[#allocation5 + $0x1400] sm:$0xff]  ;;  %1547 = vmatpush.msra.mxu1 %v863_v17  ;;  %1528 = vmatmul.f32.vlgmr.msra.gmra.mxu0 %v1328_v20 }
  0xf3   : > { %v995_v19 = vld [vmem:[#allocation5 + $0x1620] sm:$0xff]  ;;  %1567 = vmatpush.msra.mxu2 %v927_v18 }
  0xf4   : > { %v1115_v22 = vld [vmem:[#allocation5 + $0x19e0] sm:$0xff]  ;;  %1586 = vmatpush.msra.mxu3 %v995_v19  ;;  %1568 = vmatmul.f32.vlgmr.msra.gmra.mxu2 %v1330_v21 }
  0xf5   : > { %v1179_v23 = vld [vmem:[#allocation5 + $0x1be0] sm:$0xff]  ;;  %1592 = vmatpush.msrb.mxu0 %v1115_v22 }
  0xf6   : > { %v1243_v24 = vld [vmem:[#allocation5 + $0x1de0] sm:$0xff]  ;;  %1612 = vmatpush.msrb.mxu1 %v1179_v23 }
  0xf7   : > { %v991_v25 = vld [vmem:[#allocation5 + $0x1600] sm:$0xff]  ;;  %1632 = vmatpush.msrb.mxu2 %v1243_v24 }
  0xf8   : > { %v1329_v26 = vld.sshfl [vmem:[#allocation1 + $0x8] sm:$0xff pattern:$0x73625140]  ;;  %1587 = vmatpush.msra.mxu3 %v991_v25 }
  0xf9   : > { %v1111_v28 = vld [vmem:[#allocation5 + $0x19c0] sm:$0xff]  ;;  %1548 = vmatmul.f32.vlgmr.msra.gmra.mxu1 %v1329_v26  ;;  %1588 = vmatmul.f32.vlgmr.msra.gmra.mxu3 %v1331_v27 }
  0xfa   : > { %v1175_v29 = vld [vmem:[#allocation5 + $0x1bc0] sm:$0xff]  ;;  %1593 = vmatpush.msrb.mxu0 %v1111_v28 }
  0xfb   : > { %v1239_v30 = vld [vmem:[#allocation5 + $0x1dc0] sm:$0xff]  ;;  %1613 = vmatpush.msrb.mxu1 %v1175_v29 }
  0xfc   : > { %v1307_v31 = vld [vmem:[#allocation5 + $0x1fe0] sm:$0xff]  ;;  %1633 = vmatpush.msrb.mxu2 %v1239_v30 }
  0xfd   : > { %v1107_v32 = vld [vmem:[#allocation5 + $0x19a0] sm:$0xff]  ;;  %1652 = vmatpush.msrb.mxu3 %v1307_v31 }
  0xfe   : > { %v1171_v33 = vld [vmem:[#allocation5 + $0x1ba0] sm:$0xff]  ;;  %1594 = vmatpush.msrb.mxu0 %v1107_v32  ;;  %v1332_v32 = vld.sshfl [vmem:[#allocation1 + $0x20] sm:$0xff pattern:$0x73625140] }
  0xff   : > { %v1235_v34 = vld [vmem:[#allocation5 + $0x1da0] sm:$0xff]  ;;  %1614 = vmatpush.msrb.mxu1 %v1171_v33  ;;  %v1334_v33 = vld.sshfl [vmem:[#allocation1 + $0x30] sm:$0xff pattern:$0x73625140] }
 0x100   : > { %v1303_v35 = vld [vmem:[#allocation5 + $0x1fc0] sm:$0xff]  ;;  %1634 = vmatpush.msrb.mxu2 %v1235_v34  ;;  %v348_v34 = vld [vmem:[#allocation5 + $0x1e8] sm:$0xff] }
 0x101   : > { %v1103_v36 = vld [vmem:[#allocation5 + $0x1980] sm:$0xff]  ;;  %1653 = vmatpush.msrb.mxu3 %v1303_v35  ;;  %v412_v35 = vld [vmem:[#allocation5 + $0x3e8] sm:$0xff] }
 0x102   : > { %v1167_v37 = vld [vmem:[#allocation5 + $0x1b80] sm:$0xff]  ;;  %1595 = vmatpush.msrb.mxu0 %v1103_v36  ;;  %v476_v36 = vld [vmem:[#allocation5 + $0x5e8] sm:$0xff] }
 0x103   : > { %v1231_v38 = vld [vmem:[#allocation5 + $0x1d80] sm:$0xff]  ;;  %1615 = vmatpush.msrb.mxu1 %v1167_v37 }
 0x104   : > { %v1299_v39 = vld [vmem:[#allocation5 + $0x1fa0] sm:$0xff]  ;;  %1635 = vmatpush.msrb.mxu2 %v1231_v38 }
 0x105   : > { %v1099_v40 = vld [vmem:[#allocation5 + $0x1960] sm:$0xff]  ;;  %1654 = vmatpush.msrb.mxu3 %v1299_v39  ;;  %v1335_v39 = vld.sshfl [vmem:[#allocation1 + $0x38] sm:$0xff pattern:$0x73625140] }
 0x106   : > { %v1163_v41 = vld [vmem:[#allocation5 + $0x1b60] sm:$0xff]  ;;  %1596 = vmatpush.msrb.mxu0 %v1099_v40  ;;  %v344_v40 = vld [vmem:[#allocation5 + $0x1c8] sm:$0xff] }
 0x107   : > { %v1227_v42 = vld [vmem:[#allocation5 + $0x1d60] sm:$0xff]  ;;  %1616 = vmatpush.msrb.mxu1 %v1163_v41  ;;  %v408_v41 = vld [vmem:[#allocation5 + $0x3c8] sm:$0xff] }
 0x108   : > { %v1295_v43 = vld [vmem:[#allocation5 + $0x1f80] sm:$0xff]  ;;  %1636 = vmatpush.msrb.mxu2 %v1227_v42  ;;  %v472_v42 = vld [vmem:[#allocation5 + $0x5c8] sm:$0xff] }
 0x109   : > { %v1095_v44 = vld [vmem:[#allocation5 + $0x1940] sm:$0xff]  ;;  %1655 = vmatpush.msrb.mxu3 %v1295_v43  ;;  %v540_v43 = vld [vmem:[#allocation5 + $0x7e8] sm:$0xff] }
 0x10a   : > { %v1159_v45 = vld [vmem:[#allocation5 + $0x1b40] sm:$0xff]  ;;  %1597 = vmatpush.msrb.mxu0 %v1095_v44  ;;  %v340_v44 = vld [vmem:[#allocation5 + $0x1a8] sm:$0xff] }
 0x10b   : > { %v1223_v50 = vld [vmem:[#allocation5 + $0x1d40] sm:$0xff]  ;;  %1617 = vmatpush.msrb.mxu1 %v1159_v45  ;;  %v404_v45 = vld [vmem:[#allocation5 + $0x3a8] sm:$0xff] }
 0x10c   : > { %v1291_v51 = vld [vmem:[#allocation5 + $0x1f60] sm:$0xff]  ;;  %1637 = vmatpush.msrb.mxu2 %v1223_v50  ;;  %v468_v50 = vld [vmem:[#allocation5 + $0x5a8] sm:$0xff] }
 0x10d   : > { %v1091_v52 = vld [vmem:[#allocation5 + $0x1920] sm:$0xff]  ;;  %1656 = vmatpush.msrb.mxu3 %v1291_v51  ;;  %v536_v51 = vld [vmem:[#allocation5 + $0x7c8] sm:$0xff] }
 0x10e   : > { %v1155_v53 = vld [vmem:[#allocation5 + $0x1b20] sm:$0xff]  ;;  %1598 = vmatpush.msrb.mxu0 %v1091_v52  ;;  %v336_v52 = vld [vmem:[#allocation5 + $0x188] sm:$0xff] }
 0x10f   : > { %v1219_v54 = vld [vmem:[#allocation5 + $0x1d20] sm:$0xff]  ;;  %1618 = vmatpush.msrb.mxu1 %v1155_v53  ;;  %v400_v53 = vld [vmem:[#allocation5 + $0x388] sm:$0xff] }
 0x110   : > { %v1287_v55 = vld [vmem:[#allocation5 + $0x1f40] sm:$0xff]  ;;  %1638 = vmatpush.msrb.mxu2 %v1219_v54  ;;  %v464_v54 = vld [vmem:[#allocation5 + $0x588] sm:$0xff] }
 0x111   : > { %v1087_v56 = vld [vmem:[#allocation5 + $0x1900] sm:$0xff]  ;;  %1657 = vmatpush.msrb.mxu3 %v1287_v55  ;;  %v532_v55 = vld [vmem:[#allocation5 + $0x7a8] sm:$0xff] }
 0x112   : > { %v1151_v57 = vld [vmem:[#allocation5 + $0x1b00] sm:$0xff]  ;;  %1599 = vmatpush.msrb.mxu0 %v1087_v56  ;;  %v332_v56 = vld [vmem:[#allocation5 + $0x168] sm:$0xff] }
 0x113   : > { %v1215_v58 = vld [vmem:[#allocation5 + $0x1d00] sm:$0xff]  ;;  %1619 = vmatpush.msrb.mxu1 %v1151_v57  ;;  %v396_v57 = vld [vmem:[#allocation5 + $0x368] sm:$0xff] }
 0x114   : > { %v1283_v59 = vld [vmem:[#allocation5 + $0x1f20] sm:$0xff]  ;;  %1639 = vmatpush.msrb.mxu2 %v1215_v58  ;;  %v460_v58 = vld [vmem:[#allocation5 + $0x568] sm:$0xff] }
 0x115   : > { %v1083_v60 = vld [vmem:[#allocation5 + $0x18e0] sm:$0xff]  ;;  %1658 = vmatpush.msrb.mxu3 %v1283_v59  ;;  %v528_v59 = vld [vmem:[#allocation5 + $0x788] sm:$0xff] }
 0x116   : > { %v1147_v61 = vld [vmem:[#allocation5 + $0x1ae0] sm:$0xff]  ;;  %1600 = vmatpush.msrb.mxu0 %v1083_v60  ;;  %v328_v60 = vld [vmem:[#allocation5 + $0x148] sm:$0xff] }
 0x117   : > { %v1211_v2 = vld [vmem:[#allocation5 + $0x1ce0] sm:$0xff]  ;;  %1620 = vmatpush.msrb.mxu1 %v1147_v61  ;;  %v392_v61 = vld [vmem:[#allocation5 + $0x348] sm:$0xff] }
 0x118   : > { %v1279_v3 = vld [vmem:[#allocation5 + $0x1f00] sm:$0xff]  ;;  %1640 = vmatpush.msrb.mxu2 %v1211_v2  ;;  %v456_v2 = vld [vmem:[#allocation5 + $0x548] sm:$0xff] }
 0x119   : > { %v1079_v4 = vld [vmem:[#allocation5 + $0x18c0] sm:$0xff]  ;;  %1659 = vmatpush.msrb.mxu3 %v1279_v3  ;;  %v524_v3 = vld [vmem:[#allocation5 + $0x768] sm:$0xff] }
 0x11a   : > { %v1143_v5 = vld [vmem:[#allocation5 + $0x1ac0] sm:$0xff]  ;;  %1601 = vmatpush.msrb.mxu0 %v1079_v4  ;;  %v324_v4 = vld [vmem:[#allocation5 + $0x128] sm:$0xff] }
 0x11b   : > { %v1207_v6 = vld [vmem:[#allocation5 + $0x1cc0] sm:$0xff]  ;;  %1621 = vmatpush.msrb.mxu1 %v1143_v5  ;;  %v388_v5 = vld [vmem:[#allocation5 + $0x328] sm:$0xff] }
 0x11c   : > { %v1275_v7 = vld [vmem:[#allocation5 + $0x1ee0] sm:$0xff]  ;;  %1641 = vmatpush.msrb.mxu2 %v1207_v6  ;;  %v452_v6 = vld [vmem:[#allocation5 + $0x528] sm:$0xff] }
 0x11d   : > { %v1075_v8 = vld [vmem:[#allocation5 + $0x18a0] sm:$0xff]  ;;  %1660 = vmatpush.msrb.mxu3 %v1275_v7  ;;  %v520_v7 = vld [vmem:[#allocation5 + $0x748] sm:$0xff] }
 0x11e   : > { %v1139_v9 = vld [vmem:[#allocation5 + $0x1aa0] sm:$0xff]  ;;  %1602 = vmatpush.msrb.mxu0 %v1075_v8  ;;  %v320_v8 = vld [vmem:[#allocation5 + $0x108] sm:$0xff] }
 0x11f   : > { %v1203_v10 = vld [vmem:[#allocation5 + $0x1ca0] sm:$0xff]  ;;  %1622 = vmatpush.msrb.mxu1 %v1139_v9  ;;  %v384_v9 = vld [vmem:[#allocation5 + $0x308] sm:$0xff] }
 0x120   : > { %v1271_v11 = vld [vmem:[#allocation5 + $0x1ec0] sm:$0xff]  ;;  %1642 = vmatpush.msrb.mxu2 %v1203_v10  ;;  %v448_v10 = vld [vmem:[#allocation5 + $0x508] sm:$0xff] }
 0x121   : > { %v1071_v12 = vld [vmem:[#allocation5 + $0x1880] sm:$0xff]  ;;  %1661 = vmatpush.msrb.mxu3 %v1271_v11  ;;  %v516_v11 = vld [vmem:[#allocation5 + $0x728] sm:$0xff] }
 0x122   : > { %v1135_v13 = vld [vmem:[#allocation5 + $0x1a80] sm:$0xff]  ;;  %1603 = vmatpush.msrb.mxu0 %v1071_v12  ;;  %v316_v12 = vld [vmem:[#allocation5 + $0xe8] sm:$0xff] }
 0x123   : > { %v1199_v14 = vld [vmem:[#allocation5 + $0x1c80] sm:$0xff]  ;;  %1623 = vmatpush.msrb.mxu1 %v1135_v13  ;;  %v380_v13 = vld [vmem:[#allocation5 + $0x2e8] sm:$0xff] }
 0x124   : > { %v1267_v15 = vld [vmem:[#allocation5 + $0x1ea0] sm:$0xff]  ;;  %1643 = vmatpush.msrb.mxu2 %v1199_v14  ;;  %v444_v14 = vld [vmem:[#allocation5 + $0x4e8] sm:$0xff] }
 0x125   : > { %v1067_v16 = vld [vmem:[#allocation5 + $0x1860] sm:$0xff]  ;;  %1662 = vmatpush.msrb.mxu3 %v1267_v15  ;;  %v512_v15 = vld [vmem:[#allocation5 + $0x708] sm:$0xff] }
 0x126   : > { %v1131_v17 = vld [vmem:[#allocation5 + $0x1a60] sm:$0xff]  ;;  %1604 = vmatpush.msrb.mxu0 %v1067_v16  ;;  %v312_v16 = vld [vmem:[#allocation5 + $0xc8] sm:$0xff] }
 0x127   : > { %v1195_v18 = vld [vmem:[#allocation5 + $0x1c60] sm:$0xff]  ;;  %1624 = vmatpush.msrb.mxu1 %v1131_v17  ;;  %v376_v17 = vld [vmem:[#allocation5 + $0x2c8] sm:$0xff] }
 0x128   : > { %v1263_v19 = vld [vmem:[#allocation5 + $0x1e80] sm:$0xff]  ;;  %1644 = vmatpush.msrb.mxu2 %v1195_v18  ;;  %v440_v18 = vld [vmem:[#allocation5 + $0x4c8] sm:$0xff] }
 0x129   : > { %v1063_v20 = vld [vmem:[#allocation5 + $0x1840] sm:$0xff]  ;;  %1663 = vmatpush.msrb.mxu3 %v1263_v19  ;;  %v508_v19 = vld [vmem:[#allocation5 + $0x6e8] sm:$0xff] }
 0x12a   : > { %v1127_v21 = vld [vmem:[#allocation5 + $0x1a40] sm:$0xff]  ;;  %1605 = vmatpush.msrb.mxu0 %v1063_v20  ;;  %v308_v20 = vld [vmem:[#allocation5 + $0xa8] sm:$0xff] }
 0x12b   : > { %v1191_v22 = vld [vmem:[#allocation5 + $0x1c40] sm:$0xff]  ;;  %1625 = vmatpush.msrb.mxu1 %v1127_v21  ;;  %v372_v21 = vld [vmem:[#allocation5 + $0x2a8] sm:$0xff] }
 0x12c   : > { %v1259_v23 = vld [vmem:[#allocation5 + $0x1e60] sm:$0xff]  ;;  %1645 = vmatpush.msrb.mxu2 %v1191_v22  ;;  %v436_v22 = vld [vmem:[#allocation5 + $0x4a8] sm:$0xff] }
 0x12d   : > { %v1059_v24 = vld [vmem:[#allocation5 + $0x1820] sm:$0xff]  ;;  %1664 = vmatpush.msrb.mxu3 %v1259_v23  ;;  %v504_v23 = vld [vmem:[#allocation5 + $0x6c8] sm:$0xff] }
 0x12e   : > { %v1123_v25 = vld [vmem:[#allocation5 + $0x1a20] sm:$0xff]  ;;  %1606 = vmatpush.msrb.mxu0 %v1059_v24  ;;  %v304_v24 = vld [vmem:[#allocation5 + $0x88] sm:$0xff] }
 0x12f   : > { %v1187_v26 = vld [vmem:[#allocation5 + $0x1c20] sm:$0xff]  ;;  %1626 = vmatpush.msrb.mxu1 %v1123_v25  ;;  %v368_v25 = vld [vmem:[#allocation5 + $0x288] sm:$0xff] }
 0x130   : > { %v1255_v27 = vld [vmem:[#allocation5 + $0x1e40] sm:$0xff]  ;;  %1646 = vmatpush.msrb.mxu2 %v1187_v26  ;;  %v432_v26 = vld [vmem:[#allocation5 + $0x488] sm:$0xff] }
 0x131   : > { %v1055_v28 = vld [vmem:[#allocation5 + $0x1800] sm:$0xff]  ;;  %1665 = vmatpush.msrb.mxu3 %v1255_v27  ;;  %v500_v27 = vld [vmem:[#allocation5 + $0x6a8] sm:$0xff] }
 0x132   : > { %v1119_v29 = vld [vmem:[#allocation5 + $0x1a00] sm:$0xff]  ;;  %1607 = vmatpush.msrb.mxu0 %v1055_v28  ;;  %v300_v28 = vld [vmem:[#allocation5 + $0x68] sm:$0xff] }
 0x133   : > { %v1183_v30 = vld [vmem:[#allocation5 + $0x1c00] sm:$0xff]  ;;  %1627 = vmatpush.msrb.mxu1 %v1119_v29  ;;  %1608 = vmatmul.f32.vlgmr.msrb.gmra.mxu0 %v1332_v32  ;;  %v364_v29 = vld [vmem:[#allocation5 + $0x268] sm:$0xff] }
 0x134   : > { %v1251_v31 = vld [vmem:[#allocation5 + $0x1e20] sm:$0xff]  ;;  %1647 = vmatpush.msrb.mxu2 %v1183_v30  ;;  %1672 = vmatpush.msra.mxu0 %v348_v34  ;;  %v428_v30 = vld [vmem:[#allocation5 + $0x468] sm:$0xff] }
 0x135   : > { %1666 = vmatpush.msrb.mxu3 %v1251_v31  ;;  %v1247_v37 = vld [vmem:[#allocation5 + $0x1e00] sm:$0xff]  ;;  %1648 = vmatmul.f32.vlgmr.msrb.gmra.mxu2 %v1334_v33  ;;  %v496_v31 = vld [vmem:[#allocation5 + $0x688] sm:$0xff] }
 0x136   : > { %v1333_v38 = vld.sshfl [vmem:[#allocation1 + $0x28] sm:$0xff pattern:$0x73625140]  ;;  %1692 = vmatpush.msra.mxu1 %v412_v35  ;;  %1712 = vmatpush.msra.mxu2 %v476_v36  ;;  %v296_v32 = vld [vmem:[#allocation5 + $0x48] sm:$0xff] }
 0x137   : > { %1667 = vmatpush.msrb.mxu3 %v1247_v37  ;;  %1628 = vmatmul.f32.vlgmr.msrb.gmra.mxu1 %v1333_v38  ;;  %v360_v33 = vld [vmem:[#allocation5 + $0x248] sm:$0xff] }
 0x138   : > { %1668 = vmatmul.f32.vlgmr.msrb.gmra.mxu3 %v1335_v39  ;;  %1673 = vmatpush.msra.mxu0 %v344_v40  ;;  %v424_v34 = vld [vmem:[#allocation5 + $0x448] sm:$0xff] }
 0x139   : > { %1693 = vmatpush.msra.mxu1 %v408_v41  ;;  %1713 = vmatpush.msra.mxu2 %v472_v42  ;;  %v492_v35 = vld [vmem:[#allocation5 + $0x668] sm:$0xff] }
 0x13a   : > { %1732 = vmatpush.msra.mxu3 %v540_v43  ;;  %1674 = vmatpush.msra.mxu0 %v340_v44  ;;  %v292_v36 = vld [vmem:[#allocation5 + $0x28] sm:$0xff] }
 0x13b   : > { %1694 = vmatpush.msra.mxu1 %v404_v45  ;;  %1714 = vmatpush.msra.mxu2 %v468_v50  ;;  %v356_v37 = vld [vmem:[#allocation5 + $0x228] sm:$0xff] }
 0x13c   : > { %1733 = vmatpush.msra.mxu3 %v536_v51  ;;  %1675 = vmatpush.msra.mxu0 %v336_v52  ;;  %v420_v38 = vld [vmem:[#allocation5 + $0x428] sm:$0xff] }
 0x13d   : > { %1695 = vmatpush.msra.mxu1 %v400_v53  ;;  %1715 = vmatpush.msra.mxu2 %v464_v54  ;;  %v488_v39 = vld [vmem:[#allocation5 + $0x648] sm:$0xff] }
 0x13e   : > { %1734 = vmatpush.msra.mxu3 %v532_v55  ;;  %1676 = vmatpush.msra.mxu0 %v332_v56  ;;  %v288_v40 = vld [vmem:[#allocation5 + $0x8] sm:$0xff] }
 0x13f   : > { %1696 = vmatpush.msra.mxu1 %v396_v57  ;;  %1716 = vmatpush.msra.mxu2 %v460_v58  ;;  %v352_v41 = vld [vmem:[#allocation5 + $0x208] sm:$0xff] }
 0x140   : > { %1735 = vmatpush.msra.mxu3 %v528_v59  ;;  %1677 = vmatpush.msra.mxu0 %v328_v60  ;;  %v416_v42 = vld [vmem:[#allocation5 + $0x408] sm:$0xff] }
 0x141   : > { %1697 = vmatpush.msra.mxu1 %v392_v61  ;;  %1717 = vmatpush.msra.mxu2 %v456_v2  ;;  %v484_v43 = vld [vmem:[#allocation5 + $0x628] sm:$0xff] }
 0x142   : > { %1736 = vmatpush.msra.mxu3 %v524_v3  ;;  %1678 = vmatpush.msra.mxu0 %v324_v4  ;;  %v604_v44 = vld [vmem:[#allocation5 + $0x9e8] sm:$0xff] }
 0x143   : > { %1698 = vmatpush.msra.mxu1 %v388_v5  ;;  %1718 = vmatpush.msra.mxu2 %v452_v6  ;;  %v668_v45 = vld [vmem:[#allocation5 + $0xbe8] sm:$0xff] }
 0x144   : > { %1737 = vmatpush.msra.mxu3 %v520_v7  ;;  %1679 = vmatpush.msra.mxu0 %v320_v8  ;;  %v732_v50 = vld [vmem:[#allocation5 + $0xde8] sm:$0xff] }
 0x145   : > { %1699 = vmatpush.msra.mxu1 %v384_v9  ;;  %1719 = vmatpush.msra.mxu2 %v448_v10  ;;  %v480_v51 = vld [vmem:[#allocation5 + $0x608] sm:$0xff] }
 0x146   : > { %1738 = vmatpush.msra.mxu3 %v516_v11  ;;  %1680 = vmatpush.msra.mxu0 %v316_v12  ;;  %v600_v52 = vld [vmem:[#allocation5 + $0x9c8] sm:$0xff] }
 0x147   : > { %1700 = vmatpush.msra.mxu1 %v380_v13  ;;  %1720 = vmatpush.msra.mxu2 %v444_v14  ;;  %v664_v53 = vld [vmem:[#allocation5 + $0xbc8] sm:$0xff] }
 0x148   : > { %1739 = vmatpush.msra.mxu3 %v512_v15  ;;  %1681 = vmatpush.msra.mxu0 %v312_v16  ;;  %v728_v54 = vld [vmem:[#allocation5 + $0xdc8] sm:$0xff] }
 0x149   : > { %1701 = vmatpush.msra.mxu1 %v376_v17  ;;  %1721 = vmatpush.msra.mxu2 %v440_v18  ;;  %v796_v55 = vld [vmem:[#allocation5 + $0xfe8] sm:$0xff] }
 0x14a   : > { %1740 = vmatpush.msra.mxu3 %v508_v19  ;;  %1682 = vmatpush.msra.mxu0 %v308_v20  ;;  %v596_v56 = vld [vmem:[#allocation5 + $0x9a8] sm:$0xff] }
 0x14b   : > { %1702 = vmatpush.msra.mxu1 %v372_v21  ;;  %1722 = vmatpush.msra.mxu2 %v436_v22  ;;  %v660_v57 = vld [vmem:[#allocation5 + $0xba8] sm:$0xff] }
 0x14c   : > { %1741 = vmatpush.msra.mxu3 %v504_v23  ;;  %1683 = vmatpush.msra.mxu0 %v304_v24  ;;  %v724_v58 = vld [vmem:[#allocation5 + $0xda8] sm:$0xff] }
 0x14d   : > { %1703 = vmatpush.msra.mxu1 %v368_v25  ;;  %1723 = vmatpush.msra.mxu2 %v432_v26  ;;  %v792_v59 = vld [vmem:[#allocation5 + $0xfc8] sm:$0xff] }
 0x14e   : > { %1742 = vmatpush.msra.mxu3 %v500_v27  ;;  %1684 = vmatpush.msra.mxu0 %v300_v28  ;;  %v592_v60 = vld [vmem:[#allocation5 + $0x988] sm:$0xff] }
 0x14f   : > { %1704 = vmatpush.msra.mxu1 %v364_v29  ;;  %1724 = vmatpush.msra.mxu2 %v428_v30  ;;  %v656_v61 = vld [vmem:[#allocation5 + $0xb88] sm:$0xff] }
 0x150   : > { %1743 = vmatpush.msra.mxu3 %v496_v31  ;;  %1685 = vmatpush.msra.mxu0 %v296_v32  ;;  %v720_v2 = vld [vmem:[#allocation5 + $0xd88] sm:$0xff] }
 0x151   : > { %1705 = vmatpush.msra.mxu1 %v360_v33  ;;  %1725 = vmatpush.msra.mxu2 %v424_v34  ;;  %v788_v3 = vld [vmem:[#allocation5 + $0xfa8] sm:$0xff] }
 0x152   : > { %1744 = vmatpush.msra.mxu3 %v492_v35  ;;  %1686 = vmatpush.msra.mxu0 %v292_v36  ;;  %v588_v4 = vld [vmem:[#allocation5 + $0x968] sm:$0xff] }
 0x153   : > { %1706 = vmatpush.msra.mxu1 %v356_v37  ;;  %1726 = vmatpush.msra.mxu2 %v420_v38  ;;  %v652_v5 = vld [vmem:[#allocation5 + $0xb68] sm:$0xff] }
 0x154   : > { %1745 = vmatpush.msra.mxu3 %v488_v39  ;;  %1687 = vmatpush.msra.mxu0 %v288_v40  ;;  %v716_v6 = vld [vmem:[#allocation5 + $0xd68] sm:$0xff] }
 0x155   : > { %1707 = vmatpush.msra.mxu1 %v352_v41  ;;  %1727 = vmatpush.msra.mxu2 %v416_v42  ;;  %v784_v7 = vld [vmem:[#allocation5 + $0xf88] sm:$0xff] }
 0x156   : > { %1746 = vmatpush.msra.mxu3 %v484_v43  ;;  %1752 = vmatpush.msrb.mxu0 %v604_v44  ;;  %v584_v8 = vld [vmem:[#allocation5 + $0x948] sm:$0xff] }
 0x157   : > { %1772 = vmatpush.msrb.mxu1 %v668_v45  ;;  %1792 = vmatpush.msrb.mxu2 %v732_v50  ;;  %v648_v9 = vld [vmem:[#allocation5 + $0xb48] sm:$0xff] }
 0x158   : > { %1747 = vmatpush.msra.mxu3 %v480_v51  ;;  %1753 = vmatpush.msrb.mxu0 %v600_v52  ;;  %v712_v10 = vld [vmem:[#allocation5 + $0xd48] sm:$0xff] }
 0x159   : > { %1773 = vmatpush.msrb.mxu1 %v664_v53  ;;  %1793 = vmatpush.msrb.mxu2 %v728_v54  ;;  %v780_v11 = vld [vmem:[#allocation5 + $0xf68] sm:$0xff] }
 0x15a   : > { %1812 = vmatpush.msrb.mxu3 %v796_v55  ;;  %1754 = vmatpush.msrb.mxu0 %v596_v56  ;;  %v580_v12 = vld [vmem:[#allocation5 + $0x928] sm:$0xff] }
 0x15b   : > { %1774 = vmatpush.msrb.mxu1 %v660_v57  ;;  %1794 = vmatpush.msrb.mxu2 %v724_v58  ;;  %v644_v13 = vld [vmem:[#allocation5 + $0xb28] sm:$0xff] }
 0x15c   : > { %1813 = vmatpush.msrb.mxu3 %v792_v59  ;;  %1755 = vmatpush.msrb.mxu0 %v592_v60  ;;  %v708_v14 = vld [vmem:[#allocation5 + $0xd28] sm:$0xff] }
 0x15d   : > { %1775 = vmatpush.msrb.mxu1 %v656_v61  ;;  %1795 = vmatpush.msrb.mxu2 %v720_v2  ;;  %v776_v15 = vld [vmem:[#allocation5 + $0xf48] sm:$0xff] }
 0x15e   : > { %1814 = vmatpush.msrb.mxu3 %v788_v3  ;;  %1756 = vmatpush.msrb.mxu0 %v588_v4  ;;  %v576_v16 = vld [vmem:[#allocation5 + $0x908] sm:$0xff] }
 0x15f   : > { %1776 = vmatpush.msrb.mxu1 %v652_v5  ;;  %1796 = vmatpush.msrb.mxu2 %v716_v6  ;;  %v640_v17 = vld [vmem:[#allocation5 + $0xb08] sm:$0xff] }
 0x160   : > { %1815 = vmatpush.msrb.mxu3 %v784_v7  ;;  %1757 = vmatpush.msrb.mxu0 %v584_v8  ;;  %v704_v18 = vld [vmem:[#allocation5 + $0xd08] sm:$0xff] }
 0x161   : > { %1777 = vmatpush.msrb.mxu1 %v648_v9  ;;  %1797 = vmatpush.msrb.mxu2 %v712_v10  ;;  %v772_v19 = vld [vmem:[#allocation5 + $0xf28] sm:$0xff] }
 0x162   : > { %1816 = vmatpush.msrb.mxu3 %v780_v11  ;;  %1758 = vmatpush.msrb.mxu0 %v580_v12  ;;  %v572_v20 = vld [vmem:[#allocation5 + $0x8e8] sm:$0xff] }
 0x163   : > { %1778 = vmatpush.msrb.mxu1 %v644_v13  ;;  %1798 = vmatpush.msrb.mxu2 %v708_v14  ;;  %v636_v21 = vld [vmem:[#allocation5 + $0xae8] sm:$0xff] }
 0x164   : > { %1817 = vmatpush.msrb.mxu3 %v776_v15  ;;  %1759 = vmatpush.msrb.mxu0 %v576_v16  ;;  %v700_v22 = vld [vmem:[#allocation5 + $0xce8] sm:$0xff] }
 0x165   : > { %1779 = vmatpush.msrb.mxu1 %v640_v17  ;;  %v768_v23 = vld [vmem:[#allocation5 + $0xf08] sm:$0xff]  ;;  %1799 = vmatpush.msrb.mxu2 %v704_v18 }
 0x166   : > { %1818 = vmatpush.msrb.mxu3 %v772_v19  ;;  %v568_v24 = vld [vmem:[#allocation5 + $0x8c8] sm:$0xff]  ;;  %1760 = vmatpush.msrb.mxu0 %v572_v20 }
 0x167   : > { %v632_v25 = vld [vmem:[#allocation5 + $0xac8] sm:$0xff]  ;;  %1780 = vmatpush.msrb.mxu1 %v636_v21  ;;  %1800 = vmatpush.msrb.mxu2 %v700_v22 }
 0x168   : > { %v696_v26 = vld [vmem:[#allocation5 + $0xcc8] sm:$0xff]  ;;  %1819 = vmatpush.msrb.mxu3 %v768_v23  ;;  %1761 = vmatpush.msrb.mxu0 %v568_v24 }
 0x169   : > { %v764_v27 = vld [vmem:[#allocation5 + $0xee8] sm:$0xff]  ;;  %1781 = vmatpush.msrb.mxu1 %v632_v25  ;;  %1801 = vmatpush.msrb.mxu2 %v696_v26 }
 0x16a   : > { %v564_v28 = vld [vmem:[#allocation5 + $0x8a8] sm:$0xff]  ;;  %1820 = vmatpush.msrb.mxu3 %v764_v27  ;;  %1728 = vmatmul.f32.vlgmr.msra.gmra.mxu2 %v3394_v46 }
 0x16b   : > { %v628_v29 = vld [vmem:[#allocation5 + $0xaa8] sm:$0xff]  ;;  %1762 = vmatpush.msrb.mxu0 %v564_v28  ;;  %1708 = vmatmul.f32.vlgmr.msra.gmra.mxu1 %v3398_v48 }
 0x16c   : > { %v692_v30 = vld [vmem:[#allocation5 + $0xca8] sm:$0xff]  ;;  %1782 = vmatpush.msrb.mxu1 %v628_v29  ;;  %1688 = vmatmul.f32.vlgmr.msra.gmra.mxu0 %v3396_v47 }
 0x16d   : > { %v760_v31 = vld [vmem:[#allocation5 + $0xec8] sm:$0xff]  ;;  %1802 = vmatpush.msrb.mxu2 %v692_v30  ;;  %1748 = vmatmul.f32.vlgmr.msra.gmra.mxu3 %v3400_v49 }
 0x16e   : > { %v560_v32 = vld [vmem:[#allocation5 + $0x888] sm:$0xff]  ;;  %1821 = vmatpush.msrb.mxu3 %v760_v31 }
 0x16f   : > { %v624_v33 = vld [vmem:[#allocation5 + $0xa88] sm:$0xff]  ;;  %1763 = vmatpush.msrb.mxu0 %v560_v32 }
 0x170   : > { %v688_v34 = vld [vmem:[#allocation5 + $0xc88] sm:$0xff]  ;;  %1783 = vmatpush.msrb.mxu1 %v624_v33 }
 0x171   : > { %v756_v35 = vld [vmem:[#allocation5 + $0xea8] sm:$0xff]  ;;  %1803 = vmatpush.msrb.mxu2 %v688_v34 }
 0x172   : > { %v556_v36 = vld [vmem:[#allocation5 + $0x868] sm:$0xff]  ;;  %1822 = vmatpush.msrb.mxu3 %v756_v35 }
 0x173   : > { %v620_v37 = vld [vmem:[#allocation5 + $0xa68] sm:$0xff]  ;;  %1764 = vmatpush.msrb.mxu0 %v556_v36 }
 0x174   : > { %v684_v38 = vld [vmem:[#allocation5 + $0xc68] sm:$0xff]  ;;  %1784 = vmatpush.msrb.mxu1 %v620_v37 }
 0x175   : > { %v752_v39 = vld [vmem:[#allocation5 + $0xe88] sm:$0xff]  ;;  %1804 = vmatpush.msrb.mxu2 %v684_v38 }
 0x176   : > { %v552_v40 = vld [vmem:[#allocation5 + $0x848] sm:$0xff]  ;;  %1823 = vmatpush.msrb.mxu3 %v752_v39 }
 0x177   : > { %v616_v41 = vld [vmem:[#allocation5 + $0xa48] sm:$0xff]  ;;  %1765 = vmatpush.msrb.mxu0 %v552_v40 }
 0x178   : > { %v680_v42 = vld [vmem:[#allocation5 + $0xc48] sm:$0xff]  ;;  %1785 = vmatpush.msrb.mxu1 %v616_v41 }
 0x179   : > { %v748_v43 = vld [vmem:[#allocation5 + $0xe68] sm:$0xff]  ;;  %1805 = vmatpush.msrb.mxu2 %v680_v42 }
 0x17a   : > { %v548_v44 = vld [vmem:[#allocation5 + $0x828] sm:$0xff]  ;;  %1824 = vmatpush.msrb.mxu3 %v748_v43 }
 0x17b   : > { %v612_v45 = vld [vmem:[#allocation5 + $0xa28] sm:$0xff]  ;;  %1766 = vmatpush.msrb.mxu0 %v548_v44 }
 0x17c   : > { %v676_v50 = vld [vmem:[#allocation5 + $0xc28] sm:$0xff]  ;;  %1786 = vmatpush.msrb.mxu1 %v612_v45 }
 0x17d   : > { %v744_v51 = vld [vmem:[#allocation5 + $0xe48] sm:$0xff]  ;;  %1806 = vmatpush.msrb.mxu2 %v676_v50 }
 0x17e   : > { %v544_v52 = vld [vmem:[#allocation5 + $0x808] sm:$0xff]  ;;  %1825 = vmatpush.msrb.mxu3 %v744_v51 }
 0x17f   : > { %v608_v53 = vld [vmem:[#allocation5 + $0xa08] sm:$0xff]  ;;  %1767 = vmatpush.msrb.mxu0 %v544_v52 }
 0x180   : > { %v672_v54 = vld [vmem:[#allocation5 + $0xc08] sm:$0xff]  ;;  %1787 = vmatpush.msrb.mxu1 %v608_v53  ;;  %1768 = vmatmul.f32.vlgmr.msrb.gmra.mxu0 %v3405_v63 }
 0x181   : > { %v740_v55 = vld [vmem:[#allocation5 + $0xe28] sm:$0xff]  ;;  %1807 = vmatpush.msrb.mxu2 %v672_v54  ;;  %1788 = vmatmul.f32.vlgmr.msrb.gmra.mxu1 %v3409_v1 }
 0x182   : > { %v860_v56 = vld [vmem:[#allocation5 + $0x11e8] sm:$0xff]  ;;  %1826 = vmatpush.msrb.mxu3 %v740_v55  ;;  %1808 = vmatmul.f32.vlgmr.msrb.gmra.mxu2 %v3403_v62 }
 0x183   : > { %v924_v57 = vld [vmem:[#allocation5 + $0x13e8] sm:$0xff]  ;;  %1832 = vmatpush.msra.mxu0 %v860_v56 }
 0x184   : > { %v988_v58 = vld [vmem:[#allocation5 + $0x15e8] sm:$0xff]  ;;  %1852 = vmatpush.msra.mxu1 %v924_v57 }
 0x185   : > { %v736_v59 = vld [vmem:[#allocation5 + $0xe08] sm:$0xff]  ;;  %1872 = vmatpush.msra.mxu2 %v988_v58 }
 0x186   : > { %v856_v60 = vld [vmem:[#allocation5 + $0x11c8] sm:$0xff]  ;;  %1827 = vmatpush.msrb.mxu3 %v736_v59 }
 0x187   : > { %v920_v61 = vld [vmem:[#allocation5 + $0x13c8] sm:$0xff]  ;;  %1833 = vmatpush.msra.mxu0 %v856_v60  ;;  %1828 = vmatmul.f32.vlgmr.msrb.gmra.mxu3 %v3407_v0 }
 0x188   : > { %v984_v2 = vld [vmem:[#allocation5 + $0x15c8] sm:$0xff]  ;;  %1853 = vmatpush.msra.mxu1 %v920_v61 }
 0x189   : > { %v1052_v3 = vld [vmem:[#allocation5 + $0x17e8] sm:$0xff]  ;;  %1873 = vmatpush.msra.mxu2 %v984_v2 }
 0x18a   : > { %v852_v4 = vld [vmem:[#allocation5 + $0x11a8] sm:$0xff]  ;;  %1892 = vmatpush.msra.mxu3 %v1052_v3 }
 0x18b   : > { %v916_v5 = vld [vmem:[#allocation5 + $0x13a8] sm:$0xff]  ;;  %1834 = vmatpush.msra.mxu0 %v852_v4 }
 0x18c   : > { %v980_v6 = vld [vmem:[#allocation5 + $0x15a8] sm:$0xff]  ;;  %1854 = vmatpush.msra.mxu1 %v916_v5 }
 0x18d   : > { %v1048_v7 = vld [vmem:[#allocation5 + $0x17c8] sm:$0xff]  ;;  %1874 = vmatpush.msra.mxu2 %v980_v6 }
 0x18e   : > { %v848_v8 = vld [vmem:[#allocation5 + $0x1188] sm:$0xff]  ;;  %1893 = vmatpush.msra.mxu3 %v1048_v7 }
 0x18f   : > { %v912_v9 = vld [vmem:[#allocation5 + $0x1388] sm:$0xff]  ;;  %1835 = vmatpush.msra.mxu0 %v848_v8  ;;  %v3006_v8 = vld.sshfl [vmem:[#allocation1] sm:$0xff pattern:$0x73625140] }
 0x190   : > { %v976_v10 = vld [vmem:[#allocation5 + $0x1588] sm:$0xff]  ;;  %1855 = vmatpush.msra.mxu1 %v912_v9 }
 0x191   : > { %v1044_v11 = vld [vmem:[#allocation5 + $0x17a8] sm:$0xff]  ;;  %1875 = vmatpush.msra.mxu2 %v976_v10 }
 0x192   : > { %v844_v12 = vld [vmem:[#allocation5 + $0x1168] sm:$0xff]  ;;  %1894 = vmatpush.msra.mxu3 %v1044_v11 }
 0x193   : > { %v908_v13 = vld [vmem:[#allocation5 + $0x1368] sm:$0xff]  ;;  %1836 = vmatpush.msra.mxu0 %v844_v12 }
 0x194   : > { %v972_v14 = vld [vmem:[#allocation5 + $0x1568] sm:$0xff]  ;;  %1856 = vmatpush.msra.mxu1 %v908_v13 }
 0x195   : > { %v1040_v15 = vld [vmem:[#allocation5 + $0x1788] sm:$0xff]  ;;  %1876 = vmatpush.msra.mxu2 %v972_v14  ;;  %v3008_v14 = vld.sshfl [vmem:[#allocation1 + $0x8] sm:$0xff pattern:$0x73625140] }
 0x196   : > { %v840_v16 = vld [vmem:[#allocation5 + $0x1148] sm:$0xff]  ;;  %1895 = vmatpush.msra.mxu3 %v1040_v15  ;;  %v3009_v15 = vld.sshfl [vmem:[#allocation1 + $0x18] sm:$0xff pattern:$0x73625140] }
 0x197   : > { %v904_v17 = vld [vmem:[#allocation5 + $0x1348] sm:$0xff]  ;;  %1837 = vmatpush.msra.mxu0 %v840_v16 }
 0x198   : > { %v968_v18 = vld [vmem:[#allocation5 + $0x1548] sm:$0xff]  ;;  %1857 = vmatpush.msra.mxu1 %v904_v17 }
 0x199   : > { %v1036_v19 = vld [vmem:[#allocation5 + $0x1768] sm:$0xff]  ;;  %1877 = vmatpush.msra.mxu2 %v968_v18 }
 0x19a   : > { %v836_v20 = vld [vmem:[#allocation5 + $0x1128] sm:$0xff]  ;;  %1896 = vmatpush.msra.mxu3 %v1036_v19 }
 0x19b   : > { %v900_v21 = vld [vmem:[#allocation5 + $0x1328] sm:$0xff]  ;;  %1838 = vmatpush.msra.mxu0 %v836_v20 }
 0x19c   : > { %v964_v22 = vld [vmem:[#allocation5 + $0x1528] sm:$0xff]  ;;  %1858 = vmatpush.msra.mxu1 %v900_v21 }
 0x19d   : > { %v1032_v23 = vld [vmem:[#allocation5 + $0x1748] sm:$0xff]  ;;  %1878 = vmatpush.msra.mxu2 %v964_v22 }
 0x19e   : > { %v832_v24 = vld [vmem:[#allocation5 + $0x1108] sm:$0xff]  ;;  %1897 = vmatpush.msra.mxu3 %v1032_v23 }
 0x19f   : > { %v896_v25 = vld [vmem:[#allocation5 + $0x1308] sm:$0xff]  ;;  %1839 = vmatpush.msra.mxu0 %v832_v24 }
 0x1a0   : > { %v960_v26 = vld [vmem:[#allocation5 + $0x1508] sm:$0xff]  ;;  %1859 = vmatpush.msra.mxu1 %v896_v25 }
 0x1a1   : > { %v1028_v27 = vld [vmem:[#allocation5 + $0x1728] sm:$0xff]  ;;  %1879 = vmatpush.msra.mxu2 %v960_v26 }
 0x1a2   : > { %v828_v28 = vld [vmem:[#allocation5 + $0x10e8] sm:$0xff]  ;;  %1898 = vmatpush.msra.mxu3 %v1028_v27 }
 0x1a3   : > { %v892_v29 = vld [vmem:[#allocation5 + $0x12e8] sm:$0xff]  ;;  %1840 = vmatpush.msra.mxu0 %v828_v28 }
 0x1a4   : > { %v956_v30 = vld [vmem:[#allocation5 + $0x14e8] sm:$0xff]  ;;  %1860 = vmatpush.msra.mxu1 %v892_v29 }
 0x1a5   : > { %v1024_v31 = vld [vmem:[#allocation5 + $0x1708] sm:$0xff]  ;;  %1880 = vmatpush.msra.mxu2 %v956_v30 }
 0x1a6   : > { %v824_v32 = vld [vmem:[#allocation5 + $0x10c8] sm:$0xff]  ;;  %1899 = vmatpush.msra.mxu3 %v1024_v31 }
 0x1a7   : > { %v888_v33 = vld [vmem:[#allocation5 + $0x12c8] sm:$0xff]  ;;  %1841 = vmatpush.msra.mxu0 %v824_v32 }
 0x1a8   : > { %v952_v34 = vld [vmem:[#allocation5 + $0x14c8] sm:$0xff]  ;;  %1861 = vmatpush.msra.mxu1 %v888_v33 }
 0x1a9   : > { %v1020_v35 = vld [vmem:[#allocation5 + $0x16e8] sm:$0xff]  ;;  %1881 = vmatpush.msra.mxu2 %v952_v34 }
 0x1aa   : > { %v820_v36 = vld [vmem:[#allocation5 + $0x10a8] sm:$0xff]  ;;  %1900 = vmatpush.msra.mxu3 %v1020_v35 }
 0x1ab   : > { %v884_v37 = vld [vmem:[#allocation5 + $0x12a8] sm:$0xff]  ;;  %1842 = vmatpush.msra.mxu0 %v820_v36 }
 0x1ac   : > { %v948_v38 = vld [vmem:[#allocation5 + $0x14a8] sm:$0xff]  ;;  %1862 = vmatpush.msra.mxu1 %v884_v37 }
 0x1ad   : > { %v1016_v39 = vld [vmem:[#allocation5 + $0x16c8] sm:$0xff]  ;;  %1882 = vmatpush.msra.mxu2 %v948_v38 }
 0x1ae   : > { %v816_v40 = vld [vmem:[#allocation5 + $0x1088] sm:$0xff]  ;;  %1901 = vmatpush.msra.mxu3 %v1016_v39 }
 0x1af   : > { %v880_v41 = vld [vmem:[#allocation5 + $0x1288] sm:$0xff]  ;;  %1843 = vmatpush.msra.mxu0 %v816_v40 }
 0x1b0   : > { %v944_v42 = vld [vmem:[#allocation5 + $0x1488] sm:$0xff]  ;;  %1863 = vmatpush.msra.mxu1 %v880_v41 }
 0x1b1   : > { %v1012_v43 = vld [vmem:[#allocation5 + $0x16a8] sm:$0xff]  ;;  %1883 = vmatpush.msra.mxu2 %v944_v42 }
 0x1b2   : > { %v812_v44 = vld [vmem:[#allocation5 + $0x1068] sm:$0xff]  ;;  %1902 = vmatpush.msra.mxu3 %v1012_v43 }
 0x1b3   : > { %v876_v45 = vld [vmem:[#allocation5 + $0x1268] sm:$0xff]  ;;  %1844 = vmatpush.msra.mxu0 %v812_v44 }
 0x1b4   : > { %v940_v50 = vld [vmem:[#allocation5 + $0x1468] sm:$0xff]  ;;  %1864 = vmatpush.msra.mxu1 %v876_v45 }
 0x1b5   : > { %v1008_v51 = vld [vmem:[#allocation5 + $0x1688] sm:$0xff]  ;;  %1884 = vmatpush.msra.mxu2 %v940_v50 }
 0x1b6   : > { %v808_v52 = vld [vmem:[#allocation5 + $0x1048] sm:$0xff]  ;;  %1903 = vmatpush.msra.mxu3 %v1008_v51 }
 0x1b7   : > { %v872_v53 = vld [vmem:[#allocation5 + $0x1248] sm:$0xff]  ;;  %1845 = vmatpush.msra.mxu0 %v808_v52 }
 0x1b8   : > { %v936_v54 = vld [vmem:[#allocation5 + $0x1448] sm:$0xff]  ;;  %1865 = vmatpush.msra.mxu1 %v872_v53 }
 0x1b9   : > { %v1004_v55 = vld [vmem:[#allocation5 + $0x1668] sm:$0xff]  ;;  %1885 = vmatpush.msra.mxu2 %v936_v54 }
 0x1ba   : > { %v804_v56 = vld [vmem:[#allocation5 + $0x1028] sm:$0xff]  ;;  %1904 = vmatpush.msra.mxu3 %v1004_v55 }
 0x1bb   : > { %v868_v57 = vld [vmem:[#allocation5 + $0x1228] sm:$0xff]  ;;  %1846 = vmatpush.msra.mxu0 %v804_v56 }
 0x1bc   : > { %v932_v58 = vld [vmem:[#allocation5 + $0x1428] sm:$0xff]  ;;  %1866 = vmatpush.msra.mxu1 %v868_v57 }
 0x1bd   : > { %v1000_v59 = vld [vmem:[#allocation5 + $0x1648] sm:$0xff]  ;;  %1886 = vmatpush.msra.mxu2 %v932_v58 }
 0x1be   : > { %v800_v60 = vld [vmem:[#allocation5 + $0x1008] sm:$0xff]  ;;  %1905 = vmatpush.msra.mxu3 %v1000_v59 }
 0x1bf   : > { %v864_v61 = vld [vmem:[#allocation5 + $0x1208] sm:$0xff]  ;;  %1847 = vmatpush.msra.mxu0 %v800_v60 }
 0x1c0   : > { %v928_v2 = vld [vmem:[#allocation5 + $0x1408] sm:$0xff]  ;;  %1867 = vmatpush.msra.mxu1 %v864_v61  ;;  %1848 = vmatmul.f32.vlgmr.msra.gmra.mxu0 %v3006_v8 }
 0x1c1   : > { %v996_v3 = vld [vmem:[#allocation5 + $0x1628] sm:$0xff]  ;;  %1887 = vmatpush.msra.mxu2 %v928_v2  ;;  %1868 = vmatmul.f32.vlgmr.msra.gmra.mxu1 %v3008_v14 }
 0x1c2   : > { %v1116_v4 = vld [vmem:[#allocation5 + $0x19e8] sm:$0xff]  ;;  %1906 = vmatpush.msra.mxu3 %v996_v3 }
 0x1c3   : > { %v1180_v5 = vld [vmem:[#allocation5 + $0x1be8] sm:$0xff]  ;;  %1912 = vmatpush.msrb.mxu0 %v1116_v4 }
 0x1c4   : > { %v1244_v6 = vld [vmem:[#allocation5 + $0x1de8] sm:$0xff]  ;;  %1932 = vmatpush.msrb.mxu1 %v1180_v5 }
 0x1c5   : > { %v992_v7 = vld [vmem:[#allocation5 + $0x1608] sm:$0xff]  ;;  %1952 = vmatpush.msrb.mxu2 %v1244_v6 }
 0x1c6   : > { %v3007_v9 = vld.sshfl [vmem:[#allocation1 + $0x10] sm:$0xff pattern:$0x73625140]  ;;  %1907 = vmatpush.msra.mxu3 %v992_v7 }
 0x1c7   : > { %1888 = vmatmul.f32.vlgmr.msra.gmra.mxu2 %v3007_v9  ;;  %v1112_v10 = vld [vmem:[#allocation5 + $0x19c8] sm:$0xff]  ;;  %1908 = vmatmul.f32.vlgmr.msra.gmra.mxu3 %v3009_v15 }
 0x1c8   : > { %v1176_v11 = vld [vmem:[#allocation5 + $0x1bc8] sm:$0xff]  ;;  %1913 = vmatpush.msrb.mxu0 %v1112_v10 }
 0x1c9   : > { %v1240_v12 = vld [vmem:[#allocation5 + $0x1dc8] sm:$0xff]  ;;  %1933 = vmatpush.msrb.mxu1 %v1176_v11 }
 0x1ca   : > { %v1308_v13 = vld [vmem:[#allocation5 + $0x1fe8] sm:$0xff]  ;;  %1953 = vmatpush.msrb.mxu2 %v1240_v12 }
 0x1cb   : > { %v1108_v16 = vld [vmem:[#allocation5 + $0x19a8] sm:$0xff]  ;;  %1972 = vmatpush.msrb.mxu3 %v1308_v13 }
 0x1cc   : > { %v1172_v17 = vld [vmem:[#allocation5 + $0x1ba8] sm:$0xff]  ;;  %1914 = vmatpush.msrb.mxu0 %v1108_v16  ;;  %v349_v16 = vld [vmem:[#allocation5 + $0x1f0] sm:$0xff] }
 0x1cd   : > { %v1236_v18 = vld [vmem:[#allocation5 + $0x1da8] sm:$0xff]  ;;  %1934 = vmatpush.msrb.mxu1 %v1172_v17  ;;  %v413_v17 = vld [vmem:[#allocation5 + $0x3f0] sm:$0xff] }
 0x1ce   : > { %v1304_v19 = vld [vmem:[#allocation5 + $0x1fc8] sm:$0xff]  ;;  %1954 = vmatpush.msrb.mxu2 %v1236_v18  ;;  %v477_v18 = vld [vmem:[#allocation5 + $0x5f0] sm:$0xff] }
 0x1cf   : > { %v1104_v20 = vld [vmem:[#allocation5 + $0x1988] sm:$0xff]  ;;  %1973 = vmatpush.msrb.mxu3 %v1304_v19 }
 0x1d0   : > { %v1168_v21 = vld [vmem:[#allocation5 + $0x1b88] sm:$0xff]  ;;  %1915 = vmatpush.msrb.mxu0 %v1104_v20  ;;  %v3010_v20 = vld.sshfl [vmem:[#allocation1 + $0x20] sm:$0xff pattern:$0x73625140] }
 0x1d1   : > { %v1232_v22 = vld [vmem:[#allocation5 + $0x1d88] sm:$0xff]  ;;  %1935 = vmatpush.msrb.mxu1 %v1168_v21 }
 0x1d2   : > { %v1300_v23 = vld [vmem:[#allocation5 + $0x1fa8] sm:$0xff]  ;;  %1955 = vmatpush.msrb.mxu2 %v1232_v22  ;;  %v345_v22 = vld [vmem:[#allocation5 + $0x1d0] sm:$0xff] }
 0x1d3   : > { %v1100_v24 = vld [vmem:[#allocation5 + $0x1968] sm:$0xff]  ;;  %1974 = vmatpush.msrb.mxu3 %v1300_v23  ;;  %v409_v23 = vld [vmem:[#allocation5 + $0x3d0] sm:$0xff] }
 0x1d4   : > { %v1164_v25 = vld [vmem:[#allocation5 + $0x1b68] sm:$0xff]  ;;  %1916 = vmatpush.msrb.mxu0 %v1100_v24  ;;  %v473_v24 = vld [vmem:[#allocation5 + $0x5d0] sm:$0xff] }
 0x1d5   : > { %v1228_v26 = vld [vmem:[#allocation5 + $0x1d68] sm:$0xff]  ;;  %1936 = vmatpush.msrb.mxu1 %v1164_v25  ;;  %v541_v25 = vld [vmem:[#allocation5 + $0x7f0] sm:$0xff] }
 0x1d6   : > { %v1296_v27 = vld [vmem:[#allocation5 + $0x1f88] sm:$0xff]  ;;  %1956 = vmatpush.msrb.mxu2 %v1228_v26  ;;  %v3012_v26 = vld.sshfl [vmem:[#allocation1 + $0x28] sm:$0xff pattern:$0x73625140] }
 0x1d7   : > { %v1096_v28 = vld [vmem:[#allocation5 + $0x1948] sm:$0xff]  ;;  %1975 = vmatpush.msrb.mxu3 %v1296_v27  ;;  %v3013_v27 = vld.sshfl [vmem:[#allocation1 + $0x38] sm:$0xff pattern:$0x73625140] }
 0x1d8   : > { %v1160_v29 = vld [vmem:[#allocation5 + $0x1b48] sm:$0xff]  ;;  %1917 = vmatpush.msrb.mxu0 %v1096_v28  ;;  %v341_v28 = vld [vmem:[#allocation5 + $0x1b0] sm:$0xff] }
 0x1d9   : > { %v1224_v30 = vld [vmem:[#allocation5 + $0x1d48] sm:$0xff]  ;;  %1937 = vmatpush.msrb.mxu1 %v1160_v29  ;;  %v405_v29 = vld [vmem:[#allocation5 + $0x3b0] sm:$0xff] }
 0x1da   : > { %v1292_v31 = vld [vmem:[#allocation5 + $0x1f68] sm:$0xff]  ;;  %1957 = vmatpush.msrb.mxu2 %v1224_v30  ;;  %v469_v30 = vld [vmem:[#allocation5 + $0x5b0] sm:$0xff] }
 0x1db   : > { %v1092_v32 = vld [vmem:[#allocation5 + $0x1928] sm:$0xff]  ;;  %1976 = vmatpush.msrb.mxu3 %v1292_v31  ;;  %v537_v31 = vld [vmem:[#allocation5 + $0x7d0] sm:$0xff] }
 0x1dc   : > { %v1156_v33 = vld [vmem:[#allocation5 + $0x1b28] sm:$0xff]  ;;  %1918 = vmatpush.msrb.mxu0 %v1092_v32  ;;  %v337_v32 = vld [vmem:[#allocation5 + $0x190] sm:$0xff] }
 0x1dd   : > { %v1220_v34 = vld [vmem:[#allocation5 + $0x1d28] sm:$0xff]  ;;  %1938 = vmatpush.msrb.mxu1 %v1156_v33  ;;  %v401_v33 = vld [vmem:[#allocation5 + $0x390] sm:$0xff] }
 0x1de   : > { %v1288_v35 = vld [vmem:[#allocation5 + $0x1f48] sm:$0xff]  ;;  %1958 = vmatpush.msrb.mxu2 %v1220_v34  ;;  %v465_v34 = vld [vmem:[#allocation5 + $0x590] sm:$0xff] }
 0x1df   : > { %v1088_v36 = vld [vmem:[#allocation5 + $0x1908] sm:$0xff]  ;;  %1977 = vmatpush.msrb.mxu3 %v1288_v35  ;;  %v533_v35 = vld [vmem:[#allocation5 + $0x7b0] sm:$0xff] }
 0x1e0   : > { %v1152_v37 = vld [vmem:[#allocation5 + $0x1b08] sm:$0xff]  ;;  %1919 = vmatpush.msrb.mxu0 %v1088_v36  ;;  %v333_v36 = vld [vmem:[#allocation5 + $0x170] sm:$0xff] }
 0x1e1   : > { %v1216_v38 = vld [vmem:[#allocation5 + $0x1d08] sm:$0xff]  ;;  %1939 = vmatpush.msrb.mxu1 %v1152_v37  ;;  %v397_v37 = vld [vmem:[#allocation5 + $0x370] sm:$0xff] }
 0x1e2   : > { %v1284_v39 = vld [vmem:[#allocation5 + $0x1f28] sm:$0xff]  ;;  %1959 = vmatpush.msrb.mxu2 %v1216_v38  ;;  %v461_v38 = vld [vmem:[#allocation5 + $0x570] sm:$0xff] }
 0x1e3   : > { %v1084_v40 = vld [vmem:[#allocation5 + $0x18e8] sm:$0xff]  ;;  %1978 = vmatpush.msrb.mxu3 %v1284_v39  ;;  %v529_v39 = vld [vmem:[#allocation5 + $0x790] sm:$0xff] }
 0x1e4   : > { %v1148_v41 = vld [vmem:[#allocation5 + $0x1ae8] sm:$0xff]  ;;  %1920 = vmatpush.msrb.mxu0 %v1084_v40  ;;  %v329_v40 = vld [vmem:[#allocation5 + $0x150] sm:$0xff] }
 0x1e5   : > { %v1212_v42 = vld [vmem:[#allocation5 + $0x1ce8] sm:$0xff]  ;;  %1940 = vmatpush.msrb.mxu1 %v1148_v41  ;;  %v393_v41 = vld [vmem:[#allocation5 + $0x350] sm:$0xff] }
 0x1e6   : > { %v1280_v43 = vld [vmem:[#allocation5 + $0x1f08] sm:$0xff]  ;;  %1960 = vmatpush.msrb.mxu2 %v1212_v42  ;;  %v457_v42 = vld [vmem:[#allocation5 + $0x550] sm:$0xff] }
 0x1e7   : > { %v1080_v44 = vld [vmem:[#allocation5 + $0x18c8] sm:$0xff]  ;;  %1979 = vmatpush.msrb.mxu3 %v1280_v43  ;;  %v525_v43 = vld [vmem:[#allocation5 + $0x770] sm:$0xff] }
 0x1e8   : > { %v1144_v45 = vld [vmem:[#allocation5 + $0x1ac8] sm:$0xff]  ;;  %1921 = vmatpush.msrb.mxu0 %v1080_v44  ;;  %v325_v44 = vld [vmem:[#allocation5 + $0x130] sm:$0xff] }
 0x1e9   : > { %v1208_v50 = vld [vmem:[#allocation5 + $0x1cc8] sm:$0xff]  ;;  %1941 = vmatpush.msrb.mxu1 %v1144_v45  ;;  %v389_v45 = vld [vmem:[#allocation5 + $0x330] sm:$0xff] }
 0x1ea   : > { %v1276_v51 = vld [vmem:[#allocation5 + $0x1ee8] sm:$0xff]  ;;  %1961 = vmatpush.msrb.mxu2 %v1208_v50  ;;  %v453_v50 = vld [vmem:[#allocation5 + $0x530] sm:$0xff] }
 0x1eb   : > { %v1076_v52 = vld [vmem:[#allocation5 + $0x18a8] sm:$0xff]  ;;  %1980 = vmatpush.msrb.mxu3 %v1276_v51  ;;  %v521_v51 = vld [vmem:[#allocation5 + $0x750] sm:$0xff] }
 0x1ec   : > { %v1140_v53 = vld [vmem:[#allocation5 + $0x1aa8] sm:$0xff]  ;;  %1922 = vmatpush.msrb.mxu0 %v1076_v52  ;;  %v321_v52 = vld [vmem:[#allocation5 + $0x110] sm:$0xff] }
 0x1ed   : > { %v1204_v54 = vld [vmem:[#allocation5 + $0x1ca8] sm:$0xff]  ;;  %1942 = vmatpush.msrb.mxu1 %v1140_v53  ;;  %v385_v53 = vld [vmem:[#allocation5 + $0x310] sm:$0xff] }
 0x1ee   : > { %v1272_v55 = vld [vmem:[#allocation5 + $0x1ec8] sm:$0xff]  ;;  %1962 = vmatpush.msrb.mxu2 %v1204_v54  ;;  %v449_v54 = vld [vmem:[#allocation5 + $0x510] sm:$0xff] }
 0x1ef   : > { %v1072_v56 = vld [vmem:[#allocation5 + $0x1888] sm:$0xff]  ;;  %1981 = vmatpush.msrb.mxu3 %v1272_v55  ;;  %v517_v55 = vld [vmem:[#allocation5 + $0x730] sm:$0xff] }
 0x1f0   : > { %v1136_v57 = vld [vmem:[#allocation5 + $0x1a88] sm:$0xff]  ;;  %1923 = vmatpush.msrb.mxu0 %v1072_v56  ;;  %v317_v56 = vld [vmem:[#allocation5 + $0xf0] sm:$0xff] }
 0x1f1   : > { %v1200_v58 = vld [vmem:[#allocation5 + $0x1c88] sm:$0xff]  ;;  %1943 = vmatpush.msrb.mxu1 %v1136_v57  ;;  %v381_v57 = vld [vmem:[#allocation5 + $0x2f0] sm:$0xff] }
 0x1f2   : > { %v1268_v59 = vld [vmem:[#allocation5 + $0x1ea8] sm:$0xff]  ;;  %1963 = vmatpush.msrb.mxu2 %v1200_v58  ;;  %v445_v58 = vld [vmem:[#allocation5 + $0x4f0] sm:$0xff] }
 0x1f3   : > { %v1068_v60 = vld [vmem:[#allocation5 + $0x1868] sm:$0xff]  ;;  %1982 = vmatpush.msrb.mxu3 %v1268_v59  ;;  %v513_v59 = vld [vmem:[#allocation5 + $0x710] sm:$0xff] }
 0x1f4   : > { %v1132_v61 = vld [vmem:[#allocation5 + $0x1a68] sm:$0xff]  ;;  %1924 = vmatpush.msrb.mxu0 %v1068_v60  ;;  %v313_v60 = vld [vmem:[#allocation5 + $0xd0] sm:$0xff] }
 0x1f5   : > { %v1196_v2 = vld [vmem:[#allocation5 + $0x1c68] sm:$0xff]  ;;  %1944 = vmatpush.msrb.mxu1 %v1132_v61  ;;  %v377_v61 = vld [vmem:[#allocation5 + $0x2d0] sm:$0xff] }
 0x1f6   : > { %v1264_v3 = vld [vmem:[#allocation5 + $0x1e88] sm:$0xff]  ;;  %1964 = vmatpush.msrb.mxu2 %v1196_v2  ;;  %v441_v2 = vld [vmem:[#allocation5 + $0x4d0] sm:$0xff] }
 0x1f7   : > { %v1064_v4 = vld [vmem:[#allocation5 + $0x1848] sm:$0xff]  ;;  %1983 = vmatpush.msrb.mxu3 %v1264_v3  ;;  %v509_v3 = vld [vmem:[#allocation5 + $0x6f0] sm:$0xff] }
 0x1f8   : > { %v1128_v5 = vld [vmem:[#allocation5 + $0x1a48] sm:$0xff]  ;;  %1925 = vmatpush.msrb.mxu0 %v1064_v4  ;;  %v309_v4 = vld [vmem:[#allocation5 + $0xb0] sm:$0xff] }
 0x1f9   : > { %v1192_v6 = vld [vmem:[#allocation5 + $0x1c48] sm:$0xff]  ;;  %1945 = vmatpush.msrb.mxu1 %v1128_v5  ;;  %v373_v5 = vld [vmem:[#allocation5 + $0x2b0] sm:$0xff] }
 0x1fa   : > { %v1260_v7 = vld [vmem:[#allocation5 + $0x1e68] sm:$0xff]  ;;  %1965 = vmatpush.msrb.mxu2 %v1192_v6  ;;  %v437_v6 = vld [vmem:[#allocation5 + $0x4b0] sm:$0xff] }
 0x1fb   : > { %v1060_v8 = vld [vmem:[#allocation5 + $0x1828] sm:$0xff]  ;;  %1984 = vmatpush.msrb.mxu3 %v1260_v7  ;;  %v505_v7 = vld [vmem:[#allocation5 + $0x6d0] sm:$0xff] }
 0x1fc   : > { %v1124_v9 = vld [vmem:[#allocation5 + $0x1a28] sm:$0xff]  ;;  %1926 = vmatpush.msrb.mxu0 %v1060_v8  ;;  %v305_v8 = vld [vmem:[#allocation5 + $0x90] sm:$0xff] }
 0x1fd   : > { %v1188_v10 = vld [vmem:[#allocation5 + $0x1c28] sm:$0xff]  ;;  %1946 = vmatpush.msrb.mxu1 %v1124_v9  ;;  %v369_v9 = vld [vmem:[#allocation5 + $0x290] sm:$0xff] }
 0x1fe   : > { %v1256_v11 = vld [vmem:[#allocation5 + $0x1e48] sm:$0xff]  ;;  %1966 = vmatpush.msrb.mxu2 %v1188_v10  ;;  %v433_v10 = vld [vmem:[#allocation5 + $0x490] sm:$0xff] }
 0x1ff   : > { %v1056_v12 = vld [vmem:[#allocation5 + $0x1808] sm:$0xff]  ;;  %1985 = vmatpush.msrb.mxu3 %v1256_v11  ;;  %v501_v11 = vld [vmem:[#allocation5 + $0x6b0] sm:$0xff] }
 0x200   : > { %v1120_v13 = vld [vmem:[#allocation5 + $0x1a08] sm:$0xff]  ;;  %1927 = vmatpush.msrb.mxu0 %v1056_v12  ;;  %v301_v12 = vld [vmem:[#allocation5 + $0x70] sm:$0xff] }
 0x201   : > { %v1184_v14 = vld [vmem:[#allocation5 + $0x1c08] sm:$0xff]  ;;  %1947 = vmatpush.msrb.mxu1 %v1120_v13  ;;  %1928 = vmatmul.f32.vlgmr.msrb.gmra.mxu0 %v3010_v20  ;;  %v365_v13 = vld [vmem:[#allocation5 + $0x270] sm:$0xff] }
 0x202   : > { %v1252_v15 = vld [vmem:[#allocation5 + $0x1e28] sm:$0xff]  ;;  %1967 = vmatpush.msrb.mxu2 %v1184_v14  ;;  %1992 = vmatpush.msra.mxu0 %v349_v16  ;;  %v429_v14 = vld [vmem:[#allocation5 + $0x470] sm:$0xff] }
 0x203   : > { %1986 = vmatpush.msrb.mxu3 %v1252_v15  ;;  %v1248_v19 = vld [vmem:[#allocation5 + $0x1e08] sm:$0xff]  ;;  %2012 = vmatpush.msra.mxu1 %v413_v17  ;;  %v497_v15 = vld [vmem:[#allocation5 + $0x690] sm:$0xff] }
 0x204   : > { %v3011_v21 = vld.sshfl [vmem:[#allocation1 + $0x30] sm:$0xff pattern:$0x73625140]  ;;  %2032 = vmatpush.msra.mxu2 %v477_v18  ;;  %1948 = vmatmul.f32.vlgmr.msrb.gmra.mxu1 %v3012_v26  ;;  %v297_v16 = vld [vmem:[#allocation5 + $0x50] sm:$0xff] }
 0x205   : > { %1968 = vmatmul.f32.vlgmr.msrb.gmra.mxu2 %v3011_v21  ;;  %1987 = vmatpush.msrb.mxu3 %v1248_v19  ;;  %v361_v17 = vld [vmem:[#allocation5 + $0x250] sm:$0xff] }
 0x206   : > { %1988 = vmatmul.f32.vlgmr.msrb.gmra.mxu3 %v3013_v27  ;;  %1993 = vmatpush.msra.mxu0 %v345_v22  ;;  %v425_v18 = vld [vmem:[#allocation5 + $0x450] sm:$0xff] }
 0x207   : > { %2013 = vmatpush.msra.mxu1 %v409_v23  ;;  %2033 = vmatpush.msra.mxu2 %v473_v24  ;;  %v493_v19 = vld [vmem:[#allocation5 + $0x670] sm:$0xff] }
 0x208   : > { %2052 = vmatpush.msra.mxu3 %v541_v25  ;;  %1994 = vmatpush.msra.mxu0 %v341_v28  ;;  %v293_v20 = vld [vmem:[#allocation5 + $0x30] sm:$0xff] }
 0x209   : > { %2014 = vmatpush.msra.mxu1 %v405_v29  ;;  %2034 = vmatpush.msra.mxu2 %v469_v30  ;;  %v357_v21 = vld [vmem:[#allocation5 + $0x230] sm:$0xff] }
 0x20a   : > { %2053 = vmatpush.msra.mxu3 %v537_v31  ;;  %1995 = vmatpush.msra.mxu0 %v337_v32  ;;  %v421_v22 = vld [vmem:[#allocation5 + $0x430] sm:$0xff] }
 0x20b   : > { %2015 = vmatpush.msra.mxu1 %v401_v33  ;;  %2035 = vmatpush.msra.mxu2 %v465_v34  ;;  %v489_v23 = vld [vmem:[#allocation5 + $0x650] sm:$0xff] }
 0x20c   : > { %2054 = vmatpush.msra.mxu3 %v533_v35  ;;  %1996 = vmatpush.msra.mxu0 %v333_v36  ;;  %v289_v24 = vld [vmem:[#allocation5 + $0x10] sm:$0xff] }
 0x20d   : > { %2016 = vmatpush.msra.mxu1 %v397_v37  ;;  %2036 = vmatpush.msra.mxu2 %v461_v38  ;;  %v353_v25 = vld [vmem:[#allocation5 + $0x210] sm:$0xff] }
 0x20e   : > { %2055 = vmatpush.msra.mxu3 %v529_v39  ;;  %1997 = vmatpush.msra.mxu0 %v329_v40  ;;  %v417_v26 = vld [vmem:[#allocation5 + $0x410] sm:$0xff] }
 0x20f   : > { %2017 = vmatpush.msra.mxu1 %v393_v41  ;;  %2037 = vmatpush.msra.mxu2 %v457_v42  ;;  %v485_v27 = vld [vmem:[#allocation5 + $0x630] sm:$0xff] }
 0x210   : > { %2056 = vmatpush.msra.mxu3 %v525_v43  ;;  %1998 = vmatpush.msra.mxu0 %v325_v44  ;;  %v605_v28 = vld [vmem:[#allocation5 + $0x9f0] sm:$0xff] }
 0x211   : > { %2018 = vmatpush.msra.mxu1 %v389_v45  ;;  %2038 = vmatpush.msra.mxu2 %v453_v50  ;;  %v669_v29 = vld [vmem:[#allocation5 + $0xbf0] sm:$0xff] }
 0x212   : > { %2057 = vmatpush.msra.mxu3 %v521_v51  ;;  %1999 = vmatpush.msra.mxu0 %v321_v52  ;;  %v733_v30 = vld [vmem:[#allocation5 + $0xdf0] sm:$0xff] }
 0x213   : > { %2019 = vmatpush.msra.mxu1 %v385_v53  ;;  %2039 = vmatpush.msra.mxu2 %v449_v54  ;;  %v481_v31 = vld [vmem:[#allocation5 + $0x610] sm:$0xff] }
 0x214   : > { %2058 = vmatpush.msra.mxu3 %v517_v55  ;;  %2000 = vmatpush.msra.mxu0 %v317_v56  ;;  %v601_v32 = vld [vmem:[#allocation5 + $0x9d0] sm:$0xff] }
 0x215   : > { %2020 = vmatpush.msra.mxu1 %v381_v57  ;;  %2040 = vmatpush.msra.mxu2 %v445_v58  ;;  %v665_v33 = vld [vmem:[#allocation5 + $0xbd0] sm:$0xff] }
 0x216   : > { %2059 = vmatpush.msra.mxu3 %v513_v59  ;;  %2001 = vmatpush.msra.mxu0 %v313_v60  ;;  %v729_v34 = vld [vmem:[#allocation5 + $0xdd0] sm:$0xff] }
 0x217   : > { %2021 = vmatpush.msra.mxu1 %v377_v61  ;;  %2041 = vmatpush.msra.mxu2 %v441_v2  ;;  %v797_v35 = vld [vmem:[#allocation5 + $0xff0] sm:$0xff] }
 0x218   : > { %2060 = vmatpush.msra.mxu3 %v509_v3  ;;  %2002 = vmatpush.msra.mxu0 %v309_v4  ;;  %v597_v36 = vld [vmem:[#allocation5 + $0x9b0] sm:$0xff] }
 0x219   : > { %2022 = vmatpush.msra.mxu1 %v373_v5  ;;  %2042 = vmatpush.msra.mxu2 %v437_v6  ;;  %v661_v37 = vld [vmem:[#allocation5 + $0xbb0] sm:$0xff] }
 0x21a   : > { %2061 = vmatpush.msra.mxu3 %v505_v7  ;;  %2003 = vmatpush.msra.mxu0 %v305_v8  ;;  %v725_v38 = vld [vmem:[#allocation5 + $0xdb0] sm:$0xff] }
 0x21b   : > { %2023 = vmatpush.msra.mxu1 %v369_v9  ;;  %2043 = vmatpush.msra.mxu2 %v433_v10  ;;  %v793_v39 = vld [vmem:[#allocation5 + $0xfd0] sm:$0xff] }
 0x21c   : > { %2062 = vmatpush.msra.mxu3 %v501_v11  ;;  %2004 = vmatpush.msra.mxu0 %v301_v12  ;;  %v593_v40 = vld [vmem:[#allocation5 + $0x990] sm:$0xff] }
 0x21d   : > { %2024 = vmatpush.msra.mxu1 %v365_v13  ;;  %2044 = vmatpush.msra.mxu2 %v429_v14  ;;  %v657_v41 = vld [vmem:[#allocation5 + $0xb90] sm:$0xff] }
 0x21e   : > { %2063 = vmatpush.msra.mxu3 %v497_v15  ;;  %2005 = vmatpush.msra.mxu0 %v297_v16  ;;  %v721_v42 = vld [vmem:[#allocation5 + $0xd90] sm:$0xff] }
 0x21f   : > { %2025 = vmatpush.msra.mxu1 %v361_v17  ;;  %2045 = vmatpush.msra.mxu2 %v425_v18  ;;  %v789_v43 = vld [vmem:[#allocation5 + $0xfb0] sm:$0xff] }
 0x220   : > { %2064 = vmatpush.msra.mxu3 %v493_v19  ;;  %2006 = vmatpush.msra.mxu0 %v293_v20  ;;  %v589_v44 = vld [vmem:[#allocation5 + $0x970] sm:$0xff] }
 0x221   : > { %2026 = vmatpush.msra.mxu1 %v357_v21  ;;  %2046 = vmatpush.msra.mxu2 %v421_v22  ;;  %v653_v45 = vld [vmem:[#allocation5 + $0xb70] sm:$0xff] }
 0x222   : > { %2065 = vmatpush.msra.mxu3 %v489_v23  ;;  %2007 = vmatpush.msra.mxu0 %v289_v24  ;;  %v717_v50 = vld [vmem:[#allocation5 + $0xd70] sm:$0xff] }
 0x223   : > { %2027 = vmatpush.msra.mxu1 %v353_v25  ;;  %2047 = vmatpush.msra.mxu2 %v417_v26  ;;  %v785_v51 = vld [vmem:[#allocation5 + $0xf90] sm:$0xff] }
 0x224   : > { %2066 = vmatpush.msra.mxu3 %v485_v27  ;;  %2072 = vmatpush.msrb.mxu0 %v605_v28  ;;  %v585_v52 = vld [vmem:[#allocation5 + $0x950] sm:$0xff] }
 0x225   : > { %2092 = vmatpush.msrb.mxu1 %v669_v29  ;;  %2112 = vmatpush.msrb.mxu2 %v733_v30  ;;  %v649_v53 = vld [vmem:[#allocation5 + $0xb50] sm:$0xff] }
 0x226   : > { %2067 = vmatpush.msra.mxu3 %v481_v31  ;;  %2073 = vmatpush.msrb.mxu0 %v601_v32  ;;  %v713_v54 = vld [vmem:[#allocation5 + $0xd50] sm:$0xff] }
 0x227   : > { %2093 = vmatpush.msrb.mxu1 %v665_v33  ;;  %2113 = vmatpush.msrb.mxu2 %v729_v34  ;;  %v781_v55 = vld [vmem:[#allocation5 + $0xf70] sm:$0xff] }
 0x228   : > { %2132 = vmatpush.msrb.mxu3 %v797_v35  ;;  %2074 = vmatpush.msrb.mxu0 %v597_v36  ;;  %v581_v56 = vld [vmem:[#allocation5 + $0x930] sm:$0xff] }
 0x229   : > { %2094 = vmatpush.msrb.mxu1 %v661_v37  ;;  %2114 = vmatpush.msrb.mxu2 %v725_v38  ;;  %v645_v57 = vld [vmem:[#allocation5 + $0xb30] sm:$0xff] }
 0x22a   : > { %2133 = vmatpush.msrb.mxu3 %v793_v39  ;;  %2075 = vmatpush.msrb.mxu0 %v593_v40  ;;  %v709_v58 = vld [vmem:[#allocation5 + $0xd30] sm:$0xff] }
 0x22b   : > { %2095 = vmatpush.msrb.mxu1 %v657_v41  ;;  %2115 = vmatpush.msrb.mxu2 %v721_v42  ;;  %v777_v59 = vld [vmem:[#allocation5 + $0xf50] sm:$0xff] }
 0x22c   : > { %2134 = vmatpush.msrb.mxu3 %v789_v43  ;;  %2076 = vmatpush.msrb.mxu0 %v589_v44  ;;  %v577_v60 = vld [vmem:[#allocation5 + $0x910] sm:$0xff] }
 0x22d   : > { %2096 = vmatpush.msrb.mxu1 %v653_v45  ;;  %2116 = vmatpush.msrb.mxu2 %v717_v50  ;;  %v641_v61 = vld [vmem:[#allocation5 + $0xb10] sm:$0xff] }
 0x22e   : > { %2135 = vmatpush.msrb.mxu3 %v785_v51  ;;  %2077 = vmatpush.msrb.mxu0 %v585_v52  ;;  %v705_v2 = vld [vmem:[#allocation5 + $0xd10] sm:$0xff] }
 0x22f   : > { %2097 = vmatpush.msrb.mxu1 %v649_v53  ;;  %2117 = vmatpush.msrb.mxu2 %v713_v54  ;;  %v773_v3 = vld [vmem:[#allocation5 + $0xf30] sm:$0xff] }
 0x230   : > { %2136 = vmatpush.msrb.mxu3 %v781_v55  ;;  %2078 = vmatpush.msrb.mxu0 %v581_v56  ;;  %v573_v4 = vld [vmem:[#allocation5 + $0x8f0] sm:$0xff] }
 0x231   : > { %2098 = vmatpush.msrb.mxu1 %v645_v57  ;;  %2118 = vmatpush.msrb.mxu2 %v709_v58  ;;  %v637_v5 = vld [vmem:[#allocation5 + $0xaf0] sm:$0xff] }
 0x232   : > { %2137 = vmatpush.msrb.mxu3 %v777_v59  ;;  %2079 = vmatpush.msrb.mxu0 %v577_v60  ;;  %v701_v6 = vld [vmem:[#allocation5 + $0xcf0] sm:$0xff] }
 0x233   : > { %2099 = vmatpush.msrb.mxu1 %v641_v61  ;;  %v769_v7 = vld [vmem:[#allocation5 + $0xf10] sm:$0xff]  ;;  %2119 = vmatpush.msrb.mxu2 %v705_v2 }
 0x234   : > { %2138 = vmatpush.msrb.mxu3 %v773_v3  ;;  %v569_v8 = vld [vmem:[#allocation5 + $0x8d0] sm:$0xff]  ;;  %2080 = vmatpush.msrb.mxu0 %v573_v4 }
 0x235   : > { %v633_v9 = vld [vmem:[#allocation5 + $0xad0] sm:$0xff]  ;;  %2100 = vmatpush.msrb.mxu1 %v637_v5  ;;  %2120 = vmatpush.msrb.mxu2 %v701_v6 }
 0x236   : > { %v697_v10 = vld [vmem:[#allocation5 + $0xcd0] sm:$0xff]  ;;  %2139 = vmatpush.msrb.mxu3 %v769_v7  ;;  %2081 = vmatpush.msrb.mxu0 %v569_v8 }
 0x237   : > { %v765_v11 = vld [vmem:[#allocation5 + $0xef0] sm:$0xff]  ;;  %2101 = vmatpush.msrb.mxu1 %v633_v9  ;;  %2121 = vmatpush.msrb.mxu2 %v697_v10 }
 0x238   : > { %v565_v12 = vld [vmem:[#allocation5 + $0x8b0] sm:$0xff]  ;;  %2140 = vmatpush.msrb.mxu3 %v765_v11  ;;  %2048 = vmatmul.f32.vlgmr.msra.gmra.mxu2 %v3394_v46 }
 0x239   : > { %v629_v13 = vld [vmem:[#allocation5 + $0xab0] sm:$0xff]  ;;  %2082 = vmatpush.msrb.mxu0 %v565_v12  ;;  %2028 = vmatmul.f32.vlgmr.msra.gmra.mxu1 %v3398_v48 }
 0x23a   : > { %v693_v14 = vld [vmem:[#allocation5 + $0xcb0] sm:$0xff]  ;;  %2102 = vmatpush.msrb.mxu1 %v629_v13  ;;  %2008 = vmatmul.f32.vlgmr.msra.gmra.mxu0 %v3396_v47 }
 0x23b   : > { %v761_v15 = vld [vmem:[#allocation5 + $0xed0] sm:$0xff]  ;;  %2122 = vmatpush.msrb.mxu2 %v693_v14  ;;  %2068 = vmatmul.f32.vlgmr.msra.gmra.mxu3 %v3400_v49 }
 0x23c   : > { %v561_v16 = vld [vmem:[#allocation5 + $0x890] sm:$0xff]  ;;  %2141 = vmatpush.msrb.mxu3 %v761_v15 }
 0x23d   : > { %v625_v17 = vld [vmem:[#allocation5 + $0xa90] sm:$0xff]  ;;  %2083 = vmatpush.msrb.mxu0 %v561_v16 }
 0x23e   : > { %v689_v18 = vld [vmem:[#allocation5 + $0xc90] sm:$0xff]  ;;  %2103 = vmatpush.msrb.mxu1 %v625_v17 }
 0x23f   : > { %v757_v19 = vld [vmem:[#allocation5 + $0xeb0] sm:$0xff]  ;;  %2123 = vmatpush.msrb.mxu2 %v689_v18 }
 0x240   : > { %v557_v20 = vld [vmem:[#allocation5 + $0x870] sm:$0xff]  ;;  %2142 = vmatpush.msrb.mxu3 %v757_v19 }
 0x241   : > { %v621_v21 = vld [vmem:[#allocation5 + $0xa70] sm:$0xff]  ;;  %2084 = vmatpush.msrb.mxu0 %v557_v20 }
 0x242   : > { %v685_v22 = vld [vmem:[#allocation5 + $0xc70] sm:$0xff]  ;;  %2104 = vmatpush.msrb.mxu1 %v621_v21 }
 0x243   : > { %v753_v23 = vld [vmem:[#allocation5 + $0xe90] sm:$0xff]  ;;  %2124 = vmatpush.msrb.mxu2 %v685_v22 }
 0x244   : > { %v553_v24 = vld [vmem:[#allocation5 + $0x850] sm:$0xff]  ;;  %2143 = vmatpush.msrb.mxu3 %v753_v23 }
 0x245   : > { %v617_v25 = vld [vmem:[#allocation5 + $0xa50] sm:$0xff]  ;;  %2085 = vmatpush.msrb.mxu0 %v553_v24 }
 0x246   : > { %v681_v26 = vld [vmem:[#allocation5 + $0xc50] sm:$0xff]  ;;  %2105 = vmatpush.msrb.mxu1 %v617_v25 }
 0x247   : > { %v749_v27 = vld [vmem:[#allocation5 + $0xe70] sm:$0xff]  ;;  %2125 = vmatpush.msrb.mxu2 %v681_v26 }
 0x248   : > { %v549_v28 = vld [vmem:[#allocation5 + $0x830] sm:$0xff]  ;;  %2144 = vmatpush.msrb.mxu3 %v749_v27 }
 0x249   : > { %v613_v29 = vld [vmem:[#allocation5 + $0xa30] sm:$0xff]  ;;  %2086 = vmatpush.msrb.mxu0 %v549_v28 }
 0x24a   : > { %v677_v30 = vld [vmem:[#allocation5 + $0xc30] sm:$0xff]  ;;  %2106 = vmatpush.msrb.mxu1 %v613_v29 }
 0x24b   : > { %v745_v31 = vld [vmem:[#allocation5 + $0xe50] sm:$0xff]  ;;  %2126 = vmatpush.msrb.mxu2 %v677_v30 }
 0x24c   : > { %v545_v32 = vld [vmem:[#allocation5 + $0x810] sm:$0xff]  ;;  %2145 = vmatpush.msrb.mxu3 %v745_v31 }
 0x24d   : > { %v609_v33 = vld [vmem:[#allocation5 + $0xa10] sm:$0xff]  ;;  %2087 = vmatpush.msrb.mxu0 %v545_v32 }
 0x24e   : > { %v673_v34 = vld [vmem:[#allocation5 + $0xc10] sm:$0xff]  ;;  %2107 = vmatpush.msrb.mxu1 %v609_v33  ;;  %2088 = vmatmul.f32.vlgmr.msrb.gmra.mxu0 %v3405_v63 }
 0x24f   : > { %v741_v35 = vld [vmem:[#allocation5 + $0xe30] sm:$0xff]  ;;  %2127 = vmatpush.msrb.mxu2 %v673_v34  ;;  %2108 = vmatmul.f32.vlgmr.msrb.gmra.mxu1 %v3409_v1 }
 0x250   : > { %v861_v36 = vld [vmem:[#allocation5 + $0x11f0] sm:$0xff]  ;;  %2146 = vmatpush.msrb.mxu3 %v741_v35  ;;  %2128 = vmatmul.f32.vlgmr.msrb.gmra.mxu2 %v3403_v62 }
 0x251   : > { %v925_v37 = vld [vmem:[#allocation5 + $0x13f0] sm:$0xff]  ;;  %2152 = vmatpush.msra.mxu0 %v861_v36 }
 0x252   : > { %v989_v38 = vld [vmem:[#allocation5 + $0x15f0] sm:$0xff]  ;;  %2172 = vmatpush.msra.mxu1 %v925_v37 }
 0x253   : > { %v737_v39 = vld [vmem:[#allocation5 + $0xe10] sm:$0xff]  ;;  %2192 = vmatpush.msra.mxu2 %v989_v38 }
 0x254   : > { %v857_v40 = vld [vmem:[#allocation5 + $0x11d0] sm:$0xff]  ;;  %2147 = vmatpush.msrb.mxu3 %v737_v39 }
 0x255   : > { %v921_v41 = vld [vmem:[#allocation5 + $0x13d0] sm:$0xff]  ;;  %2153 = vmatpush.msra.mxu0 %v857_v40  ;;  %2148 = vmatmul.f32.vlgmr.msrb.gmra.mxu3 %v3407_v0 }
 0x256   : > { %v985_v42 = vld [vmem:[#allocation5 + $0x15d0] sm:$0xff]  ;;  %2173 = vmatpush.msra.mxu1 %v921_v41 }
 0x257   : > { %v1053_v43 = vld [vmem:[#allocation5 + $0x17f0] sm:$0xff]  ;;  %2193 = vmatpush.msra.mxu2 %v985_v42 }
 0x258   : > { %v853_v44 = vld [vmem:[#allocation5 + $0x11b0] sm:$0xff]  ;;  %2212 = vmatpush.msra.mxu3 %v1053_v43 }
 0x259   : > { %v917_v45 = vld [vmem:[#allocation5 + $0x13b0] sm:$0xff]  ;;  %2154 = vmatpush.msra.mxu0 %v853_v44 }
 0x25a   : > { %v981_v50 = vld [vmem:[#allocation5 + $0x15b0] sm:$0xff]  ;;  %2174 = vmatpush.msra.mxu1 %v917_v45 }
 0x25b   : > { %v1049_v51 = vld [vmem:[#allocation5 + $0x17d0] sm:$0xff]  ;;  %2194 = vmatpush.msra.mxu2 %v981_v50 }
 0x25c   : > { %v849_v52 = vld [vmem:[#allocation5 + $0x1190] sm:$0xff]  ;;  %2213 = vmatpush.msra.mxu3 %v1049_v51 }
 0x25d   : > { %v913_v53 = vld [vmem:[#allocation5 + $0x1390] sm:$0xff]  ;;  %2155 = vmatpush.msra.mxu0 %v849_v52  ;;  %v3014_v52 = vld.sshfl [vmem:[#allocation1] sm:$0xff pattern:$0x73625140] }
 0x25e   : > { %v977_v54 = vld [vmem:[#allocation5 + $0x1590] sm:$0xff]  ;;  %2175 = vmatpush.msra.mxu1 %v913_v53  ;;  %v3015_v53 = vld.sshfl [vmem:[#allocation1 + $0x10] sm:$0xff pattern:$0x73625140] }
 0x25f   : > { %v1045_v55 = vld [vmem:[#allocation5 + $0x17b0] sm:$0xff]  ;;  %2195 = vmatpush.msra.mxu2 %v977_v54 }
 0x260   : > { %v845_v56 = vld [vmem:[#allocation5 + $0x1170] sm:$0xff]  ;;  %2214 = vmatpush.msra.mxu3 %v1045_v55 }
 0x261   : > { %v909_v57 = vld [vmem:[#allocation5 + $0x1370] sm:$0xff]  ;;  %2156 = vmatpush.msra.mxu0 %v845_v56 }
 0x262   : > { %v973_v58 = vld [vmem:[#allocation5 + $0x1570] sm:$0xff]  ;;  %2176 = vmatpush.msra.mxu1 %v909_v57 }
 0x263   : > { %v1041_v59 = vld [vmem:[#allocation5 + $0x1790] sm:$0xff]  ;;  %2196 = vmatpush.msra.mxu2 %v973_v58  ;;  %v3016_v58 = vld.sshfl [vmem:[#allocation1 + $0x8] sm:$0xff pattern:$0x73625140] }
 0x264   : > { %v841_v60 = vld [vmem:[#allocation5 + $0x1150] sm:$0xff]  ;;  %2215 = vmatpush.msra.mxu3 %v1041_v59 }
 0x265   : > { %v905_v61 = vld [vmem:[#allocation5 + $0x1350] sm:$0xff]  ;;  %2157 = vmatpush.msra.mxu0 %v841_v60 }
 0x266   : > { %v969_v2 = vld [vmem:[#allocation5 + $0x1550] sm:$0xff]  ;;  %2177 = vmatpush.msra.mxu1 %v905_v61 }
 0x267   : > { %v1037_v3 = vld [vmem:[#allocation5 + $0x1770] sm:$0xff]  ;;  %2197 = vmatpush.msra.mxu2 %v969_v2 }
 0x268   : > { %v837_v4 = vld [vmem:[#allocation5 + $0x1130] sm:$0xff]  ;;  %2216 = vmatpush.msra.mxu3 %v1037_v3 }
 0x269   : > { %v901_v5 = vld [vmem:[#allocation5 + $0x1330] sm:$0xff]  ;;  %2158 = vmatpush.msra.mxu0 %v837_v4 }
 0x26a   : > { %v965_v6 = vld [vmem:[#allocation5 + $0x1530] sm:$0xff]  ;;  %2178 = vmatpush.msra.mxu1 %v901_v5 }
 0x26b   : > { %v1033_v7 = vld [vmem:[#allocation5 + $0x1750] sm:$0xff]  ;;  %2198 = vmatpush.msra.mxu2 %v965_v6 }
 0x26c   : > { %v833_v8 = vld [vmem:[#allocation5 + $0x1110] sm:$0xff]  ;;  %2217 = vmatpush.msra.mxu3 %v1033_v7 }
 0x26d   : > { %v897_v9 = vld [vmem:[#allocation5 + $0x1310] sm:$0xff]  ;;  %2159 = vmatpush.msra.mxu0 %v833_v8 }
 0x26e   : > { %v961_v10 = vld [vmem:[#allocation5 + $0x1510] sm:$0xff]  ;;  %2179 = vmatpush.msra.mxu1 %v897_v9 }
 0x26f   : > { %v1029_v11 = vld [vmem:[#allocation5 + $0x1730] sm:$0xff]  ;;  %2199 = vmatpush.msra.mxu2 %v961_v10 }
 0x270   : > { %v829_v12 = vld [vmem:[#allocation5 + $0x10f0] sm:$0xff]  ;;  %2218 = vmatpush.msra.mxu3 %v1029_v11 }
 0x271   : > { %v893_v13 = vld [vmem:[#allocation5 + $0x12f0] sm:$0xff]  ;;  %2160 = vmatpush.msra.mxu0 %v829_v12 }
 0x272   : > { %v957_v14 = vld [vmem:[#allocation5 + $0x14f0] sm:$0xff]  ;;  %2180 = vmatpush.msra.mxu1 %v893_v13 }
 0x273   : > { %v1025_v15 = vld [vmem:[#allocation5 + $0x1710] sm:$0xff]  ;;  %2200 = vmatpush.msra.mxu2 %v957_v14 }
 0x274   : > { %v825_v16 = vld [vmem:[#allocation5 + $0x10d0] sm:$0xff]  ;;  %2219 = vmatpush.msra.mxu3 %v1025_v15 }
 0x275   : > { %v889_v17 = vld [vmem:[#allocation5 + $0x12d0] sm:$0xff]  ;;  %2161 = vmatpush.msra.mxu0 %v825_v16 }
 0x276   : > { %v953_v18 = vld [vmem:[#allocation5 + $0x14d0] sm:$0xff]  ;;  %2181 = vmatpush.msra.mxu1 %v889_v17 }
 0x277   : > { %v1021_v19 = vld [vmem:[#allocation5 + $0x16f0] sm:$0xff]  ;;  %2201 = vmatpush.msra.mxu2 %v953_v18 }
 0x278   : > { %v821_v20 = vld [vmem:[#allocation5 + $0x10b0] sm:$0xff]  ;;  %2220 = vmatpush.msra.mxu3 %v1021_v19 }
 0x279   : > { %v885_v21 = vld [vmem:[#allocation5 + $0x12b0] sm:$0xff]  ;;  %2162 = vmatpush.msra.mxu0 %v821_v20 }
 0x27a   : > { %v949_v22 = vld [vmem:[#allocation5 + $0x14b0] sm:$0xff]  ;;  %2182 = vmatpush.msra.mxu1 %v885_v21 }
 0x27b   : > { %v1017_v23 = vld [vmem:[#allocation5 + $0x16d0] sm:$0xff]  ;;  %2202 = vmatpush.msra.mxu2 %v949_v22 }
 0x27c   : > { %v817_v24 = vld [vmem:[#allocation5 + $0x1090] sm:$0xff]  ;;  %2221 = vmatpush.msra.mxu3 %v1017_v23 }
 0x27d   : > { %v881_v25 = vld [vmem:[#allocation5 + $0x1290] sm:$0xff]  ;;  %2163 = vmatpush.msra.mxu0 %v817_v24 }
 0x27e   : > { %v945_v26 = vld [vmem:[#allocation5 + $0x1490] sm:$0xff]  ;;  %2183 = vmatpush.msra.mxu1 %v881_v25 }
 0x27f   : > { %v1013_v27 = vld [vmem:[#allocation5 + $0x16b0] sm:$0xff]  ;;  %2203 = vmatpush.msra.mxu2 %v945_v26 }
 0x280   : > { %v813_v28 = vld [vmem:[#allocation5 + $0x1070] sm:$0xff]  ;;  %2222 = vmatpush.msra.mxu3 %v1013_v27 }
 0x281   : > { %v877_v29 = vld [vmem:[#allocation5 + $0x1270] sm:$0xff]  ;;  %2164 = vmatpush.msra.mxu0 %v813_v28 }
 0x282   : > { %v941_v30 = vld [vmem:[#allocation5 + $0x1470] sm:$0xff]  ;;  %2184 = vmatpush.msra.mxu1 %v877_v29 }
 0x283   : > { %v1009_v31 = vld [vmem:[#allocation5 + $0x1690] sm:$0xff]  ;;  %2204 = vmatpush.msra.mxu2 %v941_v30 }
 0x284   : > { %v809_v32 = vld [vmem:[#allocation5 + $0x1050] sm:$0xff]  ;;  %2223 = vmatpush.msra.mxu3 %v1009_v31 }
 0x285   : > { %v873_v33 = vld [vmem:[#allocation5 + $0x1250] sm:$0xff]  ;;  %2165 = vmatpush.msra.mxu0 %v809_v32 }
 0x286   : > { %v937_v34 = vld [vmem:[#allocation5 + $0x1450] sm:$0xff]  ;;  %2185 = vmatpush.msra.mxu1 %v873_v33 }
 0x287   : > { %v1005_v35 = vld [vmem:[#allocation5 + $0x1670] sm:$0xff]  ;;  %2205 = vmatpush.msra.mxu2 %v937_v34 }
 0x288   : > { %v805_v36 = vld [vmem:[#allocation5 + $0x1030] sm:$0xff]  ;;  %2224 = vmatpush.msra.mxu3 %v1005_v35 }
 0x289   : > { %v869_v37 = vld [vmem:[#allocation5 + $0x1230] sm:$0xff]  ;;  %2166 = vmatpush.msra.mxu0 %v805_v36 }
 0x28a   : > { %v933_v38 = vld [vmem:[#allocation5 + $0x1430] sm:$0xff]  ;;  %2186 = vmatpush.msra.mxu1 %v869_v37 }
 0x28b   : > { %v1001_v39 = vld [vmem:[#allocation5 + $0x1650] sm:$0xff]  ;;  %2206 = vmatpush.msra.mxu2 %v933_v38 }
 0x28c   : > { %v801_v40 = vld [vmem:[#allocation5 + $0x1010] sm:$0xff]  ;;  %2225 = vmatpush.msra.mxu3 %v1001_v39 }
 0x28d   : > { %v865_v41 = vld [vmem:[#allocation5 + $0x1210] sm:$0xff]  ;;  %2167 = vmatpush.msra.mxu0 %v801_v40 }
 0x28e   : > { %v929_v42 = vld [vmem:[#allocation5 + $0x1410] sm:$0xff]  ;;  %2187 = vmatpush.msra.mxu1 %v865_v41  ;;  %2168 = vmatmul.f32.vlgmr.msra.gmra.mxu0 %v3014_v52 }
 0x28f   : > { %v997_v43 = vld [vmem:[#allocation5 + $0x1630] sm:$0xff]  ;;  %2207 = vmatpush.msra.mxu2 %v929_v42  ;;  %2188 = vmatmul.f32.vlgmr.msra.gmra.mxu1 %v3016_v58 }
 0x290   : > { %v1117_v44 = vld [vmem:[#allocation5 + $0x19f0] sm:$0xff]  ;;  %2226 = vmatpush.msra.mxu3 %v997_v43  ;;  %2208 = vmatmul.f32.vlgmr.msra.gmra.mxu2 %v3015_v53 }
 0x291   : > { %v1181_v45 = vld [vmem:[#allocation5 + $0x1bf0] sm:$0xff]  ;;  %2232 = vmatpush.msrb.mxu0 %v1117_v44 }
 0x292   : > { %v1245_v50 = vld [vmem:[#allocation5 + $0x1df0] sm:$0xff]  ;;  %2252 = vmatpush.msrb.mxu1 %v1181_v45 }
 0x293   : > { %v993_v51 = vld [vmem:[#allocation5 + $0x1610] sm:$0xff]  ;;  %2272 = vmatpush.msrb.mxu2 %v1245_v50 }
 0x294   : > { %v1113_v54 = vld [vmem:[#allocation5 + $0x19d0] sm:$0xff]  ;;  %2227 = vmatpush.msra.mxu3 %v993_v51 }
 0x295   : > { %v1177_v55 = vld [vmem:[#allocation5 + $0x1bd0] sm:$0xff]  ;;  %2233 = vmatpush.msrb.mxu0 %v1113_v54 }
 0x296   : > { %v1241_v56 = vld [vmem:[#allocation5 + $0x1dd0] sm:$0xff]  ;;  %2253 = vmatpush.msrb.mxu1 %v1177_v55 }
 0x297   : > { %v1309_v57 = vld [vmem:[#allocation5 + $0x1ff0] sm:$0xff]  ;;  %2273 = vmatpush.msrb.mxu2 %v1241_v56 }
 0x298   : > { %v3017_v59 = vld.sshfl [vmem:[#allocation1 + $0x18] sm:$0xff pattern:$0x73625140]  ;;  %2292 = vmatpush.msrb.mxu3 %v1309_v57 }
 0x299   : > { %2228 = vmatmul.f32.vlgmr.msra.gmra.mxu3 %v3017_v59  ;;  %v1109_v60 = vld [vmem:[#allocation5 + $0x19b0] sm:$0xff] }
 0x29a   : > { %v1173_v61 = vld [vmem:[#allocation5 + $0x1bb0] sm:$0xff]  ;;  %2234 = vmatpush.msrb.mxu0 %v1109_v60  ;;  %v350_v60 = vld [vmem:[#allocation5 + $0x1f8] sm:$0xff] }
 0x29b   : > { %v1237_v2 = vld [vmem:[#allocation5 + $0x1db0] sm:$0xff]  ;;  %2254 = vmatpush.msrb.mxu1 %v1173_v61  ;;  %v414_v61 = vld [vmem:[#allocation5 + $0x3f8] sm:$0xff] }
 0x29c   : > { %v1305_v3 = vld [vmem:[#allocation5 + $0x1fd0] sm:$0xff]  ;;  %2274 = vmatpush.msrb.mxu2 %v1237_v2  ;;  %v478_v2 = vld [vmem:[#allocation5 + $0x5f8] sm:$0xff] }
 0x29d   : > { %v1105_v4 = vld [vmem:[#allocation5 + $0x1990] sm:$0xff]  ;;  %2293 = vmatpush.msrb.mxu3 %v1305_v3 }
 0x29e   : > { %v1169_v5 = vld [vmem:[#allocation5 + $0x1b90] sm:$0xff]  ;;  %2235 = vmatpush.msrb.mxu0 %v1105_v4  ;;  %v3018_v4 = vld.sshfl [vmem:[#allocation1 + $0x20] sm:$0xff pattern:$0x73625140] }
 0x29f   : > { %v1233_v6 = vld [vmem:[#allocation5 + $0x1d90] sm:$0xff]  ;;  %2255 = vmatpush.msrb.mxu1 %v1169_v5  ;;  %v3019_v5 = vld.sshfl [vmem:[#allocation1 + $0x30] sm:$0xff pattern:$0x73625140] }
 0x2a0   : > { %v1301_v7 = vld [vmem:[#allocation5 + $0x1fb0] sm:$0xff]  ;;  %2275 = vmatpush.msrb.mxu2 %v1233_v6  ;;  %v346_v6 = vld [vmem:[#allocation5 + $0x1d8] sm:$0xff] }
 0x2a1   : > { %v1101_v8 = vld [vmem:[#allocation5 + $0x1970] sm:$0xff]  ;;  %2294 = vmatpush.msrb.mxu3 %v1301_v7  ;;  %v410_v7 = vld [vmem:[#allocation5 + $0x3d8] sm:$0xff] }
 0x2a2   : > { %v1165_v9 = vld [vmem:[#allocation5 + $0x1b70] sm:$0xff]  ;;  %2236 = vmatpush.msrb.mxu0 %v1101_v8  ;;  %v474_v8 = vld [vmem:[#allocation5 + $0x5d8] sm:$0xff] }
 0x2a3   : > { %v1229_v10 = vld [vmem:[#allocation5 + $0x1d70] sm:$0xff]  ;;  %2256 = vmatpush.msrb.mxu1 %v1165_v9  ;;  %v542_v9 = vld [vmem:[#allocation5 + $0x7f8] sm:$0xff] }
 0x2a4   : > { %v1297_v11 = vld [vmem:[#allocation5 + $0x1f90] sm:$0xff]  ;;  %2276 = vmatpush.msrb.mxu2 %v1229_v10  ;;  %v3020_v10 = vld.sshfl [vmem:[#allocation1 + $0x28] sm:$0xff pattern:$0x73625140] }
 0x2a5   : > { %v1097_v12 = vld [vmem:[#allocation5 + $0x1950] sm:$0xff]  ;;  %2295 = vmatpush.msrb.mxu3 %v1297_v11 }
 0x2a6   : > { %v1161_v13 = vld [vmem:[#allocation5 + $0x1b50] sm:$0xff]  ;;  %2237 = vmatpush.msrb.mxu0 %v1097_v12  ;;  %v342_v12 = vld [vmem:[#allocation5 + $0x1b8] sm:$0xff] }
 0x2a7   : > { %v1225_v14 = vld [vmem:[#allocation5 + $0x1d50] sm:$0xff]  ;;  %2257 = vmatpush.msrb.mxu1 %v1161_v13  ;;  %v406_v13 = vld [vmem:[#allocation5 + $0x3b8] sm:$0xff] }
 0x2a8   : > { %v1293_v15 = vld [vmem:[#allocation5 + $0x1f70] sm:$0xff]  ;;  %2277 = vmatpush.msrb.mxu2 %v1225_v14  ;;  %v470_v14 = vld [vmem:[#allocation5 + $0x5b8] sm:$0xff] }
 0x2a9   : > { %v1093_v16 = vld [vmem:[#allocation5 + $0x1930] sm:$0xff]  ;;  %2296 = vmatpush.msrb.mxu3 %v1293_v15  ;;  %v538_v15 = vld [vmem:[#allocation5 + $0x7d8] sm:$0xff] }
 0x2aa   : > { %v1157_v17 = vld [vmem:[#allocation5 + $0x1b30] sm:$0xff]  ;;  %2238 = vmatpush.msrb.mxu0 %v1093_v16  ;;  %v338_v16 = vld [vmem:[#allocation5 + $0x198] sm:$0xff] }
 0x2ab   : > { %v1221_v18 = vld [vmem:[#allocation5 + $0x1d30] sm:$0xff]  ;;  %2258 = vmatpush.msrb.mxu1 %v1157_v17  ;;  %v402_v17 = vld [vmem:[#allocation5 + $0x398] sm:$0xff] }
 0x2ac   : > { %v1289_v19 = vld [vmem:[#allocation5 + $0x1f50] sm:$0xff]  ;;  %2278 = vmatpush.msrb.mxu2 %v1221_v18  ;;  %v466_v18 = vld [vmem:[#allocation5 + $0x598] sm:$0xff] }
 0x2ad   : > { %v1089_v20 = vld [vmem:[#allocation5 + $0x1910] sm:$0xff]  ;;  %2297 = vmatpush.msrb.mxu3 %v1289_v19  ;;  %v534_v19 = vld [vmem:[#allocation5 + $0x7b8] sm:$0xff] }
 0x2ae   : > { %v1153_v21 = vld [vmem:[#allocation5 + $0x1b10] sm:$0xff]  ;;  %2239 = vmatpush.msrb.mxu0 %v1089_v20  ;;  %v334_v20 = vld [vmem:[#allocation5 + $0x178] sm:$0xff] }
 0x2af   : > { %v1217_v22 = vld [vmem:[#allocation5 + $0x1d10] sm:$0xff]  ;;  %2259 = vmatpush.msrb.mxu1 %v1153_v21  ;;  %v398_v21 = vld [vmem:[#allocation5 + $0x378] sm:$0xff] }
 0x2b0   : > { %v1285_v23 = vld [vmem:[#allocation5 + $0x1f30] sm:$0xff]  ;;  %2279 = vmatpush.msrb.mxu2 %v1217_v22  ;;  %v462_v22 = vld [vmem:[#allocation5 + $0x578] sm:$0xff] }
 0x2b1   : > { %v1085_v24 = vld [vmem:[#allocation5 + $0x18f0] sm:$0xff]  ;;  %2298 = vmatpush.msrb.mxu3 %v1285_v23  ;;  %v530_v23 = vld [vmem:[#allocation5 + $0x798] sm:$0xff] }
 0x2b2   : > { %v1149_v25 = vld [vmem:[#allocation5 + $0x1af0] sm:$0xff]  ;;  %2240 = vmatpush.msrb.mxu0 %v1085_v24  ;;  %v330_v24 = vld [vmem:[#allocation5 + $0x158] sm:$0xff] }
 0x2b3   : > { %v1213_v26 = vld [vmem:[#allocation5 + $0x1cf0] sm:$0xff]  ;;  %2260 = vmatpush.msrb.mxu1 %v1149_v25  ;;  %v394_v25 = vld [vmem:[#allocation5 + $0x358] sm:$0xff] }
 0x2b4   : > { %v1281_v27 = vld [vmem:[#allocation5 + $0x1f10] sm:$0xff]  ;;  %2280 = vmatpush.msrb.mxu2 %v1213_v26  ;;  %v458_v26 = vld [vmem:[#allocation5 + $0x558] sm:$0xff] }
 0x2b5   : > { %v1081_v28 = vld [vmem:[#allocation5 + $0x18d0] sm:$0xff]  ;;  %2299 = vmatpush.msrb.mxu3 %v1281_v27  ;;  %v526_v27 = vld [vmem:[#allocation5 + $0x778] sm:$0xff] }
 0x2b6   : > { %v1145_v29 = vld [vmem:[#allocation5 + $0x1ad0] sm:$0xff]  ;;  %2241 = vmatpush.msrb.mxu0 %v1081_v28  ;;  %v326_v28 = vld [vmem:[#allocation5 + $0x138] sm:$0xff] }
 0x2b7   : > { %v1209_v30 = vld [vmem:[#allocation5 + $0x1cd0] sm:$0xff]  ;;  %2261 = vmatpush.msrb.mxu1 %v1145_v29  ;;  %v390_v29 = vld [vmem:[#allocation5 + $0x338] sm:$0xff] }
 0x2b8   : > { %v1277_v31 = vld [vmem:[#allocation5 + $0x1ef0] sm:$0xff]  ;;  %2281 = vmatpush.msrb.mxu2 %v1209_v30  ;;  %v454_v30 = vld [vmem:[#allocation5 + $0x538] sm:$0xff] }
 0x2b9   : > { %v1077_v32 = vld [vmem:[#allocation5 + $0x18b0] sm:$0xff]  ;;  %2300 = vmatpush.msrb.mxu3 %v1277_v31  ;;  %v522_v31 = vld [vmem:[#allocation5 + $0x758] sm:$0xff] }
 0x2ba   : > { %v1141_v33 = vld [vmem:[#allocation5 + $0x1ab0] sm:$0xff]  ;;  %2242 = vmatpush.msrb.mxu0 %v1077_v32  ;;  %v322_v32 = vld [vmem:[#allocation5 + $0x118] sm:$0xff] }
 0x2bb   : > { %v1205_v34 = vld [vmem:[#allocation5 + $0x1cb0] sm:$0xff]  ;;  %2262 = vmatpush.msrb.mxu1 %v1141_v33  ;;  %v386_v33 = vld [vmem:[#allocation5 + $0x318] sm:$0xff] }
 0x2bc   : > { %v1273_v35 = vld [vmem:[#allocation5 + $0x1ed0] sm:$0xff]  ;;  %2282 = vmatpush.msrb.mxu2 %v1205_v34  ;;  %v450_v34 = vld [vmem:[#allocation5 + $0x518] sm:$0xff] }
 0x2bd   : > { %v1073_v36 = vld [vmem:[#allocation5 + $0x1890] sm:$0xff]  ;;  %2301 = vmatpush.msrb.mxu3 %v1273_v35  ;;  %v518_v35 = vld [vmem:[#allocation5 + $0x738] sm:$0xff] }
 0x2be   : > { %v1137_v37 = vld [vmem:[#allocation5 + $0x1a90] sm:$0xff]  ;;  %2243 = vmatpush.msrb.mxu0 %v1073_v36  ;;  %v318_v36 = vld [vmem:[#allocation5 + $0xf8] sm:$0xff] }
 0x2bf   : > { %v1201_v38 = vld [vmem:[#allocation5 + $0x1c90] sm:$0xff]  ;;  %2263 = vmatpush.msrb.mxu1 %v1137_v37  ;;  %v382_v37 = vld [vmem:[#allocation5 + $0x2f8] sm:$0xff] }
 0x2c0   : > { %v1269_v39 = vld [vmem:[#allocation5 + $0x1eb0] sm:$0xff]  ;;  %2283 = vmatpush.msrb.mxu2 %v1201_v38  ;;  %v446_v38 = vld [vmem:[#allocation5 + $0x4f8] sm:$0xff] }
 0x2c1   : > { %v1069_v40 = vld [vmem:[#allocation5 + $0x1870] sm:$0xff]  ;;  %2302 = vmatpush.msrb.mxu3 %v1269_v39  ;;  %v514_v39 = vld [vmem:[#allocation5 + $0x718] sm:$0xff] }
 0x2c2   : > { %v1133_v41 = vld [vmem:[#allocation5 + $0x1a70] sm:$0xff]  ;;  %2244 = vmatpush.msrb.mxu0 %v1069_v40  ;;  %v314_v40 = vld [vmem:[#allocation5 + $0xd8] sm:$0xff] }
 0x2c3   : > { %v1197_v42 = vld [vmem:[#allocation5 + $0x1c70] sm:$0xff]  ;;  %2264 = vmatpush.msrb.mxu1 %v1133_v41  ;;  %v378_v41 = vld [vmem:[#allocation5 + $0x2d8] sm:$0xff] }
 0x2c4   : > { %v1265_v43 = vld [vmem:[#allocation5 + $0x1e90] sm:$0xff]  ;;  %2284 = vmatpush.msrb.mxu2 %v1197_v42  ;;  %v442_v42 = vld [vmem:[#allocation5 + $0x4d8] sm:$0xff] }
 0x2c5   : > { %v1065_v44 = vld [vmem:[#allocation5 + $0x1850] sm:$0xff]  ;;  %2303 = vmatpush.msrb.mxu3 %v1265_v43  ;;  %v510_v43 = vld [vmem:[#allocation5 + $0x6f8] sm:$0xff] }
 0x2c6   : > { %v1129_v45 = vld [vmem:[#allocation5 + $0x1a50] sm:$0xff]  ;;  %2245 = vmatpush.msrb.mxu0 %v1065_v44  ;;  %v310_v44 = vld [vmem:[#allocation5 + $0xb8] sm:$0xff] }
 0x2c7   : > { %v1193_v50 = vld [vmem:[#allocation5 + $0x1c50] sm:$0xff]  ;;  %2265 = vmatpush.msrb.mxu1 %v1129_v45  ;;  %v374_v45 = vld [vmem:[#allocation5 + $0x2b8] sm:$0xff] }
 0x2c8   : > { %v1261_v51 = vld [vmem:[#allocation5 + $0x1e70] sm:$0xff]  ;;  %2285 = vmatpush.msrb.mxu2 %v1193_v50  ;;  %v438_v50 = vld [vmem:[#allocation5 + $0x4b8] sm:$0xff] }
 0x2c9   : > { %v1061_v52 = vld [vmem:[#allocation5 + $0x1830] sm:$0xff]  ;;  %2304 = vmatpush.msrb.mxu3 %v1261_v51  ;;  %v506_v51 = vld [vmem:[#allocation5 + $0x6d8] sm:$0xff] }
 0x2ca   : > { %v1125_v53 = vld [vmem:[#allocation5 + $0x1a30] sm:$0xff]  ;;  %2246 = vmatpush.msrb.mxu0 %v1061_v52  ;;  %v306_v52 = vld [vmem:[#allocation5 + $0x98] sm:$0xff] }
 0x2cb   : > { %v1189_v54 = vld [vmem:[#allocation5 + $0x1c30] sm:$0xff]  ;;  %2266 = vmatpush.msrb.mxu1 %v1125_v53  ;;  %v370_v53 = vld [vmem:[#allocation5 + $0x298] sm:$0xff] }
 0x2cc   : > { %v1257_v55 = vld [vmem:[#allocation5 + $0x1e50] sm:$0xff]  ;;  %2286 = vmatpush.msrb.mxu2 %v1189_v54  ;;  %v434_v54 = vld [vmem:[#allocation5 + $0x498] sm:$0xff] }
 0x2cd   : > { %v1057_v56 = vld [vmem:[#allocation5 + $0x1810] sm:$0xff]  ;;  %2305 = vmatpush.msrb.mxu3 %v1257_v55  ;;  %v502_v55 = vld [vmem:[#allocation5 + $0x6b8] sm:$0xff] }
 0x2ce   : > { %v1121_v57 = vld [vmem:[#allocation5 + $0x1a10] sm:$0xff]  ;;  %2247 = vmatpush.msrb.mxu0 %v1057_v56  ;;  %v302_v56 = vld [vmem:[#allocation5 + $0x78] sm:$0xff] }
 0x2cf   : > { %v1185_v58 = vld [vmem:[#allocation5 + $0x1c10] sm:$0xff]  ;;  %2267 = vmatpush.msrb.mxu1 %v1121_v57  ;;  %2248 = vmatmul.f32.vlgmr.msrb.gmra.mxu0 %v3018_v4  ;;  %v366_v57 = vld [vmem:[#allocation5 + $0x278] sm:$0xff] }
 0x2d0   : > { %v1253_v59 = vld [vmem:[#allocation5 + $0x1e30] sm:$0xff]  ;;  %2287 = vmatpush.msrb.mxu2 %v1185_v58  ;;  %2312 = vmatpush.msra.mxu0 %v350_v60  ;;  %v430_v58 = vld [vmem:[#allocation5 + $0x478] sm:$0xff] }
 0x2d1   : > { %2306 = vmatpush.msrb.mxu3 %v1253_v59  ;;  %v1249_v3 = vld [vmem:[#allocation5 + $0x1e10] sm:$0xff]  ;;  %2288 = vmatmul.f32.vlgmr.msrb.gmra.mxu2 %v3019_v5  ;;  %v498_v59 = vld [vmem:[#allocation5 + $0x698] sm:$0xff] }
 0x2d2   : > { %2332 = vmatpush.msra.mxu1 %v414_v61  ;;  %2352 = vmatpush.msra.mxu2 %v478_v2  ;;  %v3021_v11 = vld.sshfl [vmem:[#allocation1 + $0x38] sm:$0xff pattern:$0x73625140]  ;;  %v298_v60 = vld [vmem:[#allocation5 + $0x58] sm:$0xff] }
 0x2d3   : > { %2307 = vmatpush.msrb.mxu3 %v1249_v3  ;;  %2268 = vmatmul.f32.vlgmr.msrb.gmra.mxu1 %v3020_v10  ;;  %v362_v61 = vld [vmem:[#allocation5 + $0x258] sm:$0xff] }
 0x2d4   : > { %2308 = vmatmul.f32.vlgmr.msrb.gmra.mxu3 %v3021_v11  ;;  %2313 = vmatpush.msra.mxu0 %v346_v6  ;;  %v426_v2 = vld [vmem:[#allocation5 + $0x458] sm:$0xff] }
 0x2d5   : > { %2333 = vmatpush.msra.mxu1 %v410_v7  ;;  %2353 = vmatpush.msra.mxu2 %v474_v8  ;;  %v494_v3 = vld [vmem:[#allocation5 + $0x678] sm:$0xff] }
 0x2d6   : > { %2372 = vmatpush.msra.mxu3 %v542_v9  ;;  %2314 = vmatpush.msra.mxu0 %v342_v12  ;;  %v294_v4 = vld [vmem:[#allocation5 + $0x38] sm:$0xff] }
 0x2d7   : > { %2334 = vmatpush.msra.mxu1 %v406_v13  ;;  %2354 = vmatpush.msra.mxu2 %v470_v14  ;;  %v358_v5 = vld [vmem:[#allocation5 + $0x238] sm:$0xff] }
 0x2d8   : > { %2373 = vmatpush.msra.mxu3 %v538_v15  ;;  %2315 = vmatpush.msra.mxu0 %v338_v16  ;;  %v422_v6 = vld [vmem:[#allocation5 + $0x438] sm:$0xff] }
 0x2d9   : > { %2335 = vmatpush.msra.mxu1 %v402_v17  ;;  %2355 = vmatpush.msra.mxu2 %v466_v18  ;;  %v490_v7 = vld [vmem:[#allocation5 + $0x658] sm:$0xff] }
 0x2da   : > { %2374 = vmatpush.msra.mxu3 %v534_v19  ;;  %2316 = vmatpush.msra.mxu0 %v334_v20  ;;  %v290_v8 = vld [vmem:[#allocation5 + $0x18] sm:$0xff] }
 0x2db   : > { %2336 = vmatpush.msra.mxu1 %v398_v21  ;;  %2356 = vmatpush.msra.mxu2 %v462_v22  ;;  %v354_v9 = vld [vmem:[#allocation5 + $0x218] sm:$0xff] }
 0x2dc   : > { %2375 = vmatpush.msra.mxu3 %v530_v23  ;;  %2317 = vmatpush.msra.mxu0 %v330_v24  ;;  %v418_v10 = vld [vmem:[#allocation5 + $0x418] sm:$0xff] }
 0x2dd   : > { %2337 = vmatpush.msra.mxu1 %v394_v25  ;;  %2357 = vmatpush.msra.mxu2 %v458_v26  ;;  %v486_v11 = vld [vmem:[#allocation5 + $0x638] sm:$0xff] }
 0x2de   : > { %2376 = vmatpush.msra.mxu3 %v526_v27  ;;  %2318 = vmatpush.msra.mxu0 %v326_v28  ;;  %v606_v12 = vld [vmem:[#allocation5 + $0x9f8] sm:$0xff] }
 0x2df   : > { %2338 = vmatpush.msra.mxu1 %v390_v29  ;;  %2358 = vmatpush.msra.mxu2 %v454_v30  ;;  %v670_v13 = vld [vmem:[#allocation5 + $0xbf8] sm:$0xff] }
 0x2e0   : > { %2377 = vmatpush.msra.mxu3 %v522_v31  ;;  %2319 = vmatpush.msra.mxu0 %v322_v32  ;;  %v734_v14 = vld [vmem:[#allocation5 + $0xdf8] sm:$0xff] }
 0x2e1   : > { %2339 = vmatpush.msra.mxu1 %v386_v33  ;;  %2359 = vmatpush.msra.mxu2 %v450_v34  ;;  %v482_v15 = vld [vmem:[#allocation5 + $0x618] sm:$0xff] }
 0x2e2   : > { %2378 = vmatpush.msra.mxu3 %v518_v35  ;;  %2320 = vmatpush.msra.mxu0 %v318_v36  ;;  %v602_v16 = vld [vmem:[#allocation5 + $0x9d8] sm:$0xff] }
 0x2e3   : > { %2340 = vmatpush.msra.mxu1 %v382_v37  ;;  %2360 = vmatpush.msra.mxu2 %v446_v38  ;;  %v666_v17 = vld [vmem:[#allocation5 + $0xbd8] sm:$0xff] }
 0x2e4   : > { %2379 = vmatpush.msra.mxu3 %v514_v39  ;;  %2321 = vmatpush.msra.mxu0 %v314_v40  ;;  %v730_v18 = vld [vmem:[#allocation5 + $0xdd8] sm:$0xff] }
 0x2e5   : > { %2341 = vmatpush.msra.mxu1 %v378_v41  ;;  %2361 = vmatpush.msra.mxu2 %v442_v42  ;;  %v798_v19 = vld [vmem:[#allocation5 + $0xff8] sm:$0xff] }
 0x2e6   : > { %2380 = vmatpush.msra.mxu3 %v510_v43  ;;  %2322 = vmatpush.msra.mxu0 %v310_v44  ;;  %v598_v20 = vld [vmem:[#allocation5 + $0x9b8] sm:$0xff] }
 0x2e7   : > { %2342 = vmatpush.msra.mxu1 %v374_v45  ;;  %2362 = vmatpush.msra.mxu2 %v438_v50  ;;  %v662_v21 = vld [vmem:[#allocation5 + $0xbb8] sm:$0xff] }
 0x2e8   : > { %2381 = vmatpush.msra.mxu3 %v506_v51  ;;  %2323 = vmatpush.msra.mxu0 %v306_v52  ;;  %v726_v22 = vld [vmem:[#allocation5 + $0xdb8] sm:$0xff]  ;;  %v3435_v52 = vpop.f32.mrf.mxu1 }
 0x2e9   : > { %2343 = vmatpush.msra.mxu1 %v370_v53  ;;  %2363 = vmatpush.msra.mxu2 %v434_v54  ;;  %v794_v23 = vld [vmem:[#allocation5 + $0xfd8] sm:$0xff] }
 0x2ea   : > { %2382 = vmatpush.msra.mxu3 %v502_v55  ;;  %2324 = vmatpush.msra.mxu0 %v302_v56  ;;  %v594_v24 = vld [vmem:[#allocation5 + $0x998] sm:$0xff] }
 0x2eb   : > { %2344 = vmatpush.msra.mxu1 %v366_v57  ;;  %2364 = vmatpush.msra.mxu2 %v430_v58  ;;  %v658_v25 = vld [vmem:[#allocation5 + $0xb98] sm:$0xff]  ;;  %v3437_v57 = vpop.f32.mrf.mxu0 }
 0x2ec   : > { %2383 = vmatpush.msra.mxu3 %v498_v59  ;;  %2325 = vmatpush.msra.mxu0 %v298_v60  ;;  %v722_v26 = vld [vmem:[#allocation5 + $0xd98] sm:$0xff] }
 0x2ed   : > { %2345 = vmatpush.msra.mxu1 %v362_v61  ;;  %2365 = vmatpush.msra.mxu2 %v426_v2  ;;  %v790_v27 = vld [vmem:[#allocation5 + $0xfb8] sm:$0xff]  ;;  %v3439_v2 = vpop.f32.mrf.mxu2 }
 0x2ee   : > { %2384 = vmatpush.msra.mxu3 %v494_v3  ;;  %2326 = vmatpush.msra.mxu0 %v294_v4  ;;  %v590_v28 = vld [vmem:[#allocation5 + $0x978] sm:$0xff] }
 0x2ef   : > { %2346 = vmatpush.msra.mxu1 %v358_v5  ;;  %2366 = vmatpush.msra.mxu2 %v422_v6  ;;  %v654_v29 = vld [vmem:[#allocation5 + $0xb78] sm:$0xff] }
 0x2f0   : > { %2385 = vmatpush.msra.mxu3 %v490_v7  ;;  %2327 = vmatpush.msra.mxu0 %v290_v8  ;;  %v718_v30 = vld [vmem:[#allocation5 + $0xd78] sm:$0xff] }
 0x2f1   : > { %2347 = vmatpush.msra.mxu1 %v354_v9  ;;  %2367 = vmatpush.msra.mxu2 %v418_v10  ;;  %v786_v31 = vld [vmem:[#allocation5 + $0xf98] sm:$0xff] }
 0x2f2   : > { %2386 = vmatpush.msra.mxu3 %v486_v11  ;;  %2392 = vmatpush.msrb.mxu0 %v606_v12  ;;  %v586_v32 = vld [vmem:[#allocation5 + $0x958] sm:$0xff]  ;;  %v3441_v11 = vpop.f32.mrf.mxu3 }
 0x2f3   : > { %2412 = vmatpush.msrb.mxu1 %v670_v13  ;;  %2432 = vmatpush.msrb.mxu2 %v734_v14  ;;  %v650_v33 = vld [vmem:[#allocation5 + $0xb58] sm:$0xff] }
 0x2f4   : > { %2387 = vmatpush.msra.mxu3 %v482_v15  ;;  %2393 = vmatpush.msrb.mxu0 %v602_v16  ;;  %v714_v34 = vld [vmem:[#allocation5 + $0xd58] sm:$0xff]  ;;  %v3443_v16 = vpop.f32.mrf.mxu1 }
 0x2f5   : > { %2413 = vmatpush.msrb.mxu1 %v666_v17  ;;  %2433 = vmatpush.msrb.mxu2 %v730_v18  ;;  %v782_v35 = vld [vmem:[#allocation5 + $0xf78] sm:$0xff] }
 0x2f6   : > { %2452 = vmatpush.msrb.mxu3 %v798_v19  ;;  %2394 = vmatpush.msrb.mxu0 %v598_v20  ;;  %v582_v36 = vld [vmem:[#allocation5 + $0x938] sm:$0xff] }
 0x2f7   : > { %2414 = vmatpush.msrb.mxu1 %v662_v21  ;;  %2434 = vmatpush.msrb.mxu2 %v726_v22  ;;  %v646_v37 = vld [vmem:[#allocation5 + $0xb38] sm:$0xff]  ;;  %v3445_v21 = vpop.f32.mrf.mxu0 }
 0x2f8   : > { %2453 = vmatpush.msrb.mxu3 %v794_v23  ;;  %2395 = vmatpush.msrb.mxu0 %v594_v24  ;;  %v710_v38 = vld [vmem:[#allocation5 + $0xd38] sm:$0xff] }
 0x2f9   : > { %2415 = vmatpush.msrb.mxu1 %v658_v25  ;;  %2435 = vmatpush.msrb.mxu2 %v722_v26  ;;  %v778_v39 = vld [vmem:[#allocation5 + $0xf58] sm:$0xff]  ;;  %v3447_v25 = vpop.f32.mrf.mxu2 }
 0x2fa   : > { %2454 = vmatpush.msrb.mxu3 %v790_v27  ;;  %2396 = vmatpush.msrb.mxu0 %v590_v28  ;;  %v578_v40 = vld [vmem:[#allocation5 + $0x918] sm:$0xff] }
 0x2fb   : > { %2416 = vmatpush.msrb.mxu1 %v654_v29  ;;  %2436 = vmatpush.msrb.mxu2 %v718_v30  ;;  %v642_v41 = vld [vmem:[#allocation5 + $0xb18] sm:$0xff] }
 0x2fc   : > { %2455 = vmatpush.msrb.mxu3 %v786_v31  ;;  %2397 = vmatpush.msrb.mxu0 %v586_v32  ;;  %v706_v42 = vld [vmem:[#allocation5 + $0xd18] sm:$0xff]  ;;  %v3451_v31 = vpop.f32.mrf.mxu3  ;;  %v3453_v32 = vpop.f32.mrf.mxu1 }
 0x2fd   : > { %2417 = vmatpush.msrb.mxu1 %v650_v33  ;;  %2437 = vmatpush.msrb.mxu2 %v714_v34  ;;  %v774_v43 = vld [vmem:[#allocation5 + $0xf38] sm:$0xff] }
 0x2fe   : > { %2456 = vmatpush.msrb.mxu3 %v782_v35  ;;  %2398 = vmatpush.msrb.mxu0 %v582_v36  ;;  %v574_v44 = vld [vmem:[#allocation5 + $0x8f8] sm:$0xff] }
 0x2ff   : > { %2418 = vmatpush.msrb.mxu1 %v646_v37  ;;  %2438 = vmatpush.msrb.mxu2 %v710_v38  ;;  %v638_v45 = vld [vmem:[#allocation5 + $0xaf8] sm:$0xff]  ;;  %v3457_v36 = vpop.f32.mrf.mxu0 }
 0x300   : > { %2457 = vmatpush.msrb.mxu3 %v778_v39  ;;  %2399 = vmatpush.msrb.mxu0 %v578_v40  ;;  %v702_v50 = vld [vmem:[#allocation5 + $0xcf8] sm:$0xff] }
 0x301   : > { %2419 = vmatpush.msrb.mxu1 %v642_v41  ;;  %v770_v51 = vld [vmem:[#allocation5 + $0xf18] sm:$0xff]  ;;  %2439 = vmatpush.msrb.mxu2 %v706_v42  ;;  %v3459_v40 = vpop.f32.mrf.mxu2 }
 0x302   : > { %2458 = vmatpush.msrb.mxu3 %v774_v43  ;;  %v570_v53 = vld [vmem:[#allocation5 + $0x8d8] sm:$0xff]  ;;  %2400 = vmatpush.msrb.mxu0 %v574_v44 }
 0x303   : > { %v634_v54 = vld [vmem:[#allocation5 + $0xad8] sm:$0xff]  ;;  %2420 = vmatpush.msrb.mxu1 %v638_v45  ;;  %2440 = vmatpush.msrb.mxu2 %v702_v50 }
 0x304   : > { %v698_v55 = vld [vmem:[#allocation5 + $0xcd8] sm:$0xff]  ;;  %2459 = vmatpush.msrb.mxu3 %v770_v51  ;;  %2401 = vmatpush.msrb.mxu0 %v570_v53  ;;  %v3462_v44 = vpop.f32.mrf.mxu3  ;;  %v3464_v45 = vpop.f32.mrf.mxu1 }
 0x305   : > { %v766_v56 = vld [vmem:[#allocation5 + $0xef8] sm:$0xff]  ;;  %2421 = vmatpush.msrb.mxu1 %v634_v54  ;;  %2441 = vmatpush.msrb.mxu2 %v698_v55 }
 0x306   : > { %v566_v58 = vld [vmem:[#allocation5 + $0x8b8] sm:$0xff]  ;;  %2460 = vmatpush.msrb.mxu3 %v766_v56  ;;  %2368 = vmatmul.f32.vlgmr.msra.gmra.mxu2 %v3394_v46 }
 0x307   : > { %v630_v59 = vld [vmem:[#allocation5 + $0xab8] sm:$0xff]  ;;  %2402 = vmatpush.msrb.mxu0 %v566_v58  ;;  %2348 = vmatmul.f32.vlgmr.msra.gmra.mxu1 %v3398_v48  ;;  %v3467_v54 = vpop.f32.mrf.mxu0 }
 0x308   : > { %v694_v60 = vld [vmem:[#allocation5 + $0xcb8] sm:$0xff]  ;;  %2422 = vmatpush.msrb.mxu1 %v630_v59  ;;  %2328 = vmatmul.f32.vlgmr.msra.gmra.mxu0 %v3396_v47 }
 0x309   : > { %v762_v61 = vld [vmem:[#allocation5 + $0xed8] sm:$0xff]  ;;  %2442 = vmatpush.msrb.mxu2 %v694_v60  ;;  %2388 = vmatmul.f32.vlgmr.msra.gmra.mxu3 %v3400_v49  ;;  %v3470_v59 = vpop.f32.mrf.mxu2 }
 0x30a   : > { %v562_v3 = vld [vmem:[#allocation5 + $0x898] sm:$0xff]  ;;  %2461 = vmatpush.msrb.mxu3 %v762_v61 }
 0x30b   : > { %v626_v4 = vld [vmem:[#allocation5 + $0xa98] sm:$0xff]  ;;  %2403 = vmatpush.msrb.mxu0 %v562_v3 }
 0x30c   : > { %v690_v5 = vld [vmem:[#allocation5 + $0xc98] sm:$0xff]  ;;  %2423 = vmatpush.msrb.mxu1 %v626_v4 }
 0x30d   : > { %v758_v6 = vld [vmem:[#allocation5 + $0xeb8] sm:$0xff]  ;;  %2443 = vmatpush.msrb.mxu2 %v690_v5 }
 0x30e   : > { %v558_v7 = vld [vmem:[#allocation5 + $0x878] sm:$0xff]  ;;  %2462 = vmatpush.msrb.mxu3 %v758_v6 }
 0x30f   : > { %v622_v8 = vld [vmem:[#allocation5 + $0xa78] sm:$0xff]  ;;  %2404 = vmatpush.msrb.mxu0 %v558_v7  ;;  %v3473_v7 = vpop.f32.mrf.mxu3 }
 0x310   : > { %v686_v9 = vld [vmem:[#allocation5 + $0xc78] sm:$0xff]  ;;  %2424 = vmatpush.msrb.mxu1 %v622_v8  ;;  %v3475_v8 = vpop.f32.mrf.mxu1 }
 0x311   : > { %v754_v10 = vld [vmem:[#allocation5 + $0xe98] sm:$0xff]  ;;  %2444 = vmatpush.msrb.mxu2 %v686_v9 }
 0x312   : > { %v554_v12 = vld [vmem:[#allocation5 + $0x858] sm:$0xff]  ;;  %2463 = vmatpush.msrb.mxu3 %v754_v10 }
 0x313   : > { %v618_v13 = vld [vmem:[#allocation5 + $0xa58] sm:$0xff]  ;;  %2405 = vmatpush.msrb.mxu0 %v554_v12 }
 0x314   : > { %v682_v14 = vld [vmem:[#allocation5 + $0xc58] sm:$0xff]  ;;  %2425 = vmatpush.msrb.mxu1 %v618_v13  ;;  %v3477_v13 = vpop.f32.mrf.mxu0 }
 0x315   : > { %v750_v15 = vld [vmem:[#allocation5 + $0xe78] sm:$0xff]  ;;  %2445 = vmatpush.msrb.mxu2 %v682_v14 }
 0x316   : > { %v550_v17 = vld [vmem:[#allocation5 + $0x838] sm:$0xff]  ;;  %2464 = vmatpush.msrb.mxu3 %v750_v15 }
 0x317   : > { %v614_v18 = vld [vmem:[#allocation5 + $0xa38] sm:$0xff]  ;;  %2406 = vmatpush.msrb.mxu0 %v550_v17 }
 0x318   : > { %v678_v19 = vld [vmem:[#allocation5 + $0xc38] sm:$0xff]  ;;  %2426 = vmatpush.msrb.mxu1 %v614_v18 }
 0x319   : > { %v746_v20 = vld [vmem:[#allocation5 + $0xe58] sm:$0xff]  ;;  %2446 = vmatpush.msrb.mxu2 %v678_v19  ;;  %v3479_v19 = vpop.f32.mrf.mxu2 }
 0x31a   : > { %v546_v22 = vld [vmem:[#allocation5 + $0x818] sm:$0xff]  ;;  %2465 = vmatpush.msrb.mxu3 %v746_v20 }
 0x31b   : > { %v610_v23 = vld [vmem:[#allocation5 + $0xa18] sm:$0xff]  ;;  %2407 = vmatpush.msrb.mxu0 %v546_v22 }
 0x31c   : > { %v674_v24 = vld [vmem:[#allocation5 + $0xc18] sm:$0xff]  ;;  %2427 = vmatpush.msrb.mxu1 %v610_v23  ;;  %2408 = vmatmul.f32.vlgmr.msrb.gmra.mxu0 %v3405_v63 }
 0x31d   : > { %v742_v26 = vld [vmem:[#allocation5 + $0xe38] sm:$0xff]  ;;  %2447 = vmatpush.msrb.mxu2 %v674_v24  ;;  %2428 = vmatmul.f32.vlgmr.msrb.gmra.mxu1 %v3409_v1 }
 0x31e   : > { %v862_v27 = vld [vmem:[#allocation5 + $0x11f8] sm:$0xff]  ;;  %2466 = vmatpush.msrb.mxu3 %v742_v26  ;;  %2448 = vmatmul.f32.vlgmr.msrb.gmra.mxu2 %v3403_v62 }
 0x31f   : > { %v926_v28 = vld [vmem:[#allocation5 + $0x13f8] sm:$0xff]  ;;  %2472 = vmatpush.msra.mxu0 %v862_v27 }
 0x320   : > { %v990_v29 = vld [vmem:[#allocation5 + $0x15f8] sm:$0xff]  ;;  %2492 = vmatpush.msra.mxu1 %v926_v28 }
 0x321   : > { %v738_v30 = vld [vmem:[#allocation5 + $0xe18] sm:$0xff]  ;;  %2512 = vmatpush.msra.mxu2 %v990_v29 }
 0x322   : > { %v858_v33 = vld [vmem:[#allocation5 + $0x11d8] sm:$0xff]  ;;  %2467 = vmatpush.msrb.mxu3 %v738_v30  ;;  %v3481_v30 = vpop.f32.mrf.mxu3 }
 0x323   : > { %v922_v46 = vld [vmem:[#allocation5 + $0x13d8] sm:$0xff]  ;;  %2473 = vmatpush.msra.mxu0 %v858_v33  ;;  %2468 = vmatmul.f32.vlgmr.msrb.gmra.mxu3 %v3407_v0 }
 0x324   : > { %v986_v34 = vld [vmem:[#allocation5 + $0x15d8] sm:$0xff]  ;;  %2493 = vmatpush.msra.mxu1 %v922_v46 }
 0x325   : > { %v1054_v35 = vld [vmem:[#allocation5 + $0x17f8] sm:$0xff]  ;;  %2513 = vmatpush.msra.mxu2 %v986_v34 }
 0x326   : > { %v854_v47 = vld [vmem:[#allocation5 + $0x11b8] sm:$0xff]  ;;  %2532 = vmatpush.msra.mxu3 %v1054_v35 }
 0x327   : > { %v918_v37 = vld [vmem:[#allocation5 + $0x13b8] sm:$0xff]  ;;  %2474 = vmatpush.msra.mxu0 %v854_v47  ;;  %v3483_v47 = vpop.f32.mrf.mxu1 }
 0x328   : > { %v982_v38 = vld [vmem:[#allocation5 + $0x15b8] sm:$0xff]  ;;  %2494 = vmatpush.msra.mxu1 %v918_v37 }
 0x329   : > { %v1050_v39 = vld [vmem:[#allocation5 + $0x17d8] sm:$0xff]  ;;  %2514 = vmatpush.msra.mxu2 %v982_v38 }
 0x32a   : > { %v850_v48 = vld [vmem:[#allocation5 + $0x1198] sm:$0xff]  ;;  %2533 = vmatpush.msra.mxu3 %v1050_v39 }
 0x32b   : > { %v914_v49 = vld [vmem:[#allocation5 + $0x1398] sm:$0xff]  ;;  %2475 = vmatpush.msra.mxu0 %v850_v48 }
 0x32c   : > { %v978_v41 = vld [vmem:[#allocation5 + $0x1598] sm:$0xff]  ;;  %2495 = vmatpush.msra.mxu1 %v914_v49  ;;  %v3485_v49 = vpop.f32.mrf.mxu0 }
 0x32d   : > { %v1046_v42 = vld [vmem:[#allocation5 + $0x17b8] sm:$0xff]  ;;  %2515 = vmatpush.msra.mxu2 %v978_v41 }
 0x32e   : > { %v846_v43 = vld [vmem:[#allocation5 + $0x1178] sm:$0xff]  ;;  %2534 = vmatpush.msra.mxu3 %v1046_v42 }
 0x32f   : > { %v910_v50 = vld [vmem:[#allocation5 + $0x1378] sm:$0xff]  ;;  %2476 = vmatpush.msra.mxu0 %v846_v43 }
 0x330   : > { %v974_v51 = vld [vmem:[#allocation5 + $0x1578] sm:$0xff]  ;;  %2496 = vmatpush.msra.mxu1 %v910_v50 }
 0x331   : > { %v1042_v53 = vld [vmem:[#allocation5 + $0x1798] sm:$0xff]  ;;  %2516 = vmatpush.msra.mxu2 %v974_v51  ;;  %v3487_v51 = vpop.f32.mrf.mxu2 }
 0x332   : > { %v842_v62 = vld [vmem:[#allocation5 + $0x1158] sm:$0xff]  ;;  %2535 = vmatpush.msra.mxu3 %v1042_v53 }
 0x333   : > { %v906_v55 = vld [vmem:[#allocation5 + $0x1358] sm:$0xff]  ;;  %2477 = vmatpush.msra.mxu0 %v842_v62 }
 0x334   : > { %v970_v56 = vld [vmem:[#allocation5 + $0x1558] sm:$0xff]  ;;  %2497 = vmatpush.msra.mxu1 %v906_v55 }
 0x335   : > { %v1038_v58 = vld [vmem:[#allocation5 + $0x1778] sm:$0xff]  ;;  %2517 = vmatpush.msra.mxu2 %v970_v56 }
 0x336   : > { %v838_v60 = vld [vmem:[#allocation5 + $0x1138] sm:$0xff]  ;;  %2536 = vmatpush.msra.mxu3 %v1038_v58 }
 0x337   : > { %v902_v61 = vld [vmem:[#allocation5 + $0x1338] sm:$0xff]  ;;  %2478 = vmatpush.msra.mxu0 %v838_v60 }
 0x338   : > { %v966_v63 = vld [vmem:[#allocation5 + $0x1538] sm:$0xff]  ;;  %2498 = vmatpush.msra.mxu1 %v902_v61  ;;  %v3489_v61 = vpop.f32.mrf.mxu3 }
 0x339   : > { %v1034_v3 = vld [vmem:[#allocation5 + $0x1758] sm:$0xff]  ;;  %2518 = vmatpush.msra.mxu2 %v966_v63  ;;  %v3491_v63 = vpop.f32.mrf.mxu1 }
 0x33a   : > { %v834_v0 = vld [vmem:[#allocation5 + $0x1118] sm:$0xff]  ;;  %2537 = vmatpush.msra.mxu3 %v1034_v3 }
 0x33b   : > { %v898_v4 = vld [vmem:[#allocation5 + $0x1318] sm:$0xff]  ;;  %2479 = vmatpush.msra.mxu0 %v834_v0 }
 0x33c   : > { %v962_v5 = vld [vmem:[#allocation5 + $0x1518] sm:$0xff]  ;;  %2499 = vmatpush.msra.mxu1 %v898_v4 }
 0x33d   : > { %v1030_v6 = vld [vmem:[#allocation5 + $0x1738] sm:$0xff]  ;;  %2519 = vmatpush.msra.mxu2 %v962_v5  ;;  %v3023_v5 = vld.sshfl [vmem:[#allocation1 + $0x10] sm:$0xff pattern:$0x73625140] }
 0x33e   : > { %v830_v1 = vld [vmem:[#allocation5 + $0x10f8] sm:$0xff]  ;;  %2538 = vmatpush.msra.mxu3 %v1030_v6  ;;  %v3493_v6 = vpop.f32.mrf.mxu0 }
 0x33f   : > { %v894_v9 = vld [vmem:[#allocation5 + $0x12f8] sm:$0xff]  ;;  %2480 = vmatpush.msra.mxu0 %v830_v1 }
 0x340   : > { %v958_v10 = vld [vmem:[#allocation5 + $0x14f8] sm:$0xff]  ;;  %2500 = vmatpush.msra.mxu1 %v894_v9 }
 0x341   : > { %v1026_v12 = vld [vmem:[#allocation5 + $0x1718] sm:$0xff]  ;;  %2520 = vmatpush.msra.mxu2 %v958_v10 }
 0x342   : > { %v826_v14 = vld [vmem:[#allocation5 + $0x10d8] sm:$0xff]  ;;  %2539 = vmatpush.msra.mxu3 %v1026_v12 }
 0x343   : > { %v890_v15 = vld [vmem:[#allocation5 + $0x12d8] sm:$0xff]  ;;  %2481 = vmatpush.msra.mxu0 %v826_v14  ;;  %v3495_v14 = vpop.f32.mrf.mxu2 }
 0x344   : > { %v954_v17 = vld [vmem:[#allocation5 + $0x14d8] sm:$0xff]  ;;  %2501 = vmatpush.msra.mxu1 %v890_v15  ;;  %v3024_v15 = vld.sshfl [vmem:[#allocation1 + $0x8] sm:$0xff pattern:$0x73625140] }
 0x345   : > { %v1022_v18 = vld [vmem:[#allocation5 + $0x16f8] sm:$0xff]  ;;  %2521 = vmatpush.msra.mxu2 %v954_v17  ;;  %v3025_v17 = vld.sshfl [vmem:[#allocation1 + $0x18] sm:$0xff pattern:$0x73625140] }
 0x346   : > { %v822_v20 = vld [vmem:[#allocation5 + $0x10b8] sm:$0xff]  ;;  %2540 = vmatpush.msra.mxu3 %v1022_v18 }
 0x347   : > { %v886_v22 = vld [vmem:[#allocation5 + $0x12b8] sm:$0xff]  ;;  %2482 = vmatpush.msra.mxu0 %v822_v20 }
 0x348   : > { %v950_v23 = vld [vmem:[#allocation5 + $0x14b8] sm:$0xff]  ;;  %2502 = vmatpush.msra.mxu1 %v886_v22 }
 0x349   : > { %v1018_v24 = vld [vmem:[#allocation5 + $0x16d8] sm:$0xff]  ;;  %2522 = vmatpush.msra.mxu2 %v950_v23 }
 0x34a   : > { %v818_v26 = vld [vmem:[#allocation5 + $0x1098] sm:$0xff]  ;;  %2541 = vmatpush.msra.mxu3 %v1018_v24 }
 0x34b   : > { %v882_v27 = vld [vmem:[#allocation5 + $0x1298] sm:$0xff]  ;;  %2483 = vmatpush.msra.mxu0 %v818_v26 }
 0x34c   : > { %v946_v28 = vld [vmem:[#allocation5 + $0x1498] sm:$0xff]  ;;  %2503 = vmatpush.msra.mxu1 %v882_v27 }
 0x34d   : > { %v1014_v29 = vld [vmem:[#allocation5 + $0x16b8] sm:$0xff]  ;;  %2523 = vmatpush.msra.mxu2 %v946_v28 }
 0x34e   : > { %v814_v33 = vld [vmem:[#allocation5 + $0x1078] sm:$0xff]  ;;  %2542 = vmatpush.msra.mxu3 %v1014_v29  ;;  %v3497_v29 = vpop.f32.mrf.mxu3 }
 0x34f   : > { %v878_v46 = vld [vmem:[#allocation5 + $0x1278] sm:$0xff]  ;;  %2484 = vmatpush.msra.mxu0 %v814_v33  ;;  %v3499_v33 = vpop.f32.mrf.mxu1 }
 0x350   : > { %v942_v34 = vld [vmem:[#allocation5 + $0x1478] sm:$0xff]  ;;  %2504 = vmatpush.msra.mxu1 %v878_v46 }
 0x351   : > { %v1010_v35 = vld [vmem:[#allocation5 + $0x1698] sm:$0xff]  ;;  %2524 = vmatpush.msra.mxu2 %v942_v34 }
 0x352   : > { %v810_v37 = vld [vmem:[#allocation5 + $0x1058] sm:$0xff]  ;;  %2543 = vmatpush.msra.mxu3 %v1010_v35 }
 0x353   : > { %v874_v38 = vld [vmem:[#allocation5 + $0x1258] sm:$0xff]  ;;  %2485 = vmatpush.msra.mxu0 %v810_v37 }
 0x354   : > { %v938_v39 = vld [vmem:[#allocation5 + $0x1458] sm:$0xff]  ;;  %2505 = vmatpush.msra.mxu1 %v874_v38  ;;  %v3501_v38 = vpop.f32.mrf.mxu0 }
 0x355   : > { %v1006_v48 = vld [vmem:[#allocation5 + $0x1678] sm:$0xff]  ;;  %2525 = vmatpush.msra.mxu2 %v938_v39 }
 0x356   : > { %v806_v41 = vld [vmem:[#allocation5 + $0x1038] sm:$0xff]  ;;  %2544 = vmatpush.msra.mxu3 %v1006_v48 }
 0x357   : > { %v870_v42 = vld [vmem:[#allocation5 + $0x1238] sm:$0xff]  ;;  %2486 = vmatpush.msra.mxu0 %v806_v41 }
 0x358   : > { %v934_v43 = vld [vmem:[#allocation5 + $0x1438] sm:$0xff]  ;;  %2506 = vmatpush.msra.mxu1 %v870_v42 }
 0x359   : > { %v1002_v50 = vld [vmem:[#allocation5 + $0x1658] sm:$0xff]  ;;  %2526 = vmatpush.msra.mxu2 %v934_v43  ;;  %v3503_v43 = vpop.f32.mrf.mxu2 }
 0x35a   : > { %v802_v53 = vld [vmem:[#allocation5 + $0x1018] sm:$0xff]  ;;  %2545 = vmatpush.msra.mxu3 %v1002_v50 }
 0x35b   : > { %v866_v62 = vld [vmem:[#allocation5 + $0x1218] sm:$0xff]  ;;  %2487 = vmatpush.msra.mxu0 %v802_v53 }
 0x35c   : > { %v930_v55 = vld [vmem:[#allocation5 + $0x1418] sm:$0xff]  ;;  %2507 = vmatpush.msra.mxu1 %v866_v62 }
 0x35d   : > { %v998_v56 = vld [vmem:[#allocation5 + $0x1638] sm:$0xff]  ;;  %2527 = vmatpush.msra.mxu2 %v930_v55  ;;  %2508 = vmatmul.f32.vlgmr.msra.gmra.mxu1 %v3024_v15  ;;  %v2009_v15 = vpop.f32.mrf.mxu0 }
 0x35e   : > { %v1118_v58 = vld [vmem:[#allocation5 + $0x19f8] sm:$0xff]  ;;  %2546 = vmatpush.msra.mxu3 %v998_v56  ;;  %2528 = vmatmul.f32.vlgmr.msra.gmra.mxu2 %v3023_v5 }
 0x35f   : > { %v1182_v60 = vld [vmem:[#allocation5 + $0x1bf8] sm:$0xff]  ;;  %2552 = vmatpush.msrb.mxu0 %v1118_v58 }
 0x360   : > { %v1246_v3 = vld [vmem:[#allocation5 + $0x1df8] sm:$0xff]  ;;  %2572 = vmatpush.msrb.mxu1 %v1182_v60 }
 0x361   : > { %v994_v0 = vld [vmem:[#allocation5 + $0x1618] sm:$0xff]  ;;  %2592 = vmatpush.msrb.mxu2 %v1246_v3 }
 0x362   : > { %v3022_v4 = vld.sshfl [vmem:[#allocation1] sm:$0xff pattern:$0x73625140]  ;;  %2547 = vmatpush.msra.mxu3 %v994_v0  ;;  %v3505_v0 = vpop.f32.mrf.mxu3 }
 0x363   : > { %2488 = vmatmul.f32.vlgmr.msra.gmra.mxu0 %v3022_v4  ;;  %v1114_v1 = vld [vmem:[#allocation5 + $0x19d8] sm:$0xff]  ;;  %2548 = vmatmul.f32.vlgmr.msra.gmra.mxu3 %v3025_v17  ;;  %v2029_v4 = vpop.f32.mrf.mxu1 }
 0x364   : > { %v1178_v9 = vld [vmem:[#allocation5 + $0x1bd8] sm:$0xff]  ;;  %2553 = vmatpush.msrb.mxu0 %v1114_v1 }
 0x365   : > { %v1242_v10 = vld [vmem:[#allocation5 + $0x1dd8] sm:$0xff]  ;;  %2573 = vmatpush.msrb.mxu1 %v1178_v9 }
 0x366   : > { %v1310_v12 = vld [vmem:[#allocation5 + $0x1ff8] sm:$0xff]  ;;  %2593 = vmatpush.msrb.mxu2 %v1242_v10 }
 0x367   : > { %v1110_v18 = vld [vmem:[#allocation5 + $0x19b8] sm:$0xff]  ;;  %2612 = vmatpush.msrb.mxu3 %v1310_v12  ;;  %v1390_v12 = vadd.f32 %v3435_v52, %v3437_v57 }
 0x368   : > { %v1174_v20 = vld [vmem:[#allocation5 + $0x1bb8] sm:$0xff]  ;;  %2554 = vmatpush.msrb.mxu0 %v1110_v18 }
 0x369   : > { %v1238_v22 = vld [vmem:[#allocation5 + $0x1db8] sm:$0xff]  ;;  %2574 = vmatpush.msrb.mxu1 %v1174_v20  ;;  %v1710_v20 = vadd.f32 %v3475_v8, %v3477_v13 }
 0x36a   : > { %v1306_v23 = vld [vmem:[#allocation5 + $0x1fd8] sm:$0xff]  ;;  %2594 = vmatpush.msrb.mxu2 %v1238_v22  ;;  %v2030_v22 = vadd.f32 %v2029_v4, %v2009_v15 }
 0x36b   : > { %v1106_v24 = vld [vmem:[#allocation5 + $0x1998] sm:$0xff]  ;;  %2613 = vmatpush.msrb.mxu3 %v1306_v23  ;;  %v1730_v13 = vadd.f32 %v3479_v19, %v1710_v20  ;;  %v2109_v20 = vpop.f32.mrf.mxu1 }
 0x36c   : > { %v1170_v26 = vld [vmem:[#allocation5 + $0x1b98] sm:$0xff]  ;;  %2555 = vmatpush.msrb.mxu0 %v1106_v24 }
 0x36d   : > { %v1234_v27 = vld [vmem:[#allocation5 + $0x1d98] sm:$0xff]  ;;  %2575 = vmatpush.msrb.mxu1 %v1170_v26  ;;  %v2049_v26 = vpop.f32.mrf.mxu2 }
 0x36e   : > { %v1302_v28 = vld [vmem:[#allocation5 + $0x1fb8] sm:$0xff]  ;;  %2595 = vmatpush.msrb.mxu2 %v1234_v27 }
 0x36f   : > { %v1102_v46 = vld [vmem:[#allocation5 + $0x1978] sm:$0xff]  ;;  %2614 = vmatpush.msrb.mxu3 %v1302_v28 }
 0x370   : > { %v1166_v34 = vld [vmem:[#allocation5 + $0x1b78] sm:$0xff]  ;;  %2556 = vmatpush.msrb.mxu0 %v1102_v46  ;;  %v1410_v46 = vadd.f32 %v3439_v2, %v1390_v12 }
 0x371   : > { %v1230_v35 = vld [vmem:[#allocation5 + $0x1d78] sm:$0xff]  ;;  %2576 = vmatpush.msrb.mxu1 %v1166_v34 }
 0x372   : > { %v1298_v37 = vld [vmem:[#allocation5 + $0x1f98] sm:$0xff]  ;;  %2596 = vmatpush.msrb.mxu2 %v1230_v35  ;;  %v2050_v35 = vadd.f32 %v2049_v26, %v2030_v22  ;;  %v2665_v22 = vld [vmem:[%s3518_s18 + $0xf8] sm:$0xff] }
 0x373   : > { %v1098_v39 = vld [vmem:[#allocation5 + $0x1958] sm:$0xff]  ;;  %2615 = vmatpush.msrb.mxu3 %v1298_v37 }
 0x374   : > { %v1162_v48 = vld [vmem:[#allocation5 + $0x1b58] sm:$0xff]  ;;  %2557 = vmatpush.msrb.mxu0 %v1098_v39 }
 0x375   : > { %v1226_v41 = vld [vmem:[#allocation5 + $0x1d58] sm:$0xff]  ;;  %2577 = vmatpush.msrb.mxu1 %v1162_v48  ;;  %v2069_v48 = vpop.f32.mrf.mxu3 }
 0x376   : > { %v1294_v42 = vld [vmem:[#allocation5 + $0x1f78] sm:$0xff]  ;;  %2597 = vmatpush.msrb.mxu2 %v1226_v41 }
 0x377   : > { %v1094_v50 = vld [vmem:[#allocation5 + $0x1938] sm:$0xff]  ;;  %2616 = vmatpush.msrb.mxu3 %v1294_v42 }
 0x378   : > { %v1158_v53 = vld [vmem:[#allocation5 + $0x1b38] sm:$0xff]  ;;  %2558 = vmatpush.msrb.mxu0 %v1094_v50 }
 0x379   : > { %v1222_v62 = vld [vmem:[#allocation5 + $0x1d38] sm:$0xff]  ;;  %2578 = vmatpush.msrb.mxu1 %v1158_v53  ;;  %v1430_v53 = vadd.f32 %v3441_v11, %v1410_v46  ;;  %v2648_v46 = vld [vmem:[%s3518_s18 + $0x70] sm:$0xff] }
 0x37a   : > { %v1290_v55 = vld [vmem:[#allocation5 + $0x1f58] sm:$0xff]  ;;  %2598 = vmatpush.msrb.mxu2 %v1222_v62 }
 0x37b   : > { %v1090_v56 = vld [vmem:[#allocation5 + $0x1918] sm:$0xff]  ;;  %2617 = vmatpush.msrb.mxu3 %v1290_v55  ;;  %v1750_v55 = vadd.f32 %v3481_v30, %v1730_v13  ;;  %v3029_v13 = vld.sshfl [vmem:[#allocation1 + $0x38] sm:$0xff pattern:$0x73625140] }
 0x37c   : > { %v1154_v58 = vld [vmem:[#allocation5 + $0x1b18] sm:$0xff]  ;;  %2559 = vmatpush.msrb.mxu0 %v1090_v56  ;;  %v2070_v56 = vadd.f32 %v2069_v48, %v2050_v35  ;;  %v2647_v35 = vld [vmem:[%s3518_s18 + $0x68] sm:$0xff] }
 0x37d   : > { %v1218_v60 = vld [vmem:[#allocation5 + $0x1d18] sm:$0xff]  ;;  %2579 = vmatpush.msrb.mxu1 %v1154_v58  ;;  %v1770_v12 = vadd.f32 %v3485_v49, %v1750_v55 }
 0x37e   : > { %v1286_v3 = vld [vmem:[#allocation5 + $0x1f38] sm:$0xff]  ;;  %2599 = vmatpush.msrb.mxu2 %v1218_v60 }
 0x37f   : > { %v1086_v5 = vld [vmem:[#allocation5 + $0x18f8] sm:$0xff]  ;;  %2618 = vmatpush.msrb.mxu3 %v1286_v3  ;;  %v2089_v3 = vpop.f32.mrf.mxu0  ;;  %v1790_v26 = vadd.f32 %v3483_v47, %v1770_v12 }
 0x380   : > { %v1150_v1 = vld [vmem:[#allocation5 + $0x1af8] sm:$0xff]  ;;  %2560 = vmatpush.msrb.mxu0 %v1086_v5  ;;  %v2090_v15 = vadd.f32 %v2089_v3, %v2070_v56  ;;  %v2644_v3 = vld [vmem:[%s3518_s18 + $0x50] sm:$0xff] }
 0x381   : > { %v1214_v9 = vld [vmem:[#allocation5 + $0x1cf8] sm:$0xff]  ;;  %2580 = vmatpush.msrb.mxu1 %v1150_v1 }
 0x382   : > { %v1282_v10 = vld [vmem:[#allocation5 + $0x1f18] sm:$0xff]  ;;  %2600 = vmatpush.msrb.mxu2 %v1214_v9  ;;  %v1450_v9 = vadd.f32 %v3445_v21, %v1430_v53  ;;  %v2649_v21 = vld [vmem:[%s3518_s18 + $0x78] sm:$0xff] }
 0x383   : > { %v1082_v17 = vld [vmem:[#allocation5 + $0x18d8] sm:$0xff]  ;;  %2619 = vmatpush.msrb.mxu3 %v1282_v10 }
 0x384   : > { %v1146_v18 = vld [vmem:[#allocation5 + $0x1ad8] sm:$0xff]  ;;  %2561 = vmatpush.msrb.mxu0 %v1082_v17  ;;  %v1470_v49 = vadd.f32 %v3443_v16, %v1450_v9  ;;  %v2664_v16 = vld [vmem:[%s3518_s18 + $0xf0] sm:$0xff]  ;;  %v2659_v9 = vld [vmem:[%s3518_s18 + $0xc8] sm:$0xff] }
 0x385   : > { %v1210_v23 = vld [vmem:[#allocation5 + $0x1cd8] sm:$0xff]  ;;  %2581 = vmatpush.msrb.mxu1 %v1146_v18 }
 0x386   : > { %v1278_v24 = vld [vmem:[#allocation5 + $0x1ef8] sm:$0xff]  ;;  %2601 = vmatpush.msrb.mxu2 %v1210_v23  ;;  %v2681_v23 = vld [vmem:[%s3518_s18 + $0x178] sm:$0xff]  ;;  %v1490_v47 = vadd.f32 %v3447_v25, %v1470_v49 }
 0x387   : > { %v1078_v27 = vld [vmem:[#allocation5 + $0x18b8] sm:$0xff]  ;;  %2620 = vmatpush.msrb.mxu3 %v1278_v24 }
 0x388   : > { %v1142_v28 = vld [vmem:[#allocation5 + $0x1ab8] sm:$0xff]  ;;  %2562 = vmatpush.msrb.mxu0 %v1078_v27  ;;  %v2110_v27 = vadd.f32 %v2109_v20, %v2090_v15  ;;  %v1510_v53 = vadd.f32 %v3451_v31, %v1490_v47 }
 0x389   : > { %v1206_v52 = vld [vmem:[#allocation5 + $0x1cb8] sm:$0xff]  ;;  %2582 = vmatpush.msrb.mxu1 %v1142_v28 }
 0x38a   : > { %v1274_v57 = vld [vmem:[#allocation5 + $0x1ed8] sm:$0xff]  ;;  %2602 = vmatpush.msrb.mxu2 %v1206_v52  ;;  %v3027_v52 = vld.sshfl [vmem:[#allocation1 + $0x30] sm:$0xff pattern:$0x73625140] }
 0x38b   : > { %v1074_v34 = vld [vmem:[#allocation5 + $0x1898] sm:$0xff]  ;;  %2621 = vmatpush.msrb.mxu3 %v1274_v57  ;;  %v2129_v57 = vpop.f32.mrf.mxu2 }
 0x38c   : > { %v1138_v8 = vld [vmem:[#allocation5 + $0x1a98] sm:$0xff]  ;;  %2563 = vmatpush.msrb.mxu0 %v1074_v34  ;;  %v2680_v34 = vld [vmem:[%s3518_s18 + $0x170] sm:$0xff]  ;;  %v2130_v48 = vadd.f32 %v2129_v57, %v2110_v27 }
 0x38d   : > { %v1202_v37 = vld [vmem:[#allocation5 + $0x1c98] sm:$0xff]  ;;  %2583 = vmatpush.msrb.mxu1 %v1138_v8  ;;  %v3028_v8 = vld.sshfl [vmem:[#allocation1 + $0x28] sm:$0xff pattern:$0x73625140] }
 0x38e   : > { %v1270_v39 = vld [vmem:[#allocation5 + $0x1eb8] sm:$0xff]  ;;  %2603 = vmatpush.msrb.mxu2 %v1202_v37  ;;  %v2663_v37 = vld [vmem:[%s3518_s18 + $0xe8] sm:$0xff] }
 0x38f   : > { %v1070_v41 = vld [vmem:[#allocation5 + $0x1878] sm:$0xff]  ;;  %2622 = vmatpush.msrb.mxu3 %v1270_v39  ;;  %v1810_v39 = vadd.f32 %v3487_v51, %v1790_v26  ;;  %v2645_v51 = vld [vmem:[%s3518_s18 + $0x58] sm:$0xff]  ;;  %v2656_v26 = vld [vmem:[%s3518_s18 + $0xb0] sm:$0xff] }
 0x390   : > { %v1134_v42 = vld [vmem:[#allocation5 + $0x1a78] sm:$0xff]  ;;  %2564 = vmatpush.msrb.mxu0 %v1070_v41  ;;  %v2679_v41 = vld [vmem:[%s3518_s18 + $0x168] sm:$0xff] }
 0x391   : > { %v1198_v2 = vld [vmem:[#allocation5 + $0x1c78] sm:$0xff]  ;;  %2584 = vmatpush.msrb.mxu1 %v1134_v42  ;;  %v2149_v42 = vpop.f32.mrf.mxu3  ;;  %v1830_v55 = vadd.f32 %v3489_v61, %v1810_v39  ;;  %v2676_v61 = vld [vmem:[%s3518_s18 + $0x150] sm:$0xff]  ;;  %v2653_v39 = vld [vmem:[%s3518_s18 + $0x98] sm:$0xff] }
 0x392   : > { %v1266_v50 = vld [vmem:[#allocation5 + $0x1e98] sm:$0xff]  ;;  %2604 = vmatpush.msrb.mxu2 %v1198_v2  ;;  %v2150_v56 = vadd.f32 %v2149_v42, %v2130_v48  ;;  %v2652_v42 = vld [vmem:[%s3518_s18 + $0x90] sm:$0xff] }
 0x393   : > { %v1066_v19 = vld [vmem:[#allocation5 + $0x1858] sm:$0xff]  ;;  %2623 = vmatpush.msrb.mxu3 %v1266_v50  ;;  %v1850_v31 = vadd.f32 %v3493_v6, %v1830_v55  ;;  %v2667_v55 = vld [vmem:[%s3518_s18 + $0x108] sm:$0xff] }
 0x394   : > { %v1130_v62 = vld [vmem:[#allocation5 + $0x1a58] sm:$0xff]  ;;  %2565 = vmatpush.msrb.mxu0 %v1066_v19  ;;  %v2169_v19 = vpop.f32.mrf.mxu0 }
 0x395   : > { %v1194_v58 = vld [vmem:[#allocation5 + $0x1c58] sm:$0xff]  ;;  %2585 = vmatpush.msrb.mxu1 %v1130_v62  ;;  %v2661_v62 = vld [vmem:[%s3518_s18 + $0xd8] sm:$0xff]  ;;  %v1870_v15 = vadd.f32 %v3491_v63, %v1850_v31  ;;  %v2696_v31 = vld [vmem:[%s3518_s18 + $0x1f0] sm:$0xff] }
 0x396   : > { %v1262_v60 = vld [vmem:[#allocation5 + $0x1e78] sm:$0xff]  ;;  %2605 = vmatpush.msrb.mxu2 %v1194_v58  ;;  %v2677_v58 = vld [vmem:[%s3518_s18 + $0x158] sm:$0xff] }
 0x397   : > { %v1062_v4 = vld [vmem:[#allocation5 + $0x1838] sm:$0xff]  ;;  %2624 = vmatpush.msrb.mxu3 %v1262_v60  ;;  %v1530_v60 = vadd.f32 %v3457_v36, %v1510_v53  ;;  %v2675_v36 = vld [vmem:[%s3518_s18 + $0x148] sm:$0xff]  ;;  %v2673_v63 = vld [vmem:[%s3518_s18 + $0x138] sm:$0xff] }
 0x398   : > { %v1126_v5 = vld [vmem:[#allocation5 + $0x1a38] sm:$0xff]  ;;  %2566 = vmatpush.msrb.mxu0 %v1062_v4  ;;  %v2660_v4 = vld [vmem:[%s3518_s18 + $0xd0] sm:$0xff] }
 0x399   : > { %v1190_v11 = vld [vmem:[#allocation5 + $0x1c38] sm:$0xff]  ;;  %2586 = vmatpush.msrb.mxu1 %v1126_v5  ;;  %v2170_v5 = vadd.f32 %v2169_v19, %v2150_v56  ;;  %v2635_v19 = vld [vmem:[%s3518_s18 + $0x8] sm:$0xff] }
 0x39a   : > { %v1258_v1 = vld [vmem:[#allocation5 + $0x1e58] sm:$0xff]  ;;  %2606 = vmatpush.msrb.mxu2 %v1190_v11  ;;  %v2189_v11 = vpop.f32.mrf.mxu1 }
 0x39b   : > { %v1058_v30 = vld [vmem:[#allocation5 + $0x1818] sm:$0xff]  ;;  %2625 = vmatpush.msrb.mxu3 %v1258_v1  ;;  %v2643_v1 = vld [vmem:[%s3518_s18 + $0x48] sm:$0xff] }
 0x39c   : > { %v1122_v10 = vld [vmem:[#allocation5 + $0x1a18] sm:$0xff]  ;;  %2567 = vmatpush.msrb.mxu0 %v1058_v30  ;;  %v1550_v30 = vadd.f32 %v3453_v32, %v1530_v60  ;;  %v1890_v32 = vadd.f32 %v3495_v14, %v1870_v15  ;;  %v2639_v14 = vld [vmem:[%s3518_s18 + $0x28] sm:$0xff] }
 0x39d   : > { %v1186_v17 = vld [vmem:[#allocation5 + $0x1c18] sm:$0xff]  ;;  %2587 = vmatpush.msrb.mxu1 %v1122_v10  ;;  %v2209_v10 = vpop.f32.mrf.mxu2 }
 0x39e   : > { %v1254_v18 = vld [vmem:[#allocation5 + $0x1e38] sm:$0xff]  ;;  %2607 = vmatpush.msrb.mxu2 %v1186_v17  ;;  %2699 = vmatpush.msra.mxu0 %v2649_v21  ;;  %v2190_v17 = vadd.f32 %v2189_v11, %v2170_v5  ;;  %v1570_v20 = vadd.f32 %v3459_v40, %v1550_v30  ;;  %v2641_v21 = vld [vmem:[%s3518_s18 + $0x38] sm:$0xff]  ;;  %v2672_v40 = vld [vmem:[%s3518_s18 + $0x130] sm:$0xff]  ;;  %v1910_v57 = vadd.f32 %v3497_v29, %v1890_v32 }
 0x39f   : > { %2626 = vmatpush.msrb.mxu3 %v1254_v18  ;;  %v1250_v24 = vld [vmem:[#allocation5 + $0x1e18] sm:$0xff]  ;;  %2608 = vmatmul.f32.vlgmr.msrb.gmra.mxu2 %v3027_v52  ;;  %v2655_v52 = vld [vmem:[%s3518_s18 + $0xa8] sm:$0xff]  ;;  %v2688_v30 = vld [vmem:[%s3518_s18 + $0x1b0] sm:$0xff] }
 0x3a0   : > { %v3026_v28 = vld.sshfl [vmem:[#allocation1 + $0x20] sm:$0xff pattern:$0x73625140]  ;;  %2719 = vmatpush.msra.mxu1 %v2665_v22  ;;  %2739 = vmatpush.msra.mxu2 %v2681_v23  ;;  %v2657_v22 = vld [vmem:[%s3518_s18 + $0xb8] sm:$0xff]  ;;  %v2210_v49 = vadd.f32 %v2209_v10, %v2190_v17  ;;  %v2229_v23 = vpop.f32.mrf.mxu3  ;;  %v1590_v27 = vadd.f32 %v3462_v44, %v1570_v20  ;;  %v1930_v44 = vadd.f32 %v3501_v38, %v1910_v57  ;;  %v2636_v38 = vld [vmem:[%s3518_s18 + $0x10] sm:$0xff] }
 0x3a1   : > { %2568 = vmatmul.f32.vlgmr.msrb.gmra.mxu0 %v3026_v28  ;;  %2627 = vmatpush.msrb.mxu3 %v1250_v24  ;;  %v2646_v2 = vld [vmem:[%s3518_s18 + $0x60] sm:$0xff]  ;;  %v2640_v24 = vld [vmem:[%s3518_s18 + $0x30] sm:$0xff]  ;;  %v2249_v28 = vpop.f32.mrf.mxu0  ;;  %v2691_v11 = vld [vmem:[%s3518_s18 + $0x1c8] sm:$0xff] }
 0x3a2   : > { %2588 = vmatmul.f32.vlgmr.msrb.gmra.mxu1 %v3028_v8  ;;  %2628 = vmatmul.f32.vlgmr.msrb.gmra.mxu3 %v3029_v13  ;;  %v2662_v25 = vld [vmem:[%s3518_s18 + $0xe0] sm:$0xff]  ;;  %v2685_v32 = vld [vmem:[%s3518_s18 + $0x198] sm:$0xff] }
 0x3a3   : > { %2700 = vmatpush.msra.mxu0 %v2648_v46  ;;  %2720 = vmatpush.msra.mxu1 %v2664_v16  ;;  %v2678_v50 = vld [vmem:[%s3518_s18 + $0x160] sm:$0xff]  ;;  %v2230_v46 = vadd.f32 %v2229_v23, %v2210_v49  ;;  %v2671_v16 = vld [vmem:[%s3518_s18 + $0x128] sm:$0xff] }
 0x3a4   : > { %2740 = vmatpush.msra.mxu2 %v2680_v34  ;;  %v2642_v6 = vld [vmem:[%s3518_s18 + $0x40] sm:$0xff]  ;;  %v1610_v34 = vadd.f32 %v3467_v54, %v1590_v27  ;;  %v2669_v54 = vld [vmem:[%s3518_s18 + $0x118] sm:$0xff] }
 0x3a5   : > { %2701 = vmatpush.msra.mxu0 %v2647_v35  ;;  %2721 = vmatpush.msra.mxu1 %v2663_v37  ;;  %v2658_v12 = vld [vmem:[%s3518_s18 + $0xc0] sm:$0xff]  ;;  %v2250_v13 = vadd.f32 %v2249_v28, %v2230_v46  ;;  %v2269_v35 = vpop.f32.mrf.mxu1  ;;  %v2637_v37 = vld [vmem:[%s3518_s18 + $0x18] sm:$0xff] }
 0x3a6   : > { %2741 = vmatpush.msra.mxu2 %v2679_v41  ;;  %v2674_v18 = vld [vmem:[%s3518_s18 + $0x140] sm:$0xff]  ;;  %v1630_v48 = vadd.f32 %v3464_v45, %v1610_v34  ;;  %v2289_v41 = vpop.f32.mrf.mxu2 }
 0x3a7   : > { %2702 = vmatpush.msra.mxu0 %v2646_v2  ;;  %2722 = vmatpush.msra.mxu1 %v2662_v25  ;;  %v2638_v47 = vld [vmem:[%s3518_s18 + $0x20] sm:$0xff]  ;;  %v1950_v2 = vadd.f32 %v3499_v33, %v1930_v44  ;;  %v2270_v25 = vadd.f32 %v2269_v35, %v2250_v13 }
 0x3a8   : > { %2742 = vmatpush.msra.mxu2 %v2678_v50  ;;  %v2654_v8 = vld [vmem:[%s3518_s18 + $0xa0] sm:$0xff]  ;;  %v2668_v50 = vld [vmem:[%s3518_s18 + $0x110] sm:$0xff]  ;;  %v1650_v53 = vadd.f32 %v3470_v59, %v1630_v48  ;;  %v2309_v56 = vpop.f32.mrf.mxu3 }
 0x3a9   : > { %2703 = vmatpush.msra.mxu0 %v2645_v51  ;;  %2723 = vmatpush.msra.mxu1 %v2661_v62  ;;  %v2670_v29 = vld [vmem:[%s3518_s18 + $0x120] sm:$0xff]  ;;  %v2651_v51 = vld [vmem:[%s3518_s18 + $0x88] sm:$0xff]  ;;  %v1970_v45 = vadd.f32 %v3503_v43, %v1950_v2  ;;  %v2290_v62 = vadd.f32 %v2289_v41, %v2270_v25  ;;  %v2329_v10 = vpop.f32.mrf.mxu0 }
 0x3aa   : > { %2743 = vmatpush.msra.mxu2 %v2677_v58  ;;  %v2634_v33 = vld [vmem:[%s3518_s18] sm:$0xff]  ;;  %v1670_v59 = vadd.f32 %v3473_v7, %v1650_v53  ;;  %v2695_v7 = vld [vmem:[%s3518_s18 + $0x1e8] sm:$0xff] }
 0x3ab   : > { %2704 = vmatpush.msra.mxu0 %v2644_v3  ;;  %2724 = vmatpush.msra.mxu1 %v2660_v4  ;;  %v2650_v58 = vld [vmem:[%s3518_s18 + $0x80] sm:$0xff]  ;;  %v1990_v43 = vadd.f32 %v3505_v0, %v1970_v45  ;;  %v2310_v3 = vadd.f32 %v2309_v56, %v2290_v62  ;;  %v2697_v4 = vld [vmem:[%s3518_s18 + $0x1f8] sm:$0xff] }
 0x3ac   : > { %2744 = vmatpush.msra.mxu2 %v2676_v61  ;;  %v2666_v60 = vld [vmem:[%s3518_s18 + $0x100] sm:$0xff]  ;;  %2759 = vmatpush.msra.mxu3 %v2697_v4  ;;  %v2693_v0 = vld [vmem:[%s3518_s18 + $0x1d8] sm:$0xff]  ;;  %v2692_v61 = vld [vmem:[%s3518_s18 + $0x1d0] sm:$0xff] }
 0x3ad   : > { %2705 = vmatpush.msra.mxu0 %v2643_v1  ;;  %2725 = vmatpush.msra.mxu1 %v2659_v9  ;;  %v2694_v5 = vld [vmem:[%s3518_s18 + $0x1e0] sm:$0xff]  ;;  %v2689_v9 = vld [vmem:[%s3518_s18 + $0x1b8] sm:$0xff] }
 0x3ae   : > { %2745 = vmatpush.msra.mxu2 %v2675_v36  ;;  %2760 = vmatpush.msra.mxu3 %v2696_v31  ;;  %v2690_v1 = vld [vmem:[%s3518_s18 + $0x1c0] sm:$0xff]  ;;  %v2349_v36 = vpop.f32.mrf.mxu1 }
 0x3af   : > { %2706 = vmatpush.msra.mxu0 %v2642_v6  ;;  %2726 = vmatpush.msra.mxu1 %v2658_v12  ;;  %v2350_v6 = vadd.f32 %v2349_v36, %v2329_v10  ;;  %v2369_v12 = vpop.f32.mrf.mxu2 }
 0x3b0   : > { %2746 = vmatpush.msra.mxu2 %v2674_v18  ;;  %2761 = vmatpush.msra.mxu3 %v2695_v7  ;;  %v2389_v17 = vpop.f32.mrf.mxu3  ;;  %v2687_v18 = vld [vmem:[%s3518_s18 + $0x1a8] sm:$0xff] }
 0x3b1   : > { %2707 = vmatpush.msra.mxu0 %v2641_v21  ;;  %2727 = vmatpush.msra.mxu1 %v2657_v22  ;;  %v2370_v15 = vadd.f32 %v2369_v12, %v2350_v6  ;;  %v2409_v21 = vpop.f32.mrf.mxu0  ;;  %v2686_v22 = vld [vmem:[%s3518_s18 + $0x1a0] sm:$0xff] }
 0x3b2   : > { %2747 = vmatpush.msra.mxu2 %v2673_v63  ;;  %2762 = vmatpush.msra.mxu3 %v2694_v5  ;;  %v2684_v63 = vld [vmem:[%s3518_s18 + $0x190] sm:$0xff] }
 0x3b3   : > { %2708 = vmatpush.msra.mxu0 %v2640_v24  ;;  %2728 = vmatpush.msra.mxu1 %v2656_v26  ;;  %v2390_v20 = vadd.f32 %v2389_v17, %v2370_v15  ;;  %v2683_v24 = vld [vmem:[%s3518_s18 + $0x188] sm:$0xff]  ;;  %v2682_v26 = vld [vmem:[%s3518_s18 + $0x180] sm:$0xff] }
 0x3b4   : > { %2748 = vmatpush.msra.mxu2 %v2672_v40  ;;  %2763 = vmatpush.msra.mxu3 %v2693_v0 }
 0x3b5   : > { %2709 = vmatpush.msra.mxu0 %v2639_v14  ;;  %2729 = vmatpush.msra.mxu1 %v2655_v52  ;;  %v2410_v49 = vadd.f32 %v2409_v21, %v2390_v20 }
 0x3b6   : > { %2749 = vmatpush.msra.mxu2 %v2671_v16  ;;  %2764 = vmatpush.msra.mxu3 %v2692_v61  ;;  %v2429_v23 = vpop.f32.mrf.mxu1 }
 0x3b7   : > { %2710 = vmatpush.msra.mxu0 %v2638_v47  ;;  %2730 = vmatpush.msra.mxu1 %v2654_v8  ;;  %v2430_v40 = vadd.f32 %v2429_v23, %v2410_v49  ;;  %v2449_v27 = vpop.f32.mrf.mxu2 }
 0x3b8   : > { %2750 = vmatpush.msra.mxu2 %v2670_v29  ;;  %2765 = vmatpush.msra.mxu3 %v2691_v11  ;;  %v2469_v14 = vpop.f32.mrf.mxu3 }
 0x3b9   : > { %2711 = vmatpush.msra.mxu0 %v2637_v37  ;;  %2731 = vmatpush.msra.mxu1 %v2653_v39  ;;  %v2450_v28 = vadd.f32 %v2449_v27, %v2430_v40 }
 0x3ba   : > { %2751 = vmatpush.msra.mxu2 %v2669_v54  ;;  %2766 = vmatpush.msra.mxu3 %v2690_v1 }
 0x3bb   : > { %2712 = vmatpush.msra.mxu0 %v2636_v38  ;;  %2732 = vmatpush.msra.mxu1 %v2652_v42  ;;  %v2470_v57 = vadd.f32 %v2469_v14, %v2450_v28 }
 0x3bc   : > { %2752 = vmatpush.msra.mxu2 %v2668_v50  ;;  %2767 = vmatpush.msra.mxu3 %v2689_v9 }
 0x3bd   : > { %2713 = vmatpush.msra.mxu0 %v2635_v19  ;;  %2733 = vmatpush.msra.mxu1 %v2651_v51  ;;  %v2698_v19 = vld [vmem:[#allocation10] sm:$0x3] }
 0x3be   : > { %2753 = vmatpush.msra.mxu2 %v2667_v55  ;;  %2768 = vmatpush.msra.mxu3 %v2688_v30 }
 0x3bf   : > { %2714 = vmatpush.msra.mxu0 %v2634_v33  ;;  %2734 = vmatpush.msra.mxu1 %v2650_v58 }
 0x3c0   : > { %2754 = vmatpush.msra.mxu2 %v2666_v60  ;;  %2715 = vmatmul.f32.vlgmr.msra.gmra.mxu0 %v1670_v59 }
 0x3c1   : > { %2735 = vmatmul.f32.vlgmr.msra.gmra.mxu1 %v1990_v43  ;;  %2755 = vmatmul.f32.vlgmr.msra.gmra.mxu2 %v2310_v3 }
 0x3c2   : > { %2769 = vmatpush.msra.mxu3 %v2687_v18 }
 0x3c4   : > { %2770 = vmatpush.msra.mxu3 %v2686_v22 }
 0x3c6   : > { %2771 = vmatpush.msra.mxu3 %v2685_v32 }
 0x3c8   : > { %2772 = vmatpush.msra.mxu3 %v2684_v63 }
 0x3ca   : > { %2773 = vmatpush.msra.mxu3 %v2683_v24 }
 0x3cc   : > { %2774 = vmatpush.msra.mxu3 %v2682_v26 }
 0x3da   : > { %v2509_v16 = vpop.f32.mrf.mxu1 }
 0x3e0   : > { %v2489_v52 = vpop.f32.mrf.mxu0 }
 0x3e1   : > { %v2490_v46 = vadd.f32 %v2489_v52, %v2470_v57  ;;  %v2529_v34 = vpop.f32.mrf.mxu2 }
 0x3e3   : > { %v2510_v47 = vadd.f32 %v2509_v16, %v2490_v46 }
 0x3e5   : > { %v2530_v8 = vadd.f32 %v2529_v34, %v2510_v47 }
 0x3e6   : > { %v2549_v44 = vpop.f32.mrf.mxu3 }
 0x3e7   : > { %v2550_v13 = vadd.f32 %v2549_v44, %v2530_v8 }
 0x41e   : > { %v2569_v29 = vpop.f32.mrf.mxu0 }
 0x41f   : > { %v2570_v35 = vadd.f32 %v2569_v29, %v2550_v13  ;;  %v2589_v37 = vpop.f32.mrf.mxu1 }
 0x421   : > { %v2590_v39 = vadd.f32 %v2589_v37, %v2570_v35 }
 0x422   : > { %v2609_v54 = vpop.f32.mrf.mxu2 }
 0x423   : > { %v2610_v48 = vadd.f32 %v2609_v54, %v2590_v39 }
 0x425   : > { %v2629_v41 = vpop.f32.mrf.mxu3 }
 0x426   : > { %v2630_v38 = vadd.f32 %v2629_v41, %v2610_v48 }
 0x428   : > { %2775 = vmatmul.f32.vlgmr.msra.gmra.mxu3 %v2630_v38 }
 0x43d   : > { %v2716_v42 = vpop.f32.mrf.mxu0 }
 0x43e   : > { %v2736_v2 = vpop.f32.mrf.mxu1 }
 0x43f   : > { %v2737_v50 = vadd.f32 %v2736_v2, %v2716_v42 }
 0x444   : > { %v2756_v25 = vpop.f32.mrf.mxu2 }
 0x445   : > { %v2757_v53 = vadd.f32 %v2756_v25, %v2737_v50 }
 0x4ab   : > { %v2776_v51 = vpop.f32.mrf.mxu3 }
 0x4ac   : > { %v2777_v45 = vadd.f32 %v2776_v51, %v2757_v53 }
 0x4ae   : > { %v2779_v62 = vadd.f32 %v2777_v45, %v2698_v19 }
 0x4b0   : > { %2780 = vst [vmem:[#allocation10] sm:$0x3] %v2779_v62 }
 0x4b1   : > { %2923 = dma.vmem_to_hbm [thread:$0]  (%p2947_p1), %s2790_s5, 32, %s2792_s7, [#allocation4]  }
 0x4b2   : > { %3215 = dma.done.wait (%p2947_p1), [#allocation4], 32  }
 0x4b3   : > { %3217 = vsyncadd (%p2947_p1), [#allocation4], 4294967264 }
 0x4b4 PF: > { %s20_s20 = sadd.s32 1, %s3240_s20   ;;  %s3639_s15 = smov %s3224_s16 }
 0x4b5   : > { %p17_p3 = scmp.ge.s32.totalorder %s20_s20, 6   ;;  %s3640_s16 = smov %s3228_s17 }
 0x4b6   : > { %s3641_s17 = smov %s3365_s8  ;;  %s3642_s18 = smov %s3236_s19 }
 0x4b7   : > { %s3643_s19 = smov %s3645_s27  ;;  %19 = sbr.rel (!%p17_p3) target bundleno = 7 (0x7), region = 92 }
 0x4bc   :  { %2805 = vsyncpa [#allocation3], 1 }
 0x4bd   :  { %2807 = vsyncpa [#allocation3 + $0x1], 1 }
 0x4be   :  { %2808 = vsyncpa [#allocation6], 1 }
 0x4bf   :  { %2809 = vsyncpa [#allocation9], 1 }
 0x4c0   :  { %2810 = vsyncpa [#allocation4], 1 }
 0x4c1   :  { %2812 = vsyncpa [#allocation4 + $0x1], 1 }

</bundles_post_ra>
